<compile_context>
chip_gen: v6e
topology: v6e:2x2x1
jax: 0.10.0
libtpu: 0.0.40
codegen_flags: <defaults>
</compile_context>

<pallas_src>
import math
import jax
import jax.numpy as jnp
from jax.experimental import pallas as pl
from jax.experimental.pallas import tpu as pltpu


# ----------------------------- mask construction (glue, pure JAX) -----------------------------
def create_masks(input_size, hidden_size, n_hidden, input_order="sequential", input_degrees=None):
    assert input_order == "sequential", "only sequential order implemented"
    if input_degrees is None:
        input_degrees = jnp.arange(input_size)
    degrees = [input_degrees]
    for _ in range(n_hidden + 1):
        degrees.append(jnp.arange(hidden_size) % (input_size - 1))
    degrees.append(input_degrees % input_size - 1)

    masks = []
    for d0, d1 in zip(degrees[:-1], degrees[1:]):
        # PyTorch: (d1.unsqueeze(-1) >= d0.unsqueeze(0)).float()  -> shape (out, in)
        masks.append((d1[:, None] >= d0[None, :]).astype(jnp.float32))
    return masks, degrees[0]


def build_made_params(key, input_size, hidden_size, n_hidden, input_degrees=None):
    """Deterministic PyTorch-Linear-style params for one MADE block.

    Returns (layers, input_degrees) where layers is a list of (W, b, M) with
    W: (out, in) PyTorch layout, b: (out,), M: (out, in) binary mask.
    The last layer has out = 2 * input_size with the mask repeated twice along out.
    """
    masks, deg0 = create_masks(input_size, hidden_size, n_hidden, "sequential", input_degrees)
    layer_masks = [masks[0]] + list(masks[1:-1]) \
        + [jnp.concatenate([masks[-1], masks[-1]], axis=0)]   # == masks[-1].repeat(2, 1)
    layer_dims = [(input_size, hidden_size)] \
        + [(hidden_size, hidden_size)] * n_hidden \
        + [(hidden_size, 2 * input_size)]

    layers = []
    for (n_in, n_out), M in zip(layer_dims, layer_masks):
        key, kw, kb = jax.random.split(key, 3)
        bound = 1.0 / math.sqrt(n_in)
        W = jax.random.uniform(kw, (n_out, n_in), jnp.float32, -bound, bound)
        b = jax.random.uniform(kb, (n_out,), jnp.float32, -bound, bound)
        layers.append((W, b, M))
    return layers, deg0


# ----------------------------- Pallas kernel -----------------------------
def make_maf_chunk_kernel(n_blocks, n_pre, D_pad, H_pad, has_logdet_in):
    """Kernel for a chunk of consecutive MADE blocks.

    Ref order:
      x, [logdet_in], bias_table, [ W_l0 .. W_l{n_pre-1}, W_out(fused mu|alpha) ] * n_blocks,
      u, sum_logdet
    Weights are pre-masked, (in, out)-transposed, lane-padded (possibly bf16).
    bias_table is f32, shape (n_blocks*(n_pre+1), max(H_pad, 2*D_pad)).
    """
    n_w_per_block = n_pre + 1

    def kernel(*refs):
        idx = 0
        x_ref = refs[idx]; idx += 1
        ld_in_ref = None
        if has_logdet_in:
            ld_in_ref = refs[idx]; idx += 1
        bias_ref = refs[idx]; idx += 1
        w_refs = refs[idx: idx + n_blocks * n_w_per_block]
        u_ref = refs[-2]
        ld_ref = refs[-1]

        x = x_ref[...]                                          # f32 (tile, D_pad)
        sum_logdet = ld_in_ref[...] if has_logdet_in else None

        for blk in range(n_blocks):
            h = x
            for li in range(n_pre):
                w = w_refs[blk * n_w_per_block + li][...]       # (in, out), mask folded in
                if li > 0:
                    h = jnp.maximum(h, 0.0)                     # ReLU precedes every linear but the first
                h = jnp.dot(h.astype(w.dtype), w, preferred_element_type=jnp.float32)
                h = h + bias_ref[blk * n_w_per_block + li][:H_pad][None, :]
            h = jnp.maximum(h, 0.0)                             # ReLU before the output linear

            w_out = w_refs[blk * n_w_per_block + n_pre][...]    # (H_pad, 2*D_pad), fused mu|alpha
            out = jnp.dot(h.astype(w_out.dtype), w_out, preferred_element_type=jnp.float32)
            out = out + bias_ref[blk * n_w_per_block + n_pre][:2 * D_pad][None, :]

            mu = out[:, :D_pad]                                 # 128-aligned static lane slices
            alpha = out[:, D_pad:2 * D_pad]

            x = (x - mu) * jnp.exp(-alpha)                      # f32 elementwise / EUP exp
            sum_logdet = (-alpha) if sum_logdet is None else (sum_logdet - alpha)

        u_ref[...] = x
        ld_ref[...] = sum_logdet

    return kernel


# ----------------------------- per-chunk wrapper -----------------------------
def _run_chunk(x_pad, ld_pad, chunk, *, D, H, D_pad, H_pad, tile, weight_dtype, vmem_limit_bytes):
    B_pad = x_pad.shape[0]
    n_blk = len(chunk)
    n_pre = len(chunk[0]) - 1
    BW = max(H_pad, 2 * D_pad)
    has_ld_in = ld_pad is not None

    # Fold masks, transpose, pad, fuse mu|alpha, build the one bias table.
    weights = []
    bias_rows = []
    for layers in chunk:
        for li in range(n_pre):
            W, b, M = layers[li]
            Wm = (jnp.asarray(W, jnp.float32) * jnp.asarray(M, jnp.float32)).T   # (in, out)
            in_dim = D_pad if li == 0 else H_pad
            Wp = jnp.zeros((in_dim, H_pad), jnp.float32).at[:Wm.shape[0], :Wm.shape[1]].set(Wm)
            weights.append(Wp.astype(weight_dtype))
            b = jnp.asarray(b, jnp.float32)
            bias_rows.append(jnp.zeros((BW,), jnp.float32).at[:b.shape[0]].set(b))
        W, b, M = layers[-1]
        Wm = jnp.asarray(W, jnp.float32) * jnp.asarray(M, jnp.float32)           # (2D, H)
        b = jnp.asarray(b, jnp.float32)
        W_out = (jnp.zeros((H_pad, 2 * D_pad), jnp.float32)
                 .at[:H, :D].set(Wm[:D].T)                 # mu columns   [0, D_pad)
                 .at[:H, D_pad:D_pad + D].set(Wm[D:].T))   # alpha columns [D_pad, 2*D_pad)
        weights.append(W_out.astype(weight_dtype))
        bias_rows.append(jnp.zeros((BW,), jnp.float32)
                         .at[:D].set(b[:D])
                         .at[D_pad:D_pad + D].set(b[D:]))
    bias_tab = jnp.stack(bias_rows)                        # (n_blk*(n_pre+1), BW), f32

    kernel = make_maf_chunk_kernel(n_blk, n_pre, D_pad, H_pad, has_ld_in)

    def build_and_call(single_buffer_resident):
        def resident(shape):
            # Full-array block, constant index_map -> stays resident in VMEM across grid steps.
            if single_buffer_resident:
                return pl.BlockSpec(shape, lambda i: (0, 0), pipeline_mode=pl.Buffered(1))
            return pl.BlockSpec(shape, lambda i: (0, 0))

        args = [x_pad]
        specs = [pl.BlockSpec((tile, D_pad), lambda i: (i, 0))]
        if has_ld_in:
            args.append(ld_pad)
            specs.append(pl.BlockSpec((tile, D_pad), lambda i: (i, 0)))
        args.append(bias_tab)
        specs.append(resident(bias_tab.shape))
        for w in weights:
            args.append(w)
            specs.append(resident(w.shape))

        out = pl.pallas_call(
            kernel,
            out_shape=(jax.ShapeDtypeStruct((B_pad, D_pad), jnp.float32),
                       jax.ShapeDtypeStruct((B_pad, D_pad), jnp.float32)),
            grid=(B_pad // tile,),
            in_specs=specs,
            out_specs=(pl.BlockSpec((tile, D_pad), lambda i: (i, 0)),
                       pl.BlockSpec((tile, D_pad), lambda i: (i, 0))),
            compiler_params=pltpu.CompilerParams(
                dimension_semantics=("parallel",),        # shards batch tiles across TCs on v7x
                vmem_limit_bytes=vmem_limit_bytes,
            ),
        )(*args)
        return jax.block_until_ready(out)

    try:
        return build_and_call(True)
    except Exception:
        # pl.Buffered(1) not accepted by this jax/libtpu build -> default double-buffering.
        return build_and_call(False)


# ----------------------------- top-level wrapper -----------------------------
def maf_forward(x, blocks, *, tile_b=512, weight_dtype=jnp.bfloat16,
                vmem_budget_bytes=40 * 1024 * 1024):
    """x: (B, D) float32. blocks: list (per MADE block) of [(W, b, M), ...] PyTorch-layout layers."""
    B, D = x.shape
    n_blocks = len(blocks)
    n_pre = len(blocks[0]) - 1              # input linear + hidden linears
    H = blocks[0][0][0].shape[0]            # hidden size

    # Lane-dense padding of feature dims (last dim multiple of 128; keep at 128 granularity).
    D_pad = max(128, pl.cdiv(D, 128) * 128)
    H_pad = max(128, pl.cdiv(H, 128) * 128)
    BW = max(H_pad, 2 * D_pad)

    # Batch tiling: tile multiple of 8; cap so the parallel grid has >=2 steps when possible.
    B_pad8 = pl.cdiv(B, 8) * 8
    tile = min(int(tile_b), B_pad8)
    if B_pad8 >= 16:
        tile = min(tile, B_pad8 // 2)
    tile = max(8, (tile // 8) * 8)
    B_pad = pl.cdiv(B, tile) * tile

    x_pad = jnp.pad(jnp.asarray(x, jnp.float32), ((0, B_pad - B), (0, D_pad - D)))

    # VMEM budgeting: how many MADE blocks can stay resident per pallas_call.
    dsize = jnp.dtype(weight_dtype).itemsize
    w_bytes_blk = (D_pad * H_pad + max(0, n_pre - 1) * H_pad * H_pad
                   + H_pad * 2 * D_pad) * dsize
    bias_bytes_blk = (n_pre + 1) * BW * 4
    per_block = w_bytes_blk + bias_bytes_blk
    io_bytes = 8 * tile * D_pad * 4                      # x / ld_in / u / ld_out, double-buffered
    live_bytes = 4 * tile * max(H_pad, 2 * D_pad) * 4    # activation temporaries margin
    avail = max(vmem_budget_bytes - io_bytes - live_bytes, per_block)
    blocks_per_call = max(1, int(avail // per_block))

    est = min(n_blocks, blocks_per_call) * per_block + io_bytes + live_bytes
    vmem_limit = int(min(max(est * 1.4, 32 * 1024 * 1024), 56 * 1024 * 1024))

    u_pad = x_pad
    ld_pad = None
    for start in range(0, n_blocks, blocks_per_call):
        chunk = blocks[start:start + blocks_per_call]
        u_pad, ld_pad = _run_chunk(u_pad, ld_pad, chunk,
                                   D=D, H=H, D_pad=D_pad, H_pad=H_pad, tile=tile,
                                   weight_dtype=weight_dtype,
                                   vmem_limit_bytes=vmem_limit)

    return u_pad[:B, :D], ld_pad[:B, :D]


# ----------------------------- reference (pure JAX) -----------------------------
def maf_forward_ref(x, blocks):
    D = x.shape[1]
    sum_logdet = jnp.zeros_like(x)
    for layers in blocks:
        h = x
        for li, (W, b, M) in enumerate(layers):
            if li > 0:
                h = jnp.maximum(h, 0.0)
            h = h @ (W * M).T + b
        mu, alpha = h[:, :D], h[:, D:]
        x = (x - mu) * jnp.exp(-alpha)
        sum_logdet = sum_logdet - alpha
    return x, sum_logdet


# ----------------------------- main -----------------------------
if __name__ == "__main__":
    # Small MAF consistent with the module: n_blocks MADE blocks, degrees flipped between blocks.
    n_blocks = 3
    input_size = 8
    hidden_size = 32
    n_hidden = 1
    batch = 2

    key = jax.random.PRNGKey(0)
    blocks = []
    input_degrees = None
    for _ in range(n_blocks):
        key, kblk = jax.random.split(key)
        layers, deg0 = build_made_params(kblk, input_size, hidden_size, n_hidden, input_degrees)
        blocks.append(layers)
        input_degrees = jnp.flip(deg0, axis=0)   # MAF: self.input_degrees = made.input_degrees.flip(0)

    key, kx = jax.random.split(key)
    x = jax.random.normal(kx, (batch, input_size), jnp.float32)

    u_ref, logdet_ref = maf_forward_ref(x, blocks)

    # Exact-check mode: f32 MXU operands, tight tolerance.
    u32, ld32 = maf_forward(x, blocks, weight_dtype=jnp.float32)
    jax.block_until_ready((u32, ld32))
    assert u32.shape == (batch, input_size) and ld32.shape == (batch, input_size)
    assert jnp.allclose(u32, u_ref, atol=1e-5, rtol=1e-5)
    assert jnp.allclose(ld32, logdet_ref, atol=1e-5, rtol=1e-5)

    # Default perf path: bf16 MXU operands (f32 accumulation / elementwise), relaxed tolerance.
    u, ld = maf_forward(x, blocks)
    jax.block_until_ready((u, ld))
    assert u.shape == (batch, input_size) and ld.shape == (batch, input_size)
    assert jnp.allclose(u, u_ref, atol=5e-2, rtol=5e-2)
    assert jnp.allclose(ld, logdet_ref, atol=5e-2, rtol=5e-2)

    print("KERNEL_OK")
</pallas_src>

<mosaic_0001>
module attributes {stable_mosaic.version = 11 : i64} {
  func.func @kernel(%arg0: i32, %arg1: memref<8x128xf32, #tpu.memory_space<vmem>>, %arg2: memref<9x256xf32, #tpu.memory_space<vmem>>, %arg3: memref<128x128xf32, #tpu.memory_space<vmem>>, %arg4: memref<128x128xf32, #tpu.memory_space<vmem>>, %arg5: memref<128x256xf32, #tpu.memory_space<vmem>>, %arg6: memref<128x128xf32, #tpu.memory_space<vmem>>, %arg7: memref<128x128xf32, #tpu.memory_space<vmem>>, %arg8: memref<128x256xf32, #tpu.memory_space<vmem>>, %arg9: memref<128x128xf32, #tpu.memory_space<vmem>>, %arg10: memref<128x128xf32, #tpu.memory_space<vmem>>, %arg11: memref<128x256xf32, #tpu.memory_space<vmem>>, %arg12: memref<8x128xf32, #tpu.memory_space<vmem>>, %arg13: memref<8x128xf32, #tpu.memory_space<vmem>>) attributes {dimension_semantics = [#tpu.dimension_semantics<parallel>], iteration_bounds = array<i64: 1>, scalar_prefetch = 0 : i64, scratch_operands = 0 : i64, tpu.core_type = #tpu.core_type<tc>, window_params = [{transform_indices = @transform_0, window_bounds = array<i64: 8, 128>}, {pipeline_mode = #tpu.pipeline_mode<synchronous>, transform_indices = @transform_1, window_bounds = array<i64: 9, 256>}, {pipeline_mode = #tpu.pipeline_mode<synchronous>, transform_indices = @transform_2, window_bounds = array<i64: 128, 128>}, {pipeline_mode = #tpu.pipeline_mode<synchronous>, transform_indices = @transform_3, window_bounds = array<i64: 128, 128>}, {pipeline_mode = #tpu.pipeline_mode<synchronous>, transform_indices = @transform_4, window_bounds = array<i64: 128, 256>}, {pipeline_mode = #tpu.pipeline_mode<synchronous>, transform_indices = @transform_5, window_bounds = array<i64: 128, 128>}, {pipeline_mode = #tpu.pipeline_mode<synchronous>, transform_indices = @transform_6, window_bounds = array<i64: 128, 128>}, {pipeline_mode = #tpu.pipeline_mode<synchronous>, transform_indices = @transform_7, window_bounds = array<i64: 128, 256>}, {pipeline_mode = #tpu.pipeline_mode<synchronous>, transform_indices = @transform_8, window_bounds = array<i64: 128, 128>}, {pipeline_mode = #tpu.pipeline_mode<synchronous>, transform_indices = @transform_9, window_bounds = array<i64: 128, 128>}, {pipeline_mode = #tpu.pipeline_mode<synchronous>, transform_indices = @transform_10, window_bounds = array<i64: 128, 256>}, {transform_indices = @transform_11, window_bounds = array<i64: 8, 128>}, {transform_indices = @transform_12, window_bounds = array<i64: 8, 128>}]} {
    %c0 = arith.constant 0 : index
    %c0_0 = arith.constant 0 : index
    %0 = vector.load %arg1[%c0, %c0_0] : memref<8x128xf32, #tpu.memory_space<vmem>>, vector<8x128xf32>
    %c0_1 = arith.constant 0 : index
    %c0_2 = arith.constant 0 : index
    %1 = vector.load %arg3[%c0_1, %c0_2] : memref<128x128xf32, #tpu.memory_space<vmem>>, vector<128x128xf32>
    %cst = arith.constant dense<0.000000e+00> : vector<8x128xf32>
    %2 = tpu.matmul %0, %1, %cst {dimension_numbers = #tpu.dot_dimension_numbers<[1], [0], [0], [1], [0, 0, 1, 1], [], []>} : vector<8x128xf32>, vector<128x128xf32>, vector<8x128xf32> -> vector<8x128xf32>
    %c0_3 = arith.constant 0 : index
    %c0_4 = arith.constant 0 : index
    %3 = vector.load %arg2[%c0_3, %c0_4] : memref<9x256xf32, #tpu.memory_space<vmem>>, vector<1x256xf32>
    %4 = vector.shape_cast %3 : vector<1x256xf32> to vector<256xf32>
    %5 = vector.extract_strided_slice %4 {offsets = [0], sizes = [128], strides = [1]} : vector<256xf32> to vector<128xf32>
    %6 = vector.shape_cast %5 : vector<128xf32> to vector<1x128xf32>
    %7 = vector.broadcast %6 : vector<1x128xf32> to vector<8x128xf32>
    %8 = arith.addf %2, %7 : vector<8x128xf32>
    %c0_5 = arith.constant 0 : index
    %c0_6 = arith.constant 0 : index
    %9 = vector.load %arg4[%c0_5, %c0_6] : memref<128x128xf32, #tpu.memory_space<vmem>>, vector<128x128xf32>
    %cst_7 = arith.constant 0.000000e+00 : f32
    %10 = vector.broadcast %cst_7 : f32 to vector<8x128xf32>
    %11 = arith.maximumf %8, %10 : vector<8x128xf32>
    %cst_8 = arith.constant dense<0.000000e+00> : vector<8x128xf32>
    %12 = tpu.matmul %11, %9, %cst_8 {dimension_numbers = #tpu.dot_dimension_numbers<[1], [0], [0], [1], [0, 0, 1, 1], [], []>} : vector<8x128xf32>, vector<128x128xf32>, vector<8x128xf32> -> vector<8x128xf32>
    %c1 = arith.constant 1 : index
    %c0_9 = arith.constant 0 : index
    %13 = vector.load %arg2[%c1, %c0_9] : memref<9x256xf32, #tpu.memory_space<vmem>>, vector<1x256xf32>
    %14 = vector.shape_cast %13 : vector<1x256xf32> to vector<256xf32>
    %15 = vector.extract_strided_slice %14 {offsets = [0], sizes = [128], strides = [1]} : vector<256xf32> to vector<128xf32>
    %16 = vector.shape_cast %15 : vector<128xf32> to vector<1x128xf32>
    %17 = vector.broadcast %16 : vector<1x128xf32> to vector<8x128xf32>
    %18 = arith.addf %12, %17 : vector<8x128xf32>
    %cst_10 = arith.constant 0.000000e+00 : f32
    %19 = vector.broadcast %cst_10 : f32 to vector<8x128xf32>
    %20 = arith.maximumf %18, %19 : vector<8x128xf32>
    %c0_11 = arith.constant 0 : index
    %c0_12 = arith.constant 0 : index
    %21 = vector.load %arg5[%c0_11, %c0_12] : memref<128x256xf32, #tpu.memory_space<vmem>>, vector<128x256xf32>
    %cst_13 = arith.constant dense<0.000000e+00> : vector<8x256xf32>
    %22 = tpu.matmul %20, %21, %cst_13 {dimension_numbers = #tpu.dot_dimension_numbers<[1], [0], [0], [1], [0, 0, 1, 1], [], []>} : vector<8x128xf32>, vector<128x256xf32>, vector<8x256xf32> -> vector<8x256xf32>
    %c2 = arith.constant 2 : index
    %c0_14 = arith.constant 0 : index
    %23 = vector.load %arg2[%c2, %c0_14] : memref<9x256xf32, #tpu.memory_space<vmem>>, vector<1x256xf32>
    %24 = vector.shape_cast %23 : vector<1x256xf32> to vector<256xf32>
    %25 = vector.shape_cast %24 : vector<256xf32> to vector<1x256xf32>
    %26 = vector.broadcast %25 : vector<1x256xf32> to vector<8x256xf32>
    %27 = arith.addf %22, %26 : vector<8x256xf32>
    %28 = vector.extract_strided_slice %27 {offsets = [0, 0], sizes = [8, 128], strides = [1, 1]} : vector<8x256xf32> to vector<8x128xf32>
    %29 = vector.extract_strided_slice %27 {offsets = [0, 128], sizes = [8, 128], strides = [1, 1]} : vector<8x256xf32> to vector<8x128xf32>
    %30 = arith.subf %0, %28 : vector<8x128xf32>
    %cst_15 = arith.constant 0.000000e+00 : f32
    %31 = vector.broadcast %cst_15 : f32 to vector<8x128xf32>
    %32 = arith.subf %31, %29 : vector<8x128xf32>
    %33 = math.exp %32 : vector<8x128xf32>
    %34 = arith.mulf %30, %33 : vector<8x128xf32>
    %cst_16 = arith.constant 0.000000e+00 : f32
    %35 = vector.broadcast %cst_16 : f32 to vector<8x128xf32>
    %36 = arith.subf %35, %29 : vector<8x128xf32>
    %c0_17 = arith.constant 0 : index
    %c0_18 = arith.constant 0 : index
    %37 = vector.load %arg6[%c0_17, %c0_18] : memref<128x128xf32, #tpu.memory_space<vmem>>, vector<128x128xf32>
    %cst_19 = arith.constant dense<0.000000e+00> : vector<8x128xf32>
    %38 = tpu.matmul %34, %37, %cst_19 {dimension_numbers = #tpu.dot_dimension_numbers<[1], [0], [0], [1], [0, 0, 1, 1], [], []>} : vector<8x128xf32>, vector<128x128xf32>, vector<8x128xf32> -> vector<8x128xf32>
    %c3 = arith.constant 3 : index
    %c0_20 = arith.constant 0 : index
    %39 = vector.load %arg2[%c3, %c0_20] : memref<9x256xf32, #tpu.memory_space<vmem>>, vector<1x256xf32>
    %40 = vector.shape_cast %39 : vector<1x256xf32> to vector<256xf32>
    %41 = vector.extract_strided_slice %40 {offsets = [0], sizes = [128], strides = [1]} : vector<256xf32> to vector<128xf32>
    %42 = vector.shape_cast %41 : vector<128xf32> to vector<1x128xf32>
    %43 = vector.broadcast %42 : vector<1x128xf32> to vector<8x128xf32>
    %44 = arith.addf %38, %43 : vector<8x128xf32>
    %c0_21 = arith.constant 0 : index
    %c0_22 = arith.constant 0 : index
    %45 = vector.load %arg7[%c0_21, %c0_22] : memref<128x128xf32, #tpu.memory_space<vmem>>, vector<128x128xf32>
    %cst_23 = arith.constant 0.000000e+00 : f32
    %46 = vector.broadcast %cst_23 : f32 to vector<8x128xf32>
    %47 = arith.maximumf %44, %46 : vector<8x128xf32>
    %cst_24 = arith.constant dense<0.000000e+00> : vector<8x128xf32>
    %48 = tpu.matmul %47, %45, %cst_24 {dimension_numbers = #tpu.dot_dimension_numbers<[1], [0], [0], [1], [0, 0, 1, 1], [], []>} : vector<8x128xf32>, vector<128x128xf32>, vector<8x128xf32> -> vector<8x128xf32>
    %c4 = arith.constant 4 : index
    %c0_25 = arith.constant 0 : index
    %49 = vector.load %arg2[%c4, %c0_25] : memref<9x256xf32, #tpu.memory_space<vmem>>, vector<1x256xf32>
    %50 = vector.shape_cast %49 : vector<1x256xf32> to vector<256xf32>
    %51 = vector.extract_strided_slice %50 {offsets = [0], sizes = [128], strides = [1]} : vector<256xf32> to vector<128xf32>
    %52 = vector.shape_cast %51 : vector<128xf32> to vector<1x128xf32>
    %53 = vector.broadcast %52 : vector<1x128xf32> to vector<8x128xf32>
    %54 = arith.addf %48, %53 : vector<8x128xf32>
    %cst_26 = arith.constant 0.000000e+00 : f32
    %55 = vector.broadcast %cst_26 : f32 to vector<8x128xf32>
    %56 = arith.maximumf %54, %55 : vector<8x128xf32>
    %c0_27 = arith.constant 0 : index
    %c0_28 = arith.constant 0 : index
    %57 = vector.load %arg8[%c0_27, %c0_28] : memref<128x256xf32, #tpu.memory_space<vmem>>, vector<128x256xf32>
    %cst_29 = arith.constant dense<0.000000e+00> : vector<8x256xf32>
    %58 = tpu.matmul %56, %57, %cst_29 {dimension_numbers = #tpu.dot_dimension_numbers<[1], [0], [0], [1], [0, 0, 1, 1], [], []>} : vector<8x128xf32>, vector<128x256xf32>, vector<8x256xf32> -> vector<8x256xf32>
    %c5 = arith.constant 5 : index
    %c0_30 = arith.constant 0 : index
    %59 = vector.load %arg2[%c5, %c0_30] : memref<9x256xf32, #tpu.memory_space<vmem>>, vector<1x256xf32>
    %60 = vector.shape_cast %59 : vector<1x256xf32> to vector<256xf32>
    %61 = vector.shape_cast %60 : vector<256xf32> to vector<1x256xf32>
    %62 = vector.broadcast %61 : vector<1x256xf32> to vector<8x256xf32>
    %63 = arith.addf %58, %62 : vector<8x256xf32>
    %64 = vector.extract_strided_slice %63 {offsets = [0, 0], sizes = [8, 128], strides = [1, 1]} : vector<8x256xf32> to vector<8x128xf32>
    %65 = vector.extract_strided_slice %63 {offsets = [0, 128], sizes = [8, 128], strides = [1, 1]} : vector<8x256xf32> to vector<8x128xf32>
    %66 = arith.subf %34, %64 : vector<8x128xf32>
    %cst_31 = arith.constant 0.000000e+00 : f32
    %67 = vector.broadcast %cst_31 : f32 to vector<8x128xf32>
    %68 = arith.subf %67, %65 : vector<8x128xf32>
    %69 = math.exp %68 : vector<8x128xf32>
    %70 = arith.mulf %66, %69 : vector<8x128xf32>
    %71 = arith.subf %36, %65 : vector<8x128xf32>
    %c0_32 = arith.constant 0 : index
    %c0_33 = arith.constant 0 : index
    %72 = vector.load %arg9[%c0_32, %c0_33] : memref<128x128xf32, #tpu.memory_space<vmem>>, vector<128x128xf32>
    %cst_34 = arith.constant dense<0.000000e+00> : vector<8x128xf32>
    %73 = tpu.matmul %70, %72, %cst_34 {dimension_numbers = #tpu.dot_dimension_numbers<[1], [0], [0], [1], [0, 0, 1, 1], [], []>} : vector<8x128xf32>, vector<128x128xf32>, vector<8x128xf32> -> vector<8x128xf32>
    %c6 = arith.constant 6 : index
    %c0_35 = arith.constant 0 : index
    %74 = vector.load %arg2[%c6, %c0_35] : memref<9x256xf32, #tpu.memory_space<vmem>>, vector<1x256xf32>
    %75 = vector.shape_cast %74 : vector<1x256xf32> to vector<256xf32>
    %76 = vector.extract_strided_slice %75 {offsets = [0], sizes = [128], strides = [1]} : vector<256xf32> to vector<128xf32>
    %77 = vector.shape_cast %76 : vector<128xf32> to vector<1x128xf32>
    %78 = vector.broadcast %77 : vector<1x128xf32> to vector<8x128xf32>
    %79 = arith.addf %73, %78 : vector<8x128xf32>
    %c0_36 = arith.constant 0 : index
    %c0_37 = arith.constant 0 : index
    %80 = vector.load %arg10[%c0_36, %c0_37] : memref<128x128xf32, #tpu.memory_space<vmem>>, vector<128x128xf32>
    %cst_38 = arith.constant 0.000000e+00 : f32
    %81 = vector.broadcast %cst_38 : f32 to vector<8x128xf32>
    %82 = arith.maximumf %79, %81 : vector<8x128xf32>
    %cst_39 = arith.constant dense<0.000000e+00> : vector<8x128xf32>
    %83 = tpu.matmul %82, %80, %cst_39 {dimension_numbers = #tpu.dot_dimension_numbers<[1], [0], [0], [1], [0, 0, 1, 1], [], []>} : vector<8x128xf32>, vector<128x128xf32>, vector<8x128xf32> -> vector<8x128xf32>
    %c7 = arith.constant 7 : index
    %c0_40 = arith.constant 0 : index
    %84 = vector.load %arg2[%c7, %c0_40] : memref<9x256xf32, #tpu.memory_space<vmem>>, vector<1x256xf32>
    %85 = vector.shape_cast %84 : vector<1x256xf32> to vector<256xf32>
    %86 = vector.extract_strided_slice %85 {offsets = [0], sizes = [128], strides = [1]} : vector<256xf32> to vector<128xf32>
    %87 = vector.shape_cast %86 : vector<128xf32> to vector<1x128xf32>
    %88 = vector.broadcast %87 : vector<1x128xf32> to vector<8x128xf32>
    %89 = arith.addf %83, %88 : vector<8x128xf32>
    %cst_41 = arith.constant 0.000000e+00 : f32
    %90 = vector.broadcast %cst_41 : f32 to vector<8x128xf32>
    %91 = arith.maximumf %89, %90 : vector<8x128xf32>
    %c0_42 = arith.constant 0 : index
    %c0_43 = arith.constant 0 : index
    %92 = vector.load %arg11[%c0_42, %c0_43] : memref<128x256xf32, #tpu.memory_space<vmem>>, vector<128x256xf32>
    %cst_44 = arith.constant dense<0.000000e+00> : vector<8x256xf32>
    %93 = tpu.matmul %91, %92, %cst_44 {dimension_numbers = #tpu.dot_dimension_numbers<[1], [0], [0], [1], [0, 0, 1, 1], [], []>} : vector<8x128xf32>, vector<128x256xf32>, vector<8x256xf32> -> vector<8x256xf32>
    %c8 = arith.constant 8 : index
    %c0_45 = arith.constant 0 : index
    %94 = vector.load %arg2[%c8, %c0_45] : memref<9x256xf32, #tpu.memory_space<vmem>>, vector<1x256xf32>
    %95 = vector.shape_cast %94 : vector<1x256xf32> to vector<256xf32>
    %96 = vector.shape_cast %95 : vector<256xf32> to vector<1x256xf32>
    %97 = vector.broadcast %96 : vector<1x256xf32> to vector<8x256xf32>
    %98 = arith.addf %93, %97 : vector<8x256xf32>
    %99 = vector.extract_strided_slice %98 {offsets = [0, 0], sizes = [8, 128], strides = [1, 1]} : vector<8x256xf32> to vector<8x128xf32>
    %100 = vector.extract_strided_slice %98 {offsets = [0, 128], sizes = [8, 128], strides = [1, 1]} : vector<8x256xf32> to vector<8x128xf32>
    %101 = arith.subf %70, %99 : vector<8x128xf32>
    %cst_46 = arith.constant 0.000000e+00 : f32
    %102 = vector.broadcast %cst_46 : f32 to vector<8x128xf32>
    %103 = arith.subf %102, %100 : vector<8x128xf32>
    %104 = math.exp %103 : vector<8x128xf32>
    %105 = arith.mulf %101, %104 : vector<8x128xf32>
    %106 = arith.subf %71, %100 : vector<8x128xf32>
    %c0_47 = arith.constant 0 : index
    %c0_48 = arith.constant 0 : index
    %107 = vector.load %arg12[%c0_47, %c0_48] : memref<8x128xf32, #tpu.memory_space<vmem>>, vector<8x128xf32>
    tpu.vector_store %arg12[%c0_47, %c0_48], %105 {strides = array<i32>} : memref<8x128xf32, #tpu.memory_space<vmem>>, vector<8x128xf32>,
    %c0_49 = arith.constant 0 : index
    %c0_50 = arith.constant 0 : index
    %108 = vector.load %arg13[%c0_49, %c0_50] : memref<8x128xf32, #tpu.memory_space<vmem>>, vector<8x128xf32>
    tpu.vector_store %arg13[%c0_49, %c0_50], %106 {strides = array<i32>} : memref<8x128xf32, #tpu.memory_space<vmem>>, vector<8x128xf32>,
    return
  }
  func.func @transform_0(%arg0: i32) -> (i32, i32) {
    %c0_i32 = arith.constant 0 : i32
    %c0_i32_0 = arith.constant 0 : i32
    return %arg0, %c0_i32 : i32, i32
  }
  func.func @transform_1(%arg0: i32) -> (i32, i32) {
    %c0_i32 = arith.constant 0 : i32
    %c0_i32_0 = arith.constant 0 : i32
    %c0_i32_1 = arith.constant 0 : i32
    return %c0_i32, %c0_i32_0 : i32, i32
  }
  func.func @transform_2(%arg0: i32) -> (i32, i32) {
    %c0_i32 = arith.constant 0 : i32
    %c0_i32_0 = arith.constant 0 : i32
    %c0_i32_1 = arith.constant 0 : i32
    return %c0_i32, %c0_i32_0 : i32, i32
  }
  func.func @transform_3(%arg0: i32) -> (i32, i32) {
    %c0_i32 = arith.constant 0 : i32
    %c0_i32_0 = arith.constant 0 : i32
    %c0_i32_1 = arith.constant 0 : i32
    return %c0_i32, %c0_i32_0 : i32, i32
  }
  func.func @transform_4(%arg0: i32) -> (i32, i32) {
    %c0_i32 = arith.constant 0 : i32
    %c0_i32_0 = arith.constant 0 : i32
    %c0_i32_1 = arith.constant 0 : i32
    return %c0_i32, %c0_i32_0 : i32, i32
  }
  func.func @transform_5(%arg0: i32) -> (i32, i32) {
    %c0_i32 = arith.constant 0 : i32
    %c0_i32_0 = arith.constant 0 : i32
    %c0_i32_1 = arith.constant 0 : i32
    return %c0_i32, %c0_i32_0 : i32, i32
  }
  func.func @transform_6(%arg0: i32) -> (i32, i32) {
    %c0_i32 = arith.constant 0 : i32
    %c0_i32_0 = arith.constant 0 : i32
    %c0_i32_1 = arith.constant 0 : i32
    return %c0_i32, %c0_i32_0 : i32, i32
  }
  func.func @transform_7(%arg0: i32) -> (i32, i32) {
    %c0_i32 = arith.constant 0 : i32
    %c0_i32_0 = arith.constant 0 : i32
    %c0_i32_1 = arith.constant 0 : i32
    return %c0_i32, %c0_i32_0 : i32, i32
  }
  func.func @transform_8(%arg0: i32) -> (i32, i32) {
    %c0_i32 = arith.constant 0 : i32
    %c0_i32_0 = arith.constant 0 : i32
    %c0_i32_1 = arith.constant 0 : i32
    return %c0_i32, %c0_i32_0 : i32, i32
  }
  func.func @transform_9(%arg0: i32) -> (i32, i32) {
    %c0_i32 = arith.constant 0 : i32
    %c0_i32_0 = arith.constant 0 : i32
    %c0_i32_1 = arith.constant 0 : i32
    return %c0_i32, %c0_i32_0 : i32, i32
  }
  func.func @transform_10(%arg0: i32) -> (i32, i32) {
    %c0_i32 = arith.constant 0 : i32
    %c0_i32_0 = arith.constant 0 : i32
    %c0_i32_1 = arith.constant 0 : i32
    return %c0_i32, %c0_i32_0 : i32, i32
  }
  func.func @transform_11(%arg0: i32) -> (i32, i32) {
    %c0_i32 = arith.constant 0 : i32
    %c0_i32_0 = arith.constant 0 : i32
    return %arg0, %c0_i32 : i32, i32
  }
  func.func @transform_12(%arg0: i32) -> (i32, i32) {
    %c0_i32 = arith.constant 0 : i32
    %c0_i32_0 = arith.constant 0 : i32
    return %arg0, %c0_i32 : i32, i32
  }
}

module attributes {stable_mosaic.version = 11 : i64} {
  func.func @kernel(%arg0: i32, %arg1: memref<8x128xf32, #tpu.memory_space<vmem>>, %arg2: memref<9x256xf32, #tpu.memory_space<vmem>>, %arg3: memref<128x128xf32, #tpu.memory_space<vmem>>, %arg4: memref<128x128xf32, #tpu.memory_space<vmem>>, %arg5: memref<128x256xf32, #tpu.memory_space<vmem>>, %arg6: memref<128x128xf32, #tpu.memory_space<vmem>>, %arg7: memref<128x128xf32, #tpu.memory_space<vmem>>, %arg8: memref<128x256xf32, #tpu.memory_space<vmem>>, %arg9: memref<128x128xf32, #tpu.memory_space<vmem>>, %arg10: memref<128x128xf32, #tpu.memory_space<vmem>>, %arg11: memref<128x256xf32, #tpu.memory_space<vmem>>, %arg12: memref<8x128xf32, #tpu.memory_space<vmem>>, %arg13: memref<8x128xf32, #tpu.memory_space<vmem>>) attributes {dimension_semantics = [#tpu.dimension_semantics<parallel>], iteration_bounds = array<i64: 1>, scalar_prefetch = 0 : i64, scratch_operands = 0 : i64, tpu.core_type = #tpu.core_type<tc>, window_params = [{transform_indices = @transform_0, window_bounds = array<i64: 8, 128>}, {pipeline_mode = #tpu.pipeline_mode<synchronous>, transform_indices = @transform_1, window_bounds = array<i64: 9, 256>}, {pipeline_mode = #tpu.pipeline_mode<synchronous>, transform_indices = @transform_2, window_bounds = array<i64: 128, 128>}, {pipeline_mode = #tpu.pipeline_mode<synchronous>, transform_indices = @transform_3, window_bounds = array<i64: 128, 128>}, {pipeline_mode = #tpu.pipeline_mode<synchronous>, transform_indices = @transform_4, window_bounds = array<i64: 128, 256>}, {pipeline_mode = #tpu.pipeline_mode<synchronous>, transform_indices = @transform_5, window_bounds = array<i64: 128, 128>}, {pipeline_mode = #tpu.pipeline_mode<synchronous>, transform_indices = @transform_6, window_bounds = array<i64: 128, 128>}, {pipeline_mode = #tpu.pipeline_mode<synchronous>, transform_indices = @transform_7, window_bounds = array<i64: 128, 256>}, {pipeline_mode = #tpu.pipeline_mode<synchronous>, transform_indices = @transform_8, window_bounds = array<i64: 128, 128>}, {pipeline_mode = #tpu.pipeline_mode<synchronous>, transform_indices = @transform_9, window_bounds = array<i64: 128, 128>}, {pipeline_mode = #tpu.pipeline_mode<synchronous>, transform_indices = @transform_10, window_bounds = array<i64: 128, 256>}, {transform_indices = @transform_11, window_bounds = array<i64: 8, 128>}, {transform_indices = @transform_12, window_bounds = array<i64: 8, 128>}]} {
    %c0 = arith.constant 0 : index
    %c0_0 = arith.constant 0 : index
    %0 = vector.load %arg1[%c0, %c0_0] : memref<8x128xf32, #tpu.memory_space<vmem>>, vector<8x128xf32>
    %c0_1 = arith.constant 0 : index
    %c0_2 = arith.constant 0 : index
    %1 = vector.load %arg3[%c0_1, %c0_2] : memref<128x128xf32, #tpu.memory_space<vmem>>, vector<128x128xf32>
    %cst = arith.constant dense<0.000000e+00> : vector<8x128xf32>
    %2 = tpu.matmul %0, %1, %cst {dimension_numbers = #tpu.dot_dimension_numbers<[1], [0], [0], [1], [0, 0, 1, 1], [], []>} : vector<8x128xf32>, vector<128x128xf32>, vector<8x128xf32> -> vector<8x128xf32>
    %c0_3 = arith.constant 0 : index
    %c0_4 = arith.constant 0 : index
    %3 = vector.load %arg2[%c0_3, %c0_4] : memref<9x256xf32, #tpu.memory_space<vmem>>, vector<1x256xf32>
    %4 = vector.shape_cast %3 : vector<1x256xf32> to vector<256xf32>
    %5 = vector.extract_strided_slice %4 {offsets = [0], sizes = [128], strides = [1]} : vector<256xf32> to vector<128xf32>
    %6 = vector.shape_cast %5 : vector<128xf32> to vector<1x128xf32>
    %7 = vector.broadcast %6 : vector<1x128xf32> to vector<8x128xf32>
    %8 = arith.addf %2, %7 : vector<8x128xf32>
    %c0_5 = arith.constant 0 : index
    %c0_6 = arith.constant 0 : index
    %9 = vector.load %arg4[%c0_5, %c0_6] : memref<128x128xf32, #tpu.memory_space<vmem>>, vector<128x128xf32>
    %cst_7 = arith.constant 0.000000e+00 : f32
    %10 = vector.broadcast %cst_7 : f32 to vector<8x128xf32>
    %11 = arith.maximumf %8, %10 : vector<8x128xf32>
    %cst_8 = arith.constant dense<0.000000e+00> : vector<8x128xf32>
    %12 = tpu.matmul %11, %9, %cst_8 {dimension_numbers = #tpu.dot_dimension_numbers<[1], [0], [0], [1], [0, 0, 1, 1], [], []>} : vector<8x128xf32>, vector<128x128xf32>, vector<8x128xf32> -> vector<8x128xf32>
    %c1 = arith.constant 1 : index
    %c0_9 = arith.constant 0 : index
    %13 = vector.load %arg2[%c1, %c0_9] : memref<9x256xf32, #tpu.memory_space<vmem>>, vector<1x256xf32>
    %14 = vector.shape_cast %13 : vector<1x256xf32> to vector<256xf32>
    %15 = vector.extract_strided_slice %14 {offsets = [0], sizes = [128], strides = [1]} : vector<256xf32> to vector<128xf32>
    %16 = vector.shape_cast %15 : vector<128xf32> to vector<1x128xf32>
    %17 = vector.broadcast %16 : vector<1x128xf32> to vector<8x128xf32>
    %18 = arith.addf %12, %17 : vector<8x128xf32>
    %cst_10 = arith.constant 0.000000e+00 : f32
    %19 = vector.broadcast %cst_10 : f32 to vector<8x128xf32>
    %20 = arith.maximumf %18, %19 : vector<8x128xf32>
    %c0_11 = arith.constant 0 : index
    %c0_12 = arith.constant 0 : index
    %21 = vector.load %arg5[%c0_11, %c0_12] : memref<128x256xf32, #tpu.memory_space<vmem>>, vector<128x256xf32>
    %cst_13 = arith.constant dense<0.000000e+00> : vector<8x256xf32>
    %22 = tpu.matmul %20, %21, %cst_13 {dimension_numbers = #tpu.dot_dimension_numbers<[1], [0], [0], [1], [0, 0, 1, 1], [], []>} : vector<8x128xf32>, vector<128x256xf32>, vector<8x256xf32> -> vector<8x256xf32>
    %c2 = arith.constant 2 : index
    %c0_14 = arith.constant 0 : index
    %23 = vector.load %arg2[%c2, %c0_14] : memref<9x256xf32, #tpu.memory_space<vmem>>, vector<1x256xf32>
    %24 = vector.shape_cast %23 : vector<1x256xf32> to vector<256xf32>
    %25 = vector.shape_cast %24 : vector<256xf32> to vector<1x256xf32>
    %26 = vector.broadcast %25 : vector<1x256xf32> to vector<8x256xf32>
    %27 = arith.addf %22, %26 : vector<8x256xf32>
    %28 = vector.extract_strided_slice %27 {offsets = [0, 0], sizes = [8, 128], strides = [1, 1]} : vector<8x256xf32> to vector<8x128xf32>
    %29 = vector.extract_strided_slice %27 {offsets = [0, 128], sizes = [8, 128], strides = [1, 1]} : vector<8x256xf32> to vector<8x128xf32>
    %30 = arith.subf %0, %28 : vector<8x128xf32>
    %cst_15 = arith.constant 0.000000e+00 : f32
    %31 = vector.broadcast %cst_15 : f32 to vector<8x128xf32>
    %32 = arith.subf %31, %29 : vector<8x128xf32>
    %33 = math.exp %32 : vector<8x128xf32>
    %34 = arith.mulf %30, %33 : vector<8x128xf32>
    %cst_16 = arith.constant 0.000000e+00 : f32
    %35 = vector.broadcast %cst_16 : f32 to vector<8x128xf32>
    %36 = arith.subf %35, %29 : vector<8x128xf32>
    %c0_17 = arith.constant 0 : index
    %c0_18 = arith.constant 0 : index
    %37 = vector.load %arg6[%c0_17, %c0_18] : memref<128x128xf32, #tpu.memory_space<vmem>>, vector<128x128xf32>
    %cst_19 = arith.constant dense<0.000000e+00> : vector<8x128xf32>
    %38 = tpu.matmul %34, %37, %cst_19 {dimension_numbers = #tpu.dot_dimension_numbers<[1], [0], [0], [1], [0, 0, 1, 1], [], []>} : vector<8x128xf32>, vector<128x128xf32>, vector<8x128xf32> -> vector<8x128xf32>
    %c3 = arith.constant 3 : index
    %c0_20 = arith.constant 0 : index
    %39 = vector.load %arg2[%c3, %c0_20] : memref<9x256xf32, #tpu.memory_space<vmem>>, vector<1x256xf32>
    %40 = vector.shape_cast %39 : vector<1x256xf32> to vector<256xf32>
    %41 = vector.extract_strided_slice %40 {offsets = [0], sizes = [128], strides = [1]} : vector<256xf32> to vector<128xf32>
    %42 = vector.shape_cast %41 : vector<128xf32> to vector<1x128xf32>
    %43 = vector.broadcast %42 : vector<1x128xf32> to vector<8x128xf32>
    %44 = arith.addf %38, %43 : vector<8x128xf32>
    %c0_21 = arith.constant 0 : index
    %c0_22 = arith.constant 0 : index
    %45 = vector.load %arg7[%c0_21, %c0_22] : memref<128x128xf32, #tpu.memory_space<vmem>>, vector<128x128xf32>
    %cst_23 = arith.constant 0.000000e+00 : f32
    %46 = vector.broadcast %cst_23 : f32 to vector<8x128xf32>
    %47 = arith.maximumf %44, %46 : vector<8x128xf32>
    %cst_24 = arith.constant dense<0.000000e+00> : vector<8x128xf32>
    %48 = tpu.matmul %47, %45, %cst_24 {dimension_numbers = #tpu.dot_dimension_numbers<[1], [0], [0], [1], [0, 0, 1, 1], [], []>} : vector<8x128xf32>, vector<128x128xf32>, vector<8x128xf32> -> vector<8x128xf32>
    %c4 = arith.constant 4 : index
    %c0_25 = arith.constant 0 : index
    %49 = vector.load %arg2[%c4, %c0_25] : memref<9x256xf32, #tpu.memory_space<vmem>>, vector<1x256xf32>
    %50 = vector.shape_cast %49 : vector<1x256xf32> to vector<256xf32>
    %51 = vector.extract_strided_slice %50 {offsets = [0], sizes = [128], strides = [1]} : vector<256xf32> to vector<128xf32>
    %52 = vector.shape_cast %51 : vector<128xf32> to vector<1x128xf32>
    %53 = vector.broadcast %52 : vector<1x128xf32> to vector<8x128xf32>
    %54 = arith.addf %48, %53 : vector<8x128xf32>
    %cst_26 = arith.constant 0.000000e+00 : f32
    %55 = vector.broadcast %cst_26 : f32 to vector<8x128xf32>
    %56 = arith.maximumf %54, %55 : vector<8x128xf32>
    %c0_27 = arith.constant 0 : index
    %c0_28 = arith.constant 0 : index
    %57 = vector.load %arg8[%c0_27, %c0_28] : memref<128x256xf32, #tpu.memory_space<vmem>>, vector<128x256xf32>
    %cst_29 = arith.constant dense<0.000000e+00> : vector<8x256xf32>
    %58 = tpu.matmul %56, %57, %cst_29 {dimension_numbers = #tpu.dot_dimension_numbers<[1], [0], [0], [1], [0, 0, 1, 1], [], []>} : vector<8x128xf32>, vector<128x256xf32>, vector<8x256xf32> -> vector<8x256xf32>
    %c5 = arith.constant 5 : index
    %c0_30 = arith.constant 0 : index
    %59 = vector.load %arg2[%c5, %c0_30] : memref<9x256xf32, #tpu.memory_space<vmem>>, vector<1x256xf32>
    %60 = vector.shape_cast %59 : vector<1x256xf32> to vector<256xf32>
    %61 = vector.shape_cast %60 : vector<256xf32> to vector<1x256xf32>
    %62 = vector.broadcast %61 : vector<1x256xf32> to vector<8x256xf32>
    %63 = arith.addf %58, %62 : vector<8x256xf32>
    %64 = vector.extract_strided_slice %63 {offsets = [0, 0], sizes = [8, 128], strides = [1, 1]} : vector<8x256xf32> to vector<8x128xf32>
    %65 = vector.extract_strided_slice %63 {offsets = [0, 128], sizes = [8, 128], strides = [1, 1]} : vector<8x256xf32> to vector<8x128xf32>
    %66 = arith.subf %34, %64 : vector<8x128xf32>
    %cst_31 = arith.constant 0.000000e+00 : f32
    %67 = vector.broadcast %cst_31 : f32 to vector<8x128xf32>
    %68 = arith.subf %67, %65 : vector<8x128xf32>
    %69 = math.exp %68 : vector<8x128xf32>
    %70 = arith.mulf %66, %69 : vector<8x128xf32>
    %71 = arith.subf %36, %65 : vector<8x128xf32>
    %c0_32 = arith.constant 0 : index
    %c0_33 = arith.constant 0 : index
    %72 = vector.load %arg9[%c0_32, %c0_33] : memref<128x128xf32, #tpu.memory_space<vmem>>, vector<128x128xf32>
    %cst_34 = arith.constant dense<0.000000e+00> : vector<8x128xf32>
    %73 = tpu.matmul %70, %72, %cst_34 {dimension_numbers = #tpu.dot_dimension_numbers<[1], [0], [0], [1], [0, 0, 1, 1], [], []>} : vector<8x128xf32>, vector<128x128xf32>, vector<8x128xf32> -> vector<8x128xf32>
    %c6 = arith.constant 6 : index
    %c0_35 = arith.constant 0 : index
    %74 = vector.load %arg2[%c6, %c0_35] : memref<9x256xf32, #tpu.memory_space<vmem>>, vector<1x256xf32>
    %75 = vector.shape_cast %74 : vector<1x256xf32> to vector<256xf32>
    %76 = vector.extract_strided_slice %75 {offsets = [0], sizes = [128], strides = [1]} : vector<256xf32> to vector<128xf32>
    %77 = vector.shape_cast %76 : vector<128xf32> to vector<1x128xf32>
    %78 = vector.broadcast %77 : vector<1x128xf32> to vector<8x128xf32>
    %79 = arith.addf %73, %78 : vector<8x128xf32>
    %c0_36 = arith.constant 0 : index
    %c0_37 = arith.constant 0 : index
    %80 = vector.load %arg10[%c0_36, %c0_37] : memref<128x128xf32, #tpu.memory_space<vmem>>, vector<128x128xf32>
    %cst_38 = arith.constant 0.000000e+00 : f32
    %81 = vector.broadcast %cst_38 : f32 to vector<8x128xf32>
    %82 = arith.maximumf %79, %81 : vector<8x128xf32>
    %cst_39 = arith.constant dense<0.000000e+00> : vector<8x128xf32>
    %83 = tpu.matmul %82, %80, %cst_39 {dimension_numbers = #tpu.dot_dimension_numbers<[1], [0], [0], [1], [0, 0, 1, 1], [], []>} : vector<8x128xf32>, vector<128x128xf32>, vector<8x128xf32> -> vector<8x128xf32>
    %c7 = arith.constant 7 : index
    %c0_40 = arith.constant 0 : index
    %84 = vector.load %arg2[%c7, %c0_40] : memref<9x256xf32, #tpu.memory_space<vmem>>, vector<1x256xf32>
    %85 = vector.shape_cast %84 : vector<1x256xf32> to vector<256xf32>
    %86 = vector.extract_strided_slice %85 {offsets = [0], sizes = [128], strides = [1]} : vector<256xf32> to vector<128xf32>
    %87 = vector.shape_cast %86 : vector<128xf32> to vector<1x128xf32>
    %88 = vector.broadcast %87 : vector<1x128xf32> to vector<8x128xf32>
    %89 = arith.addf %83, %88 : vector<8x128xf32>
    %cst_41 = arith.constant 0.000000e+00 : f32
    %90 = vector.broadcast %cst_41 : f32 to vector<8x128xf32>
    %91 = arith.maximumf %89, %90 : vector<8x128xf32>
    %c0_42 = arith.constant 0 : index
    %c0_43 = arith.constant 0 : index
    %92 = vector.load %arg11[%c0_42, %c0_43] : memref<128x256xf32, #tpu.memory_space<vmem>>, vector<128x256xf32>
    %cst_44 = arith.constant dense<0.000000e+00> : vector<8x256xf32>
    %93 = tpu.matmul %91, %92, %cst_44 {dimension_numbers = #tpu.dot_dimension_numbers<[1], [0], [0], [1], [0, 0, 1, 1], [], []>} : vector<8x128xf32>, vector<128x256xf32>, vector<8x256xf32> -> vector<8x256xf32>
    %c8 = arith.constant 8 : index
    %c0_45 = arith.constant 0 : index
    %94 = vector.load %arg2[%c8, %c0_45] : memref<9x256xf32, #tpu.memory_space<vmem>>, vector<1x256xf32>
    %95 = vector.shape_cast %94 : vector<1x256xf32> to vector<256xf32>
    %96 = vector.shape_cast %95 : vector<256xf32> to vector<1x256xf32>
    %97 = vector.broadcast %96 : vector<1x256xf32> to vector<8x256xf32>
    %98 = arith.addf %93, %97 : vector<8x256xf32>
    %99 = vector.extract_strided_slice %98 {offsets = [0, 0], sizes = [8, 128], strides = [1, 1]} : vector<8x256xf32> to vector<8x128xf32>
    %100 = vector.extract_strided_slice %98 {offsets = [0, 128], sizes = [8, 128], strides = [1, 1]} : vector<8x256xf32> to vector<8x128xf32>
    %101 = arith.subf %70, %99 : vector<8x128xf32>
    %cst_46 = arith.constant 0.000000e+00 : f32
    %102 = vector.broadcast %cst_46 : f32 to vector<8x128xf32>
    %103 = arith.subf %102, %100 : vector<8x128xf32>
    %104 = math.exp %103 : vector<8x128xf32>
    %105 = arith.mulf %101, %104 : vector<8x128xf32>
    %106 = arith.subf %71, %100 : vector<8x128xf32>
    %c0_47 = arith.constant 0 : index
    %c0_48 = arith.constant 0 : index
    %107 = vector.load %arg12[%c0_47, %c0_48] : memref<8x128xf32, #tpu.memory_space<vmem>>, vector<8x128xf32>
    tpu.vector_store %arg12[%c0_47, %c0_48], %105 {strides = array<i32>} : memref<8x128xf32, #tpu.memory_space<vmem>>, vector<8x128xf32>,
    %c0_49 = arith.constant 0 : index
    %c0_50 = arith.constant 0 : index
    %108 = vector.load %arg13[%c0_49, %c0_50] : memref<8x128xf32, #tpu.memory_space<vmem>>, vector<8x128xf32>
    tpu.vector_store %arg13[%c0_49, %c0_50], %106 {strides = array<i32>} : memref<8x128xf32, #tpu.memory_space<vmem>>, vector<8x128xf32>,
    return
  }
  func.func @transform_0(%arg0: i32) -> (i32, i32) {
    %c0_i32 = arith.constant 0 : i32
    %c0_i32_0 = arith.constant 0 : i32
    return %arg0, %c0_i32 : i32, i32
  }
  func.func @transform_1(%arg0: i32) -> (i32, i32) {
    %c0_i32 = arith.constant 0 : i32
    %c0_i32_0 = arith.constant 0 : i32
    %c0_i32_1 = arith.constant 0 : i32
    return %c0_i32, %c0_i32_0 : i32, i32
  }
  func.func @transform_2(%arg0: i32) -> (i32, i32) {
    %c0_i32 = arith.constant 0 : i32
    %c0_i32_0 = arith.constant 0 : i32
    %c0_i32_1 = arith.constant 0 : i32
    return %c0_i32, %c0_i32_0 : i32, i32
  }
  func.func @transform_3(%arg0: i32) -> (i32, i32) {
    %c0_i32 = arith.constant 0 : i32
    %c0_i32_0 = arith.constant 0 : i32
    %c0_i32_1 = arith.constant 0 : i32
    return %c0_i32, %c0_i32_0 : i32, i32
  }
  func.func @transform_4(%arg0: i32) -> (i32, i32) {
    %c0_i32 = arith.constant 0 : i32
    %c0_i32_0 = arith.constant 0 : i32
    %c0_i32_1 = arith.constant 0 : i32
    return %c0_i32, %c0_i32_0 : i32, i32
  }
  func.func @transform_5(%arg0: i32) -> (i32, i32) {
    %c0_i32 = arith.constant 0 : i32
    %c0_i32_0 = arith.constant 0 : i32
    %c0_i32_1 = arith.constant 0 : i32
    return %c0_i32, %c0_i32_0 : i32, i32
  }
  func.func @transform_6(%arg0: i32) -> (i32, i32) {
    %c0_i32 = arith.constant 0 : i32
    %c0_i32_0 = arith.constant 0 : i32
    %c0_i32_1 = arith.constant 0 : i32
    return %c0_i32, %c0_i32_0 : i32, i32
  }
  func.func @transform_7(%arg0: i32) -> (i32, i32) {
    %c0_i32 = arith.constant 0 : i32
    %c0_i32_0 = arith.constant 0 : i32
    %c0_i32_1 = arith.constant 0 : i32
    return %c0_i32, %c0_i32_0 : i32, i32
  }
  func.func @transform_8(%arg0: i32) -> (i32, i32) {
    %c0_i32 = arith.constant 0 : i32
    %c0_i32_0 = arith.constant 0 : i32
    %c0_i32_1 = arith.constant 0 : i32
    return %c0_i32, %c0_i32_0 : i32, i32
  }
  func.func @transform_9(%arg0: i32) -> (i32, i32) {
    %c0_i32 = arith.constant 0 : i32
    %c0_i32_0 = arith.constant 0 : i32
    %c0_i32_1 = arith.constant 0 : i32
    return %c0_i32, %c0_i32_0 : i32, i32
  }
  func.func @transform_10(%arg0: i32) -> (i32, i32) {
    %c0_i32 = arith.constant 0 : i32
    %c0_i32_0 = arith.constant 0 : i32
    %c0_i32_1 = arith.constant 0 : i32
    return %c0_i32, %c0_i32_0 : i32, i32
  }
  func.func @transform_11(%arg0: i32) -> (i32, i32) {
    %c0_i32 = arith.constant 0 : i32
    %c0_i32_0 = arith.constant 0 : i32
    return %arg0, %c0_i32 : i32, i32
  }
  func.func @transform_12(%arg0: i32) -> (i32, i32) {
    %c0_i32 = arith.constant 0 : i32
    %c0_i32_0 = arith.constant 0 : i32
    return %arg0, %c0_i32 : i32, i32
  }
}

</mosaic_0001>

<bundles_post_ra>
// kernel: tpu_custom_call.1
= control target key start
LH: loop header
LB: loop body
LE: loop exit
PB: predicated region body
PF: predicated region fallthrough
CT: control target
= control target key end

     0   :  { %18 = vsyncpa [#allocation3], 0  ;;  %s2080_s0 = inlined_call_operand.hbm [shape: f32[8,128], index: 0, kind: input, shape index: {}]   ;;  %s2081_s1 = inlined_call_operand.hbm [shape: f32[9,256], index: 1, kind: input, shape index: {}]   ;;  %s2082_s2 = inlined_call_operand.hbm [shape: f32[128,128], index: 2, kind: input, shape index: {}]   ;;  %s2083_s3 = inlined_call_operand.hbm [shape: f32[128,128], index: 3, kind: input, shape index: {}]   ;;  %s2084_s4 = inlined_call_operand.hbm [shape: f32[128,256], index: 4, kind: input, shape index: {}]   ;;  %s2085_s5 = inlined_call_operand.hbm [shape: f32[128,128], index: 5, kind: input, shape index: {}]   ;;  %s2086_s6 = inlined_call_operand.hbm [shape: f32[128,128], index: 6, kind: input, shape index: {}]   ;;  %s2087_s7 = inlined_call_operand.hbm [shape: f32[128,256], index: 7, kind: input, shape index: {}]   ;;  %s2088_s8 = inlined_call_operand.hbm [shape: f32[128,128], index: 8, kind: input, shape index: {}]   ;;  %s2089_s9 = inlined_call_operand.hbm [shape: f32[128,128], index: 9, kind: input, shape index: {}]   ;;  %s2090_s10 = inlined_call_operand.hbm [shape: f32[128,256], index: 10, kind: input, shape index: {}]   ;;  %s2091_s11 = inlined_call_operand.hbm [shape: f32[8,128], index: 11, kind: output, shape index: {0}]   ;;  %s2092_s12 = inlined_call_operand.hbm [shape: f32[8,128], index: 12, kind: output, shape index: {1}]  }
   0x1   :  { %19 = vsyncpa [#allocation6], 0 }
   0x2   :  { %20 = vsyncpa [#allocation9], 0 }
   0x3   :  { %21 = vsyncpa [#allocation12], 0 }
   0x4   :  { %22 = vsyncpa [#allocation15], 0 }
   0x5   :  { %23 = vsyncpa [#allocation18], 0 }
   0x6   :  { %24 = vsyncpa [#allocation4], 0 }
   0x7   :  { %25 = vsyncpa [#allocation22], 0  ;;  %s1773_s21 = smov [#allocation5]  }
   0x8   :  { %s41_s22 = sshll.u32 %s1773_s21, 4  ;;  %s42_s22 = int_to_ptr.vmem [resolvable:$true] %s41_s22 }
   0x9   :  { %s1505_s23 = scalar_lea.vmem %s42_s22, 512  ;;  %p1510_p1 = scmp.lt.s32.totalorder %s42_s22, %s42_s22 }
   0xa   :  { %p1506_p0 = scmp.ne.s32.totalorder %s42_s22, %s1505_s23  ;;  %p1511_p2 = scmp.lt.s32.totalorder %s1505_s23, %s1505_s23 }
   0xc   :  { %p1512_p3 = por %p1511_p2, %p1510_p1 }
   0xe   :  { %p1513_p4 = pnand %p1512_p3, %p1506_p0 }
  0x10   :  { %1516 = shalt.err (!%p1513_p4)
}
  0x11   :  { %s1774_s24 = smov 256   ;;  %s1775_s25 = smov 16  }
  0x12   :  { %47 = dma.hbm_to_vmem [thread:$0]  %s2081_s1, 512, %s42_s22, [#allocation6], %s1774_s24, %s1774_s24, %s1775_s25  }
  0x13   :  { %s1776_s28 = smov [#allocation8]   ;;  %s1777_s30 = smov [#allocation11]  }
  0x14   :  { %s65_s29 = sshll.u32 %s1776_s28, 4  ;;  %s89_s13 = sshll.u32 %s1777_s30, 4  ;;  %s66_s29 = int_to_ptr.vmem [resolvable:$true] %s65_s29  ;;  %s90_s13 = int_to_ptr.vmem [resolvable:$true] %s89_s13 }
  0x15   :  { %s1525_s14 = scalar_lea.vmem %s66_s29, 2048  ;;  %p1530_p6 = scmp.lt.s32.totalorder %s66_s29, %s66_s29 }
  0x16   :  { %p1526_p5 = scmp.ne.s32.totalorder %s66_s29, %s1525_s14  ;;  %p1531_p7 = scmp.lt.s32.totalorder %s1525_s14, %s1525_s14 }
  0x18   :  { %p1532_p8 = por %p1531_p7, %p1530_p6 }
  0x1a   :  { %p1533_p9 = pnand %p1532_p8, %p1526_p5 }
  0x1c   :  { %1536 = shalt.err (!%p1533_p9)
}
  0x1d   :  { %s1778_s15 = smov 128   ;;  %s1779_s16 = smov 8  }
  0x1e   :  { %71 = dma.hbm_to_vmem [thread:$0]  %s2083_s3, 2048, %s66_s29, [#allocation9], %s1778_s15, %s1778_s15, %s1779_s16  }
  0x1f   :  { %s1545_s1 = scalar_lea.vmem %s90_s13, 2048  ;;  %p1550_p11 = scmp.lt.s32.totalorder %s90_s13, %s90_s13 }
  0x20   :  { %p1546_p10 = scmp.ne.s32.totalorder %s90_s13, %s1545_s1  ;;  %p1551_p12 = scmp.lt.s32.totalorder %s1545_s1, %s1545_s1 }
  0x22   :  { %p1552_p13 = por %p1551_p12, %p1550_p11 }
  0x24   :  { %p1553_p0 = pnand %p1552_p13, %p1546_p10 }
  0x26   :  { %1556 = shalt.err (!%p1553_p0)
}
  0x27   :  { %95 = dma.hbm_to_vmem [thread:$0]  %s2085_s5, 2048, %s90_s13, [#allocation12], %s1778_s15, %s1778_s15, %s1779_s16  }
  0x28   :  { %s1780_s21 = smov [#allocation14]   ;;  %s1781_s23 = smov [#allocation17]  }
  0x29   :  { %s113_s22 = sshll.u32 %s1780_s21, 4  ;;  %s137_s3 = sshll.u32 %s1781_s23, 4  ;;  %s114_s22 = int_to_ptr.vmem [resolvable:$true] %s113_s22  ;;  %s138_s3 = int_to_ptr.vmem [resolvable:$true] %s137_s3 }
  0x2a   :  { %s1565_s26 = scalar_lea.vmem %s114_s22, 4096  ;;  %p1570_p2 = scmp.lt.s32.totalorder %s114_s22, %s114_s22 }
  0x2b   :  { %p1566_p1 = scmp.ne.s32.totalorder %s114_s22, %s1565_s26  ;;  %p1571_p3 = scmp.lt.s32.totalorder %s1565_s26, %s1565_s26 }
  0x2d   :  { %p1572_p4 = por %p1571_p3, %p1570_p2 }
  0x2f   :  { %p1573_p5 = pnand %p1572_p4, %p1566_p1 }
  0x31   :  { %1576 = shalt.err (!%p1573_p5)
}
  0x32   :  { %119 = dma.hbm_to_vmem [thread:$0]  %s2087_s7, 4096, %s114_s22, [#allocation15], %s1774_s24, %s1774_s24, %s1775_s25  }
  0x33   :  { %s1585_s5 = scalar_lea.vmem %s138_s3, 2048  ;;  %p1590_p7 = scmp.lt.s32.totalorder %s138_s3, %s138_s3 }
  0x34   :  { %p1586_p6 = scmp.ne.s32.totalorder %s138_s3, %s1585_s5  ;;  %p1591_p8 = scmp.lt.s32.totalorder %s1585_s5, %s1585_s5 }
  0x36   :  { %p1592_p9 = por %p1591_p8, %p1590_p7 }
  0x38   :  { %p1593_p10 = pnand %p1592_p9, %p1586_p6 }
  0x3a   :  { %1596 = shalt.err (!%p1593_p10)
}
  0x3b   :  { %143 = dma.hbm_to_vmem [thread:$0]  %s2089_s9, 2048, %s138_s3, [#allocation18], %s1778_s15, %s1778_s15, %s1779_s16  }
  0x3c   :  { %s1782_s13 = smov [#allocation2]   ;;  %s1783_s17 = smov [#allocation7]  }
  0x3d   :  { %s32_s14 = sshll.u32 %s1782_s13, 4  ;;  %s53_s7 = sshll.u32 %s1783_s17, 4  ;;  %s33_s14 = int_to_ptr.vmem [resolvable:$true] %s32_s14  ;;  %s54_s7 = int_to_ptr.vmem [resolvable:$true] %s53_s7 }
  0x3e   :  { %s1605_s18 = scalar_lea.vmem %s33_s14, 128  ;;  %p1610_p12 = scmp.lt.s32.totalorder %s33_s14, %s33_s14 }
  0x3f   :  { %p1606_p11 = scmp.ne.s32.totalorder %s33_s14, %s1605_s18  ;;  %p1611_p13 = scmp.lt.s32.totalorder %s1605_s18, %s1605_s18 }
  0x41   :  { %p1612_p0 = por %p1611_p13, %p1610_p12 }
  0x43   :  { %p1613_p1 = pnand %p1612_p0, %p1606_p11 }
  0x45   :  { %1616 = shalt.err (!%p1613_p1)
}
  0x46   :  { %35 = dma.hbm_to_vmem [thread:$0]  %s2080_s0, 128, %s33_s14, [#allocation3]  }
  0x47   :  { %s1625_s20 = scalar_lea.vmem %s54_s7, 2048  ;;  %p1630_p3 = scmp.lt.s32.totalorder %s54_s7, %s54_s7 }
  0x48   :  { %p1626_p2 = scmp.ne.s32.totalorder %s54_s7, %s1625_s20  ;;  %p1631_p4 = scmp.lt.s32.totalorder %s1625_s20, %s1625_s20 }
  0x4a   :  { %p1632_p5 = por %p1631_p4, %p1630_p3 }
  0x4c   :  { %p1633_p6 = pnand %p1632_p5, %p1626_p2 }
  0x4e   :  { %1636 = shalt.err (!%p1633_p6)
}
  0x4f   :  { %59 = dma.hbm_to_vmem [thread:$0]  %s2082_s2, 2048, %s54_s7, [#allocation6], %s1778_s15, %s1778_s15, %s1779_s16  }
  0x50   :  { %s1784_s22 = smov [#allocation10]   ;;  %s1785_s3 = smov [#allocation13]  }
  0x51   :  { %s77_s23 = sshll.u32 %s1784_s22, 4  ;;  %s101_s0 = sshll.u32 %s1785_s3, 4  ;;  %s78_s23 = int_to_ptr.vmem [resolvable:$true] %s77_s23  ;;  %s102_s0 = int_to_ptr.vmem [resolvable:$true] %s101_s0 }
  0x52   :  { %s1645_s26 = scalar_lea.vmem %s78_s23, 4096  ;;  %p1650_p8 = scmp.lt.s32.totalorder %s78_s23, %s78_s23 }
  0x53   :  { %p1646_p7 = scmp.ne.s32.totalorder %s78_s23, %s1645_s26  ;;  %p1651_p9 = scmp.lt.s32.totalorder %s1645_s26, %s1645_s26 }
  0x55   :  { %p1652_p10 = por %p1651_p9, %p1650_p8 }
  0x57   :  { %p1653_p11 = pnand %p1652_p10, %p1646_p7 }
  0x59   :  { %1656 = shalt.err (!%p1653_p11)
}
  0x5a   :  { %83 = dma.hbm_to_vmem [thread:$0]  %s2084_s4, 4096, %s78_s23, [#allocation9], %s1774_s24, %s1774_s24, %s1775_s25  }
  0x5b   :  { %s1665_s2 = scalar_lea.vmem %s102_s0, 2048  ;;  %p1670_p13 = scmp.lt.s32.totalorder %s102_s0, %s102_s0 }
  0x5c   :  { %p1666_p12 = scmp.ne.s32.totalorder %s102_s0, %s1665_s2  ;;  %p1671_p0 = scmp.lt.s32.totalorder %s1665_s2, %s1665_s2 }
  0x5e   :  { %p1672_p1 = por %p1671_p0, %p1670_p13 }
  0x60   :  { %p1673_p2 = pnand %p1672_p1, %p1666_p12 }
  0x62   :  { %1676 = shalt.err (!%p1673_p2)
}
  0x63   :  { %107 = dma.hbm_to_vmem [thread:$0]  %s2086_s6, 2048, %s102_s0, [#allocation12], %s1778_s15, %s1778_s15, %s1779_s16  }
  0x64   :  { %s1786_s30 = smov [#allocation16]   ;;  %s1787_s14 = smov [#allocation19]  }
  0x65   :  { %s125_s13 = sshll.u32 %s1786_s30, 4  ;;  %s149_s4 = sshll.u32 %s1787_s14, 4  ;;  %s126_s13 = int_to_ptr.vmem [resolvable:$true] %s125_s13  ;;  %s150_s4 = int_to_ptr.vmem [resolvable:$true] %s149_s4 }
  0x66   :  { %s1685_s17 = scalar_lea.vmem %s126_s13, 2048  ;;  %p1690_p4 = scmp.lt.s32.totalorder %s126_s13, %s126_s13 }
  0x67   :  { %p1686_p3 = scmp.ne.s32.totalorder %s126_s13, %s1685_s17  ;;  %p1691_p5 = scmp.lt.s32.totalorder %s1685_s17, %s1685_s17 }
  0x69   :  { %p1692_p6 = por %p1691_p5, %p1690_p4 }
  0x6b   :  { %p1693_p7 = pnand %p1692_p6, %p1686_p3 }
  0x6d   :  { %1696 = shalt.err (!%p1693_p7)
}
  0x6e   :  { %131 = dma.hbm_to_vmem [thread:$0]  %s2088_s8, 2048, %s126_s13, [#allocation15], %s1778_s15, %s1778_s15, %s1779_s16  }
  0x6f   :  { %s1705_s6 = scalar_lea.vmem %s150_s4, 4096  ;;  %p1710_p9 = scmp.lt.s32.totalorder %s150_s4, %s150_s4 }
  0x70   :  { %p1706_p8 = scmp.ne.s32.totalorder %s150_s4, %s1705_s6  ;;  %p1711_p10 = scmp.lt.s32.totalorder %s1705_s6, %s1705_s6 }
  0x72   :  { %p1712_p11 = por %p1711_p10, %p1710_p9 }
  0x74   :  { %p1713_p12 = pnand %p1712_p11, %p1706_p8 }
  0x76   :  { %1716 = shalt.err (!%p1713_p12)
}
  0x77   :  { %155 = dma.hbm_to_vmem [thread:$0]  %s2090_s10, 4096, %s150_s4, [#allocation18], %s1774_s24, %s1774_s24, %s1775_s25  }
  0x78   :  { %1757 = dma.done.wait [#allocation3], 128  }
  0x79   :  { %1758 = vsyncadd [#allocation3], 4294967168 }
  0x7a   :  { %1759 = dma.done.wait [#allocation6], 2560  }
  0x7b   :  { %1760 = vsyncadd [#allocation6], 4294964736 }
  0x7c   :  { %1761 = dma.done.wait [#allocation9], 6144  }
  0x7d   :  { %1762 = vsyncadd [#allocation9], 4294961152 }
  0x7e   :  { %1763 = dma.done.wait [#allocation12], 4096  }
  0x7f   :  { %1764 = vsyncadd [#allocation12], 4294963200 }
  0x80   :  { %1765 = dma.done.wait [#allocation15], 6144  }
  0x81   :  { %1766 = vsyncadd [#allocation15], 4294961152 }
  0x82   :  { %1767 = dma.done.wait [#allocation18], 6144  }
  0x83   :  { %1768 = vsyncadd [#allocation18], 4294961152  ;;  %v1788_v0 = vmov 0.0   ;;  %vm1789_vm0 = vmmov 0   ;;  %v205_v1 = vld [vmem:[#allocation7 + $0x78] sm:$0xff]  ;;  %v204_v2 = vld [vmem:[#allocation7 + $0x70] sm:$0xff]  ;;  %v208_v61 = vlaneseq }
  0x84   :  { %1262 = vmatprep.subr.mxu0 %v1788_v0  ;;  %1294 = vmatprep.mubr.msk.f32.mxu0 %vm1789_vm0, %v1788_v0  ;;  %v203_v3 = vld [vmem:[#allocation7 + $0x68] sm:$0xff]  ;;  %v202_v4 = vld [vmem:[#allocation7 + $0x60] sm:$0xff]  ;;  %v298_v5 = vld [vmem:[#allocation8 + $0x78] sm:$0xff]  ;;  %s1790_s8 = smov [#allocation21]  }
  0x85   :  { %1297 = vmatprep.subr.mxu1 %v1788_v0  ;;  %1329 = vmatprep.mubr.msk.f32.mxu1 %vm1789_vm0, %v1788_v0  ;;  %v201_v6 = vld [vmem:[#allocation7 + $0x58] sm:$0xff]  ;;  %v297_v7 = vld [vmem:[#allocation8 + $0x70] sm:$0xff]  ;;  %v296_v8 = vld [vmem:[#allocation8 + $0x68] sm:$0xff]  ;;  %v1961_v62 = vshrl.u32 %v208_v61, 7  ;;  %s1142_s10 = sshll.u32 %s1790_s8, 4  ;;  %s1143_s10 = int_to_ptr.vmem [resolvable:$true] %s1142_s10 }
  0x86   :  { %1263 = vmatpush3.msra.mxu0 %v205_v1  ;;  %1298 = vmatpush3.msra.mxu1 %v298_v5  ;;  %v200_v9 = vld [vmem:[#allocation7 + $0x50] sm:$0xff]  ;;  %v295_v10 = vld [vmem:[#allocation8 + $0x60] sm:$0xff]  ;;  %v199_v11 = vld [vmem:[#allocation7 + $0x48] sm:$0xff]  ;;  %s1717_s24 = scalar_lea.vmem %s1143_s10, 128  ;;  %p1722_p0 = scmp.lt.s32.totalorder %s1143_s10, %s1143_s10 }
  0x87   :  { %1264 = vmatprep.subr.mxu0 %v1788_v0  ;;  %1299 = vmatprep.subr.mxu1 %v1788_v0  ;;  %v294_v12 = vld [vmem:[#allocation8 + $0x58] sm:$0xff]  ;;  %v198_v13 = vld [vmem:[#allocation7 + $0x40] sm:$0xff]  ;;  %v293_v14 = vld [vmem:[#allocation8 + $0x50] sm:$0xff]  ;;  %v1964_v63 = vsub.s32 0, %v1961_v62  ;;  %p1718_p13 = scmp.ne.s32.totalorder %s1143_s10, %s1717_s24  ;;  %p1723_p1 = scmp.lt.s32.totalorder %s1717_s24, %s1717_s24 }
  0x88   :  { %1265 = vmatpush3.msra.mxu0 %v204_v2  ;;  %1300 = vmatpush3.msra.mxu1 %v297_v7  ;;  %v197_v15 = vld [vmem:[#allocation7 + $0x38] sm:$0xff]  ;;  %v292_v16 = vld [vmem:[#allocation8 + $0x48] sm:$0xff]  ;;  %v196_v17 = vld [vmem:[#allocation7 + $0x30] sm:$0xff] }
  0x89   :  { %1266 = vmatprep.subr.mxu0 %v1788_v0  ;;  %1301 = vmatprep.subr.mxu1 %v1788_v0  ;;  %v291_v18 = vld [vmem:[#allocation8 + $0x40] sm:$0xff]  ;;  %v195_v19 = vld [vmem:[#allocation7 + $0x28] sm:$0xff]  ;;  %v290_v20 = vld [vmem:[#allocation8 + $0x38] sm:$0xff]  ;;  %p1724_p2 = por %p1723_p1, %p1722_p0 }
  0x8a   :  { %1267 = vmatpush3.msra.mxu0 %v203_v3  ;;  %1302 = vmatpush3.msra.mxu1 %v296_v8  ;;  %v194_v21 = vld [vmem:[#allocation7 + $0x20] sm:$0xff]  ;;  %v289_v22 = vld [vmem:[#allocation8 + $0x30] sm:$0xff]  ;;  %v193_v23 = vld [vmem:[#allocation7 + $0x18] sm:$0xff] }
  0x8b   :  { %1268 = vmatprep.subr.mxu0 %v1788_v0  ;;  %1303 = vmatprep.subr.mxu1 %v1788_v0  ;;  %v288_v24 = vld [vmem:[#allocation8 + $0x28] sm:$0xff]  ;;  %v192_v25 = vld [vmem:[#allocation7 + $0x10] sm:$0xff]  ;;  %v287_v26 = vld [vmem:[#allocation8 + $0x20] sm:$0xff]  ;;  %p1725_p3 = pnand %p1724_p2, %p1718_p13 }
  0x8c   :  { %1269 = vmatpush3.msra.mxu0 %v202_v4  ;;  %1304 = vmatpush3.msra.mxu1 %v295_v10  ;;  %v191_v27 = vld [vmem:[#allocation7 + $0x8] sm:$0xff]  ;;  %v286_v28 = vld [vmem:[#allocation8 + $0x18] sm:$0xff]  ;;  %v190_v29 = vld [vmem:[#allocation7] sm:$0xff] }
  0x8d   :  { %1270 = vmatprep.subr.mxu0 %v1788_v0  ;;  %1305 = vmatprep.subr.mxu1 %v1788_v0  ;;  %v1951_v30 = vld [vmem:[#allocation2] sm:$0xff]  ;;  %v285_v31 = vld [vmem:[#allocation8 + $0x10] sm:$0xff]  ;;  %v284_v32 = vld [vmem:[#allocation8 + $0x8] sm:$0xff] }
  0x8e   :  { %1271 = vmatpush3.msra.mxu0 %v201_v6  ;;  %1306 = vmatpush3.msra.mxu1 %v294_v12  ;;  %v283_v33 = vld [vmem:[#allocation8] sm:$0xff]  ;;  %v410_v34 = vld [vmem:[#allocation10 + $0xf8] sm:$0xff]  ;;  %v409_v35 = vld [vmem:[#allocation10 + $0xf0] sm:$0xff] }
  0x8f   :  { %1272 = vmatprep.subr.mxu0 %v1788_v0  ;;  %1307 = vmatprep.subr.mxu1 %v1788_v0  ;;  %v408_v36 = vld [vmem:[#allocation10 + $0xe8] sm:$0xff]  ;;  %v407_v37 = vld [vmem:[#allocation10 + $0xe0] sm:$0xff]  ;;  %v406_v38 = vld [vmem:[#allocation10 + $0xd8] sm:$0xff] }
  0x90   :  { %1273 = vmatpush3.msra.mxu0 %v200_v9  ;;  %1308 = vmatpush3.msra.mxu1 %v293_v14  ;;  %v405_v39 = vld [vmem:[#allocation10 + $0xd0] sm:$0xff]  ;;  %v404_v40 = vld [vmem:[#allocation10 + $0xc8] sm:$0xff]  ;;  %v403_v41 = vld [vmem:[#allocation10 + $0xc0] sm:$0xff] }
  0x91   :  { %1274 = vmatprep.subr.mxu0 %v1788_v0  ;;  %1309 = vmatprep.subr.mxu1 %v1788_v0  ;;  %v402_v42 = vld [vmem:[#allocation10 + $0xb8] sm:$0xff]  ;;  %v401_v43 = vld [vmem:[#allocation10 + $0xb0] sm:$0xff]  ;;  %v400_v44 = vld [vmem:[#allocation10 + $0xa8] sm:$0xff] }
  0x92   :  { %1275 = vmatpush3.msra.mxu0 %v199_v11  ;;  %1310 = vmatpush3.msra.mxu1 %v292_v16  ;;  %v399_v45 = vld [vmem:[#allocation10 + $0xa0] sm:$0xff]  ;;  %v398_v46 = vld [vmem:[#allocation10 + $0x98] sm:$0xff]  ;;  %v397_v47 = vld [vmem:[#allocation10 + $0x90] sm:$0xff] }
  0x93   :  { %1276 = vmatprep.subr.mxu0 %v1788_v0  ;;  %1311 = vmatprep.subr.mxu1 %v1788_v0  ;;  %v396_v48 = vld [vmem:[#allocation10 + $0x88] sm:$0xff]  ;;  %v395_v49 = vld [vmem:[#allocation10 + $0x80] sm:$0xff]  ;;  %v394_v50 = vld [vmem:[#allocation10 + $0x78] sm:$0xff] }
  0x94   :  { %1277 = vmatpush3.msra.mxu0 %v198_v13  ;;  %1312 = vmatpush3.msra.mxu1 %v291_v18  ;;  %v393_v51 = vld [vmem:[#allocation10 + $0x70] sm:$0xff]  ;;  %v392_v52 = vld [vmem:[#allocation10 + $0x68] sm:$0xff]  ;;  %v391_v53 = vld [vmem:[#allocation10 + $0x60] sm:$0xff] }
  0x95   :  { %1278 = vmatprep.subr.mxu0 %v1788_v0  ;;  %1313 = vmatprep.subr.mxu1 %v1788_v0  ;;  %v390_v54 = vld [vmem:[#allocation10 + $0x58] sm:$0xff]  ;;  %v389_v55 = vld [vmem:[#allocation10 + $0x50] sm:$0xff]  ;;  %v388_v56 = vld [vmem:[#allocation10 + $0x48] sm:$0xff] }
  0x96   :  { %1279 = vmatpush3.msra.mxu0 %v197_v15  ;;  %1314 = vmatpush3.msra.mxu1 %v290_v20  ;;  %v387_v57 = vld [vmem:[#allocation10 + $0x40] sm:$0xff]  ;;  %v386_v58 = vld [vmem:[#allocation10 + $0x38] sm:$0xff]  ;;  %v385_v59 = vld [vmem:[#allocation10 + $0x30] sm:$0xff] }
  0x97   :  { %1280 = vmatprep.subr.mxu0 %v1788_v0  ;;  %1315 = vmatprep.subr.mxu1 %v1788_v0  ;;  %v384_v60 = vld [vmem:[#allocation10 + $0x28] sm:$0xff]  ;;  %v383_v7 = vld [vmem:[#allocation10 + $0x20] sm:$0xff]  ;;  %v382_v8 = vld [vmem:[#allocation10 + $0x18] sm:$0xff] }
  0x98   :  { %1281 = vmatpush3.msra.mxu0 %v196_v17  ;;  %1316 = vmatpush3.msra.mxu1 %v289_v22  ;;  %v206_v1 = vld [vmem:[#allocation5] ss:$8 sm:$0x3]  ;;  %v381_v9 = vld [vmem:[#allocation10 + $0x10] sm:$0xff]  ;;  %v515_v12 = vld [vmem:[#allocation11 + $0x78] sm:$0xff] }
  0x99   :  { %1282 = vmatprep.subr.mxu0 %v1788_v0  ;;  %1317 = vmatprep.subr.mxu1 %v1788_v0  ;;  %v211_v2 = vrot.slane %v206_v1, %v1964_v63  ;;  %v380_v10 = vld [vmem:[#allocation10 + $0x8] sm:$0xff]  ;;  %v379_v11 = vld [vmem:[#allocation10] sm:$0xff]  ;;  %v514_v13 = vld [vmem:[#allocation11 + $0x70] sm:$0xff] }
  0x9a   :  { %1283 = vmatpush3.msra.mxu0 %v195_v19  ;;  %1318 = vmatpush3.msra.mxu1 %v288_v24  ;;  %v513_v14 = vld [vmem:[#allocation11 + $0x68] sm:$0xff]  ;;  %v511_v22 = vld [vmem:[#allocation11 + $0x58] sm:$0xff]  ;;  %v596_v61 = vld [vmem:[#allocation13 + $0x10] sm:$0xff] }
  0x9b   :  { %1284 = vmatprep.subr.mxu0 %v1788_v0  ;;  %1319 = vmatprep.subr.mxu1 %v1788_v0  ;;  %v301_v15 = vld [vmem:[#allocation5 + $0x1] ss:$8 sm:$0x3] }
  0x9c   :  { %1285 = vmatpush3.msra.mxu0 %v194_v21  ;;  %1320 = vmatpush3.msra.mxu1 %v287_v26  ;;  %v306_v16 = vrot.slane %v301_v15, %v1964_v63  ;;  %v512_v21 = vld [vmem:[#allocation11 + $0x60] sm:$0xff]  ;;  %v509_v24 = vld [vmem:[#allocation11 + $0x48] sm:$0xff]  ;;  %v507_v26 = vld [vmem:[#allocation11 + $0x38] sm:$0xff] }
  0x9d   :  { %1286 = vmatprep.subr.mxu0 %v1788_v0  ;;  %1321 = vmatprep.subr.mxu1 %v1788_v0  ;;  %v594_v1 = vld [vmem:[#allocation13] sm:$0xff]  ;;  %v707_v15 = vld [vmem:[#allocation14 + $0x88] sm:$0xff] }
  0x9e   :  { %1287 = vmatpush3.msra.mxu0 %v193_v23  ;;  %1322 = vmatpush3.msra.mxu1 %v286_v28  ;;  %v510_v23 = vld [vmem:[#allocation11 + $0x50] sm:$0xff]  ;;  %v505_v28 = vld [vmem:[#allocation11 + $0x28] sm:$0xff] }
  0x9f   :  { %1288 = vmatprep.subr.mxu0 %v1788_v0  ;;  %1323 = vmatprep.subr.mxu1 %v1788_v0 }
  0xa0   :  { %1289 = vmatpush3.msra.mxu0 %v192_v25  ;;  %1324 = vmatpush3.msra.mxu1 %v285_v31  ;;  %v508_v25 = vld [vmem:[#allocation11 + $0x40] sm:$0xff]  ;;  %v503_v31 = vld [vmem:[#allocation11 + $0x18] sm:$0xff] }
  0xa1   :  { %1290 = vmatprep.subr.mxu0 %v1788_v0  ;;  %1325 = vmatprep.subr.mxu1 %v1788_v0 }
  0xa2   :  { %1291 = vmatpush3.msra.mxu0 %v191_v27  ;;  %1326 = vmatpush3.msra.mxu1 %v284_v32  ;;  %v506_v27 = vld [vmem:[#allocation11 + $0x30] sm:$0xff] }
  0xa3   :  { %1292 = vmatprep.subr.mxu0 %v1788_v0  ;;  %1327 = vmatprep.subr.mxu1 %v1788_v0  ;;  %v502_v32 = vld [vmem:[#allocation11 + $0x10] sm:$0xff] }
  0xa4   :  { %1293 = vmatpush3.msra.mxu0 %v190_v29  ;;  %1328 = vmatpush3.msra.mxu1 %v283_v33  ;;  %v504_v29 = vld [vmem:[#allocation11 + $0x20] sm:$0xff]  ;;  %v501_v33 = vld [vmem:[#allocation11 + $0x8] sm:$0xff] }
  0xa5   :  { %1295 = vmatmul.mubr.f32.vlgmr.msra.gmra.mxu0 %v1951_v30  ;;  %1332 = vmatprep.subr.mxu1 %v1788_v0 }
  0xa6   :  { %488 = vmatprep.mubr.f32.mxu0 %v1788_v0  ;;  %424 = vmatprep.subr.mxu0 %v410_v34  ;;  %v500_v34 = vld [vmem:[#allocation11] sm:$0xff] }
  0xa7   :  { %425 = vmatpush1.msra.mxu0 %v409_v35  ;;  %v609_v35 = vld [vmem:[#allocation13 + $0x78] sm:$0xff] }
  0xa8   :  { %426 = vmatprep.subr.mxu0 %v408_v36  ;;  %v608_v36 = vld [vmem:[#allocation13 + $0x70] sm:$0xff] }
  0xa9   :  { %427 = vmatpush1.msra.mxu0 %v407_v37  ;;  %v607_v37 = vld [vmem:[#allocation13 + $0x68] sm:$0xff] }
  0xaa   :  { %428 = vmatprep.subr.mxu0 %v406_v38  ;;  %v606_v38 = vld [vmem:[#allocation13 + $0x60] sm:$0xff] }
  0xab   :  { %429 = vmatpush1.msra.mxu0 %v405_v39  ;;  %v605_v39 = vld [vmem:[#allocation13 + $0x58] sm:$0xff] }
  0xac   :  { %430 = vmatprep.subr.mxu0 %v404_v40  ;;  %v604_v40 = vld [vmem:[#allocation13 + $0x50] sm:$0xff] }
  0xad   :  { %431 = vmatpush1.msra.mxu0 %v403_v41  ;;  %v603_v41 = vld [vmem:[#allocation13 + $0x48] sm:$0xff] }
  0xae   :  { %432 = vmatprep.subr.mxu0 %v402_v42  ;;  %v602_v42 = vld [vmem:[#allocation13 + $0x40] sm:$0xff] }
  0xaf   :  { %433 = vmatpush1.msra.mxu0 %v401_v43  ;;  %v601_v43 = vld [vmem:[#allocation13 + $0x38] sm:$0xff] }
  0xb0   :  { %434 = vmatprep.subr.mxu0 %v400_v44  ;;  %v600_v44 = vld [vmem:[#allocation13 + $0x30] sm:$0xff] }
  0xb1   :  { %435 = vmatpush1.msra.mxu0 %v399_v45  ;;  %v599_v45 = vld [vmem:[#allocation13 + $0x28] sm:$0xff] }
  0xb2   :  { %436 = vmatprep.subr.mxu0 %v398_v46  ;;  %v598_v46 = vld [vmem:[#allocation13 + $0x20] sm:$0xff] }
  0xb3   :  { %437 = vmatpush1.msra.mxu0 %v397_v47  ;;  %v597_v47 = vld [vmem:[#allocation13 + $0x18] sm:$0xff] }
  0xb4   :  { %438 = vmatprep.subr.mxu0 %v396_v48  ;;  %v2002_v48 = vsub.s32 1, %v1961_v62  ;;  %v595_v62 = vld [vmem:[#allocation13 + $0x8] sm:$0xff] }
  0xb5   :  { %439 = vmatpush1.msra.mxu0 %v395_v49  ;;  %v412_v49 = vld [vmem:[#allocation5 + $0x2] ss:$8 sm:$0x3] }
  0xb6   :  { %440 = vmatprep.subr.mxu0 %v394_v50  ;;  %v421_v50 = vrot.slane %v412_v49, %v2002_v48 }
  0xb7   :  { %441 = vmatpush1.msra.mxu0 %v393_v51 }
  0xb8   :  { %442 = vmatprep.subr.mxu0 %v392_v52 }
  0xb9   :  { %443 = vmatpush1.msra.mxu0 %v391_v53 }
  0xba   :  { %444 = vmatprep.subr.mxu0 %v390_v54 }
  0xbb   :  { %445 = vmatpush1.msra.mxu0 %v389_v55 }
  0xbc   :  { %446 = vmatprep.subr.mxu0 %v388_v56  ;;  %v417_v56 = vrot.slane %v412_v49, %v1964_v63 }
  0xbd   :  { %447 = vmatpush1.msra.mxu0 %v387_v57 }
  0xbe   :  { %448 = vmatprep.subr.mxu0 %v386_v58 }
  0xbf   :  { %449 = vmatpush1.msra.mxu0 %v385_v59 }
  0xc0   :  { %450 = vmatprep.subr.mxu0 %v384_v60 }
  0xc1   :  { %451 = vmatpush1.msra.mxu0 %v383_v7  ;;  %v715_v7 = vld [vmem:[#allocation14 + $0xc8] sm:$0xff] }
  0xc2   :  { %452 = vmatprep.subr.mxu0 %v382_v8  ;;  %v714_v8 = vld [vmem:[#allocation14 + $0xc0] sm:$0xff] }
  0xc3   :  { %453 = vmatpush1.msra.mxu0 %v381_v9  ;;  %v713_v9 = vld [vmem:[#allocation14 + $0xb8] sm:$0xff] }
  0xc4   :  { %454 = vmatprep.subr.mxu0 %v380_v10  ;;  %v712_v10 = vld [vmem:[#allocation14 + $0xb0] sm:$0xff] }
  0xc5   :  { %455 = vmatpush1.msra.mxu0 %v379_v11  ;;  %v711_v11 = vld [vmem:[#allocation14 + $0xa8] sm:$0xff] }
  0xc6   :  { %1367 = vmatprep.subr.mxu0 %v1788_v0 }
 0x165   :  { %v279_v3 = vpop.f32.mrf.mxu0 }
 0x166   :  { %v280_v4 = vadd.f32 %v279_v3, %v211_v2  ;;  %v721_v2 = vld [vmem:[#allocation14 + $0xf8] sm:$0xff]  ;;  %v720_v3 = vld [vmem:[#allocation14 + $0xf0] sm:$0xff] }
 0x167   :  { %v1296_v5 = vpop.f32.mrf.mxu0 }
 0x168   :  { %v299_v6 = vmax.f32 %v280_v4, 0.0  ;;  %v718_v4 = vld [vmem:[#allocation14 + $0xe0] sm:$0xff]  ;;  %v717_v5 = vld [vmem:[#allocation14 + $0xd8] sm:$0xff] }
 0x16a   :  { %1330 = vmatmul.mubr.f32.vlgmr.msra.gmra.mxu1 %v299_v6  ;;  %v716_v6 = vld [vmem:[#allocation14 + $0xd0] sm:$0xff] }
 0x16b   :  { %1364 = vmatprep.mubr.msk.f32.mxu1 %vm1789_vm0, %v1788_v0  ;;  %1333 = vmatpush3.msra.mxu1 %v515_v12  ;;  %v710_v12 = vld [vmem:[#allocation14 + $0xa0] sm:$0xff] }
 0x16c   :  { %1334 = vmatprep.subr.mxu1 %v1788_v0 }
 0x16d   :  { %1335 = vmatpush3.msra.mxu1 %v514_v13  ;;  %v709_v13 = vld [vmem:[#allocation14 + $0x98] sm:$0xff] }
 0x16e   :  { %1336 = vmatprep.subr.mxu1 %v1788_v0 }
 0x16f   :  { %1337 = vmatpush3.msra.mxu1 %v513_v14  ;;  %v708_v14 = vld [vmem:[#allocation14 + $0x90] sm:$0xff] }
 0x170   :  { %1338 = vmatprep.subr.mxu1 %v1788_v0 }
 0x171   :  { %1339 = vmatpush3.msra.mxu1 %v512_v21  ;;  %v701_v21 = vld [vmem:[#allocation14 + $0x58] sm:$0xff] }
 0x172   :  { %1340 = vmatprep.subr.mxu1 %v1788_v0 }
 0x173   :  { %1341 = vmatpush3.msra.mxu1 %v511_v22  ;;  %v700_v22 = vld [vmem:[#allocation14 + $0x50] sm:$0xff] }
 0x174   :  { %1342 = vmatprep.subr.mxu1 %v1788_v0 }
 0x175   :  { %1343 = vmatpush3.msra.mxu1 %v510_v23  ;;  %v699_v23 = vld [vmem:[#allocation14 + $0x48] sm:$0xff] }
 0x176   :  { %1344 = vmatprep.subr.mxu1 %v1788_v0 }
 0x177   :  { %1345 = vmatpush3.msra.mxu1 %v509_v24  ;;  %v698_v24 = vld [vmem:[#allocation14 + $0x40] sm:$0xff] }
 0x178   :  { %1346 = vmatprep.subr.mxu1 %v1788_v0 }
 0x179   :  { %1347 = vmatpush3.msra.mxu1 %v508_v25  ;;  %v697_v25 = vld [vmem:[#allocation14 + $0x38] sm:$0xff] }
 0x17a   :  { %1348 = vmatprep.subr.mxu1 %v1788_v0 }
 0x17b   :  { %1349 = vmatpush3.msra.mxu1 %v507_v26  ;;  %v696_v26 = vld [vmem:[#allocation14 + $0x30] sm:$0xff] }
 0x17c   :  { %1350 = vmatprep.subr.mxu1 %v1788_v0 }
 0x17d   :  { %1351 = vmatpush3.msra.mxu1 %v506_v27  ;;  %v695_v27 = vld [vmem:[#allocation14 + $0x28] sm:$0xff] }
 0x17e   :  { %1352 = vmatprep.subr.mxu1 %v1788_v0 }
 0x17f   :  { %1353 = vmatpush3.msra.mxu1 %v505_v28  ;;  %v517_v28 = vld [vmem:[#allocation5 + $0x3] ss:$8 sm:$0x3] }
 0x180   :  { %1354 = vmatprep.subr.mxu1 %v1788_v0 }
 0x181   :  { %1355 = vmatpush3.msra.mxu1 %v504_v29  ;;  %v522_v29 = vrot.slane %v517_v28, %v1964_v63  ;;  %v908_v28 = vld [vmem:[#allocation17 + $0x10] sm:$0xff] }
 0x182   :  { %1356 = vmatprep.subr.mxu1 %v1788_v0 }
 0x183   :  { %1357 = vmatpush3.msra.mxu1 %v503_v31 }
 0x184   :  { %1358 = vmatprep.subr.mxu1 %v1788_v0 }
 0x185   :  { %1359 = vmatpush3.msra.mxu1 %v502_v32 }
 0x186   :  { %1360 = vmatprep.subr.mxu1 %v1788_v0 }
 0x187   :  { %1361 = vmatpush3.msra.mxu1 %v501_v33 }
 0x188   :  { %1362 = vmatprep.subr.mxu1 %v1788_v0 }
 0x189   :  { %1363 = vmatpush3.msra.mxu1 %v500_v34 }
 0x18a   :  { %735 = vmatprep.subr.mxu1 %v721_v2  ;;  %v813_v2 = vld [vmem:[#allocation16 + $0x8] sm:$0xff] }
 0x22a   :  { %v374_v17 = vpop.f32.mrf.mxu1 }
 0x22b   :  { %v375_v18 = vadd.f32 %v374_v17, %v306_v16  ;;  %v706_v16 = vld [vmem:[#allocation14 + $0x80] sm:$0xff]  ;;  %v705_v17 = vld [vmem:[#allocation14 + $0x78] sm:$0xff] }
 0x22c   :  { %v1331_v19 = vpop.f32.mrf.mxu1 }
 0x22d   :  { %v378_v20 = vmax.f32 %v375_v18, 0.0  ;;  %v704_v18 = vld [vmem:[#allocation14 + $0x70] sm:$0xff]  ;;  %v703_v19 = vld [vmem:[#allocation14 + $0x68] sm:$0xff] }
 0x22f   :  { %489 = vmatmul.mubr.f32.vlgmr.msra.gmra.mxu0 %v378_v20  ;;  %v702_v20 = vld [vmem:[#allocation14 + $0x60] sm:$0xff] }
 0x230   :  { %1399 = vmatprep.mubr.msk.f32.mxu0 %vm1789_vm0, %v1788_v0  ;;  %1368 = vmatpush3.msra.mxu0 %v609_v35  ;;  %v694_v35 = vld [vmem:[#allocation14 + $0x20] sm:$0xff] }
 0x231   :  { %1369 = vmatprep.subr.mxu0 %v1788_v0 }
 0x232   :  { %1370 = vmatpush3.msra.mxu0 %v608_v36  ;;  %v693_v36 = vld [vmem:[#allocation14 + $0x18] sm:$0xff] }
 0x233   :  { %1371 = vmatprep.subr.mxu0 %v1788_v0 }
 0x234   :  { %1372 = vmatpush3.msra.mxu0 %v607_v37  ;;  %v692_v37 = vld [vmem:[#allocation14 + $0x10] sm:$0xff] }
 0x235   :  { %1373 = vmatprep.subr.mxu0 %v1788_v0 }
 0x236   :  { %1374 = vmatpush3.msra.mxu0 %v606_v38  ;;  %v691_v38 = vld [vmem:[#allocation14 + $0x8] sm:$0xff] }
 0x237   :  { %1375 = vmatprep.subr.mxu0 %v1788_v0 }
 0x238   :  { %1376 = vmatpush3.msra.mxu0 %v605_v39  ;;  %v690_v39 = vld [vmem:[#allocation14] sm:$0xff] }
 0x239   :  { %1377 = vmatprep.subr.mxu0 %v1788_v0 }
 0x23a   :  { %1378 = vmatpush3.msra.mxu0 %v604_v40  ;;  %v827_v40 = vld [vmem:[#allocation16 + $0x78] sm:$0xff] }
 0x23b   :  { %1379 = vmatprep.subr.mxu0 %v1788_v0 }
 0x23c   :  { %1380 = vmatpush3.msra.mxu0 %v603_v41  ;;  %v826_v41 = vld [vmem:[#allocation16 + $0x70] sm:$0xff] }
 0x23d   :  { %1381 = vmatprep.subr.mxu0 %v1788_v0 }
 0x23e   :  { %1382 = vmatpush3.msra.mxu0 %v602_v42  ;;  %v825_v42 = vld [vmem:[#allocation16 + $0x68] sm:$0xff] }
 0x23f   :  { %1383 = vmatprep.subr.mxu0 %v1788_v0 }
 0x240   :  { %1384 = vmatpush3.msra.mxu0 %v601_v43  ;;  %v612_v43 = vld [vmem:[#allocation5 + $0x4] ss:$8 sm:$0x3] }
 0x241   :  { %1385 = vmatprep.subr.mxu0 %v1788_v0 }
 0x242   :  { %1386 = vmatpush3.msra.mxu0 %v600_v44  ;;  %v617_v44 = vrot.slane %v612_v43, %v1964_v63  ;;  %v1020_v43 = vld [vmem:[#allocation19 + $0x90] sm:$0xff] }
 0x243   :  { %1387 = vmatprep.subr.mxu0 %v1788_v0 }
 0x244   :  { %1388 = vmatpush3.msra.mxu0 %v599_v45 }
 0x245   :  { %1389 = vmatprep.subr.mxu0 %v1788_v0 }
 0x246   :  { %1390 = vmatpush3.msra.mxu0 %v598_v46 }
 0x247   :  { %1391 = vmatprep.subr.mxu0 %v1788_v0 }
 0x248   :  { %1392 = vmatpush3.msra.mxu0 %v597_v47 }
 0x249   :  { %1393 = vmatprep.subr.mxu0 %v1788_v0 }
 0x24a   :  { %1394 = vmatpush3.msra.mxu0 %v596_v61  ;;  %v816_v61 = vld [vmem:[#allocation16 + $0x20] sm:$0xff] }
 0x24b   :  { %1395 = vmatprep.subr.mxu0 %v1788_v0 }
 0x24c   :  { %1396 = vmatpush3.msra.mxu0 %v595_v62  ;;  %v815_v62 = vld [vmem:[#allocation16 + $0x18] sm:$0xff] }
 0x24d   :  { %1397 = vmatprep.subr.mxu0 %v1788_v0 }
 0x24e   :  { %1398 = vmatpush3.msra.mxu0 %v594_v1  ;;  %v814_v1 = vld [vmem:[#allocation16 + $0x10] sm:$0xff] }
 0x24f   :  { %1402 = vmatprep.subr.mxu0 %v1788_v0 }
 0x2ef   :  { %v490_v51 = vpop.f32.mrf.mxu0 }
 0x2f0   :  { %v491_v57 = vadd.f32 %v490_v51, %v417_v56  ;;  %v823_v51 = vld [vmem:[#allocation16 + $0x58] sm:$0xff]  ;;  %v820_v56 = vld [vmem:[#allocation16 + $0x40] sm:$0xff] }
 0x2f1   :  { %v492_v52 = vpop.f32.mrf.mxu0 }
 0x2f2   :  { %v2005_v53 = vadd.f32 %v492_v52, %v421_v50  ;;  %v495_v58 = vsub.f32 %v1951_v30, %v491_v57  ;;  %v719_v30 = vld [vmem:[#allocation14 + $0xe8] sm:$0xff]  ;;  %v824_v50 = vld [vmem:[#allocation16 + $0x60] sm:$0xff]  ;;  %v822_v52 = vld [vmem:[#allocation16 + $0x50] sm:$0xff] }
 0x2f3   :  { %v819_v57 = vld [vmem:[#allocation16 + $0x38] sm:$0xff] }
 0x2f4   :  { %v496_v54 = vsub.f32 0.0, %v2005_v53 }
 0x2f6   :  { %v497_v55 = vmul.f32 1.442695, %v496_v54 }
 0x2f8   :  { %1491 = vpow2.f32 %v497_v55  ;;  %v821_v55 = vld [vmem:[#allocation16 + $0x48] sm:$0xff] }
 0x305   :  { %v1492_v59 = vpop.eup %1491 }
 0x306   :  { %v2012_v60 = vmul.f32 %v1492_v59, %v495_v58  ;;  %v818_v58 = vld [vmem:[#allocation16 + $0x30] sm:$0xff]  ;;  %v817_v59 = vld [vmem:[#allocation16 + $0x28] sm:$0xff] }
 0x308   :  { %1365 = vmatmul.mubr.f32.vlgmr.msra.gmra.mxu1 %v2012_v60 }
 0x309   :  { %799 = vmatprep.mubr.f32.mxu1 %v1788_v0  ;;  %736 = vmatpush1.msra.mxu1 %v720_v3  ;;  %v812_v3 = vld [vmem:[#allocation16] sm:$0xff] }
 0x30a   :  { %737 = vmatprep.subr.mxu1 %v719_v30  ;;  %v921_v30 = vld [vmem:[#allocation17 + $0x78] sm:$0xff] }
 0x30b   :  { %738 = vmatpush1.msra.mxu1 %v718_v4  ;;  %v920_v4 = vld [vmem:[#allocation17 + $0x70] sm:$0xff] }
 0x30c   :  { %739 = vmatprep.subr.mxu1 %v717_v5  ;;  %v919_v5 = vld [vmem:[#allocation17 + $0x68] sm:$0xff] }
 0x30d   :  { %740 = vmatpush1.msra.mxu1 %v716_v6  ;;  %v918_v6 = vld [vmem:[#allocation17 + $0x60] sm:$0xff] }
 0x30e   :  { %741 = vmatprep.subr.mxu1 %v715_v7  ;;  %v917_v7 = vld [vmem:[#allocation17 + $0x58] sm:$0xff] }
 0x30f   :  { %742 = vmatpush1.msra.mxu1 %v714_v8  ;;  %v916_v8 = vld [vmem:[#allocation17 + $0x50] sm:$0xff] }
 0x310   :  { %743 = vmatprep.subr.mxu1 %v713_v9  ;;  %v915_v9 = vld [vmem:[#allocation17 + $0x48] sm:$0xff] }
 0x311   :  { %744 = vmatpush1.msra.mxu1 %v712_v10  ;;  %v914_v10 = vld [vmem:[#allocation17 + $0x40] sm:$0xff] }
 0x312   :  { %745 = vmatprep.subr.mxu1 %v711_v11  ;;  %v913_v11 = vld [vmem:[#allocation17 + $0x38] sm:$0xff] }
 0x313   :  { %746 = vmatpush1.msra.mxu1 %v710_v12  ;;  %v912_v12 = vld [vmem:[#allocation17 + $0x30] sm:$0xff] }
 0x314   :  { %747 = vmatprep.subr.mxu1 %v709_v13  ;;  %v911_v13 = vld [vmem:[#allocation17 + $0x28] sm:$0xff] }
 0x315   :  { %748 = vmatpush1.msra.mxu1 %v708_v14  ;;  %v910_v14 = vld [vmem:[#allocation17 + $0x20] sm:$0xff] }
 0x316   :  { %749 = vmatprep.subr.mxu1 %v707_v15  ;;  %v909_v15 = vld [vmem:[#allocation17 + $0x18] sm:$0xff] }
 0x317   :  { %750 = vmatpush1.msra.mxu1 %v706_v16  ;;  %v723_v16 = vld [vmem:[#allocation5 + $0x5] ss:$8 sm:$0x3] }
 0x318   :  { %751 = vmatprep.subr.mxu1 %v705_v17  ;;  %v732_v17 = vrot.slane %v723_v16, %v2002_v48 }
 0x319   :  { %752 = vmatpush1.msra.mxu1 %v704_v18 }
 0x31a   :  { %753 = vmatprep.subr.mxu1 %v703_v19 }
 0x31b   :  { %754 = vmatpush1.msra.mxu1 %v702_v20 }
 0x31c   :  { %755 = vmatprep.subr.mxu1 %v701_v21 }
 0x31d   :  { %756 = vmatpush1.msra.mxu1 %v700_v22 }
 0x31e   :  { %757 = vmatprep.subr.mxu1 %v699_v23  ;;  %v728_v23 = vrot.slane %v723_v16, %v1964_v63 }
 0x31f   :  { %758 = vmatpush1.msra.mxu1 %v698_v24 }
 0x320   :  { %759 = vmatprep.subr.mxu1 %v697_v25 }
 0x321   :  { %760 = vmatpush1.msra.mxu1 %v696_v26 }
 0x322   :  { %761 = vmatprep.subr.mxu1 %v695_v27 }
 0x323   :  { %762 = vmatpush1.msra.mxu1 %v694_v35  ;;  %v1029_v35 = vld [vmem:[#allocation19 + $0xd8] sm:$0xff] }
 0x324   :  { %763 = vmatprep.subr.mxu1 %v693_v36  ;;  %v1028_v36 = vld [vmem:[#allocation19 + $0xd0] sm:$0xff] }
 0x325   :  { %764 = vmatpush1.msra.mxu1 %v692_v37  ;;  %v1027_v37 = vld [vmem:[#allocation19 + $0xc8] sm:$0xff] }
 0x326   :  { %765 = vmatprep.subr.mxu1 %v691_v38  ;;  %v1026_v38 = vld [vmem:[#allocation19 + $0xc0] sm:$0xff] }
 0x327   :  { %766 = vmatpush1.msra.mxu1 %v690_v39  ;;  %v1025_v39 = vld [vmem:[#allocation19 + $0xb8] sm:$0xff] }
 0x328   :  { %1437 = vmatprep.subr.mxu1 %v1788_v0 }
 0x3c8   :  { %v590_v31 = vpop.f32.mrf.mxu1 }
 0x3c9   :  { %v591_v32 = vadd.f32 %v590_v31, %v522_v29  ;;  %v907_v29 = vld [vmem:[#allocation17 + $0x8] sm:$0xff]  ;;  %v906_v31 = vld [vmem:[#allocation17] sm:$0xff] }
 0x3ca   :  { %v1366_v33 = vpop.f32.mrf.mxu1 }
 0x3cb   :  { %v610_v34 = vmax.f32 %v591_v32, 0.0  ;;  %v1033_v32 = vld [vmem:[#allocation19 + $0xf8] sm:$0xff]  ;;  %v1032_v33 = vld [vmem:[#allocation19 + $0xf0] sm:$0xff] }
 0x3cd   :  { %1400 = vmatmul.mubr.f32.vlgmr.msra.gmra.mxu0 %v610_v34  ;;  %v1030_v34 = vld [vmem:[#allocation19 + $0xe0] sm:$0xff] }
 0x3ce   :  { %1434 = vmatprep.mubr.msk.f32.mxu0 %vm1789_vm0, %v1788_v0  ;;  %1403 = vmatpush3.msra.mxu0 %v827_v40  ;;  %v1024_v40 = vld [vmem:[#allocation19 + $0xb0] sm:$0xff] }
 0x3cf   :  { %1404 = vmatprep.subr.mxu0 %v1788_v0 }
 0x3d0   :  { %1405 = vmatpush3.msra.mxu0 %v826_v41  ;;  %v1022_v41 = vld [vmem:[#allocation19 + $0xa0] sm:$0xff] }
 0x3d1   :  { %1406 = vmatprep.subr.mxu0 %v1788_v0 }
 0x3d2   :  { %1407 = vmatpush3.msra.mxu0 %v825_v42  ;;  %v1021_v42 = vld [vmem:[#allocation19 + $0x98] sm:$0xff] }
 0x3d3   :  { %1408 = vmatprep.subr.mxu0 %v1788_v0 }
 0x3d4   :  { %1409 = vmatpush3.msra.mxu0 %v824_v50  ;;  %v1014_v50 = vld [vmem:[#allocation19 + $0x60] sm:$0xff] }
 0x3d5   :  { %1410 = vmatprep.subr.mxu0 %v1788_v0 }
 0x3d6   :  { %1411 = vmatpush3.msra.mxu0 %v823_v51  ;;  %v1013_v51 = vld [vmem:[#allocation19 + $0x58] sm:$0xff] }
 0x3d7   :  { %1412 = vmatprep.subr.mxu0 %v1788_v0 }
 0x3d8   :  { %1413 = vmatpush3.msra.mxu0 %v822_v52  ;;  %v1012_v52 = vld [vmem:[#allocation19 + $0x50] sm:$0xff] }
 0x3d9   :  { %1414 = vmatprep.subr.mxu0 %v1788_v0 }
 0x3da   :  { %1415 = vmatpush3.msra.mxu0 %v821_v55  ;;  %v1011_v55 = vld [vmem:[#allocation19 + $0x48] sm:$0xff] }
 0x3db   :  { %1416 = vmatprep.subr.mxu0 %v1788_v0 }
 0x3dc   :  { %1417 = vmatpush3.msra.mxu0 %v820_v56  ;;  %v1010_v56 = vld [vmem:[#allocation19 + $0x40] sm:$0xff] }
 0x3dd   :  { %1418 = vmatprep.subr.mxu0 %v1788_v0 }
 0x3de   :  { %1419 = vmatpush3.msra.mxu0 %v819_v57  ;;  %v1009_v57 = vld [vmem:[#allocation19 + $0x38] sm:$0xff] }
 0x3df   :  { %1420 = vmatprep.subr.mxu0 %v1788_v0 }
 0x3e0   :  { %1421 = vmatpush3.msra.mxu0 %v818_v58  ;;  %v1008_v58 = vld [vmem:[#allocation19 + $0x30] sm:$0xff] }
 0x3e1   :  { %1422 = vmatprep.subr.mxu0 %v1788_v0 }
 0x3e2   :  { %1423 = vmatpush3.msra.mxu0 %v817_v59  ;;  %v1007_v59 = vld [vmem:[#allocation19 + $0x28] sm:$0xff] }
 0x3e3   :  { %1424 = vmatprep.subr.mxu0 %v1788_v0 }
 0x3e4   :  { %1425 = vmatpush3.msra.mxu0 %v816_v61  ;;  %v829_v61 = vld [vmem:[#allocation5 + $0x6] ss:$8 sm:$0x3] }
 0x3e5   :  { %1426 = vmatprep.subr.mxu0 %v1788_v0 }
 0x3e6   :  { %1427 = vmatpush3.msra.mxu0 %v815_v62  ;;  %v834_v62 = vrot.slane %v829_v61, %v1964_v63 }
 0x3e7   :  { %1428 = vmatprep.subr.mxu0 %v1788_v0 }
 0x3e8   :  { %1429 = vmatpush3.msra.mxu0 %v814_v1 }
 0x3e9   :  { %1430 = vmatprep.subr.mxu0 %v1788_v0 }
 0x3ea   :  { %1431 = vmatpush3.msra.mxu0 %v813_v2 }
 0x3eb   :  { %1432 = vmatprep.subr.mxu0 %v1788_v0 }
 0x3ec   :  { %1433 = vmatpush3.msra.mxu0 %v812_v3 }
 0x3ed   :  { %1047 = vmatprep.subr.mxu0 %v1033_v32 }
 0x48d   :  { %v685_v45 = vpop.f32.mrf.mxu0 }
 0x48e   :  { %v686_v46 = vadd.f32 %v685_v45, %v617_v44  ;;  %v1019_v44 = vld [vmem:[#allocation19 + $0x88] sm:$0xff]  ;;  %v1018_v45 = vld [vmem:[#allocation19 + $0x80] sm:$0xff] }
 0x48f   :  { %v1401_v47 = vpop.f32.mrf.mxu0 }
 0x490   :  { %v689_v49 = vmax.f32 %v686_v46, 0.0  ;;  %v1017_v46 = vld [vmem:[#allocation19 + $0x78] sm:$0xff]  ;;  %v1016_v47 = vld [vmem:[#allocation19 + $0x70] sm:$0xff] }
 0x492   :  { %800 = vmatmul.mubr.f32.vlgmr.msra.gmra.mxu1 %v689_v49  ;;  %v1015_v49 = vld [vmem:[#allocation19 + $0x68] sm:$0xff] }
 0x493   :  { %1469 = vmatprep.mubr.msk.f32.mxu1 %vm1789_vm0, %v1788_v0  ;;  %1438 = vmatpush3.msra.mxu1 %v921_v30 }
 0x494   :  { %1439 = vmatprep.subr.mxu1 %v1788_v0 }
 0x495   :  { %1440 = vmatpush3.msra.mxu1 %v920_v4  ;;  %v1006_v4 = vld [vmem:[#allocation19 + $0x20] sm:$0xff] }
 0x496   :  { %1441 = vmatprep.subr.mxu1 %v1788_v0 }
 0x497   :  { %1442 = vmatpush3.msra.mxu1 %v919_v5  ;;  %v1005_v5 = vld [vmem:[#allocation19 + $0x18] sm:$0xff] }
 0x498   :  { %1443 = vmatprep.subr.mxu1 %v1788_v0 }
 0x499   :  { %1444 = vmatpush3.msra.mxu1 %v918_v6  ;;  %v1004_v6 = vld [vmem:[#allocation19 + $0x10] sm:$0xff] }
 0x49a   :  { %1445 = vmatprep.subr.mxu1 %v1788_v0 }
 0x49b   :  { %1446 = vmatpush3.msra.mxu1 %v917_v7  ;;  %v1003_v7 = vld [vmem:[#allocation19 + $0x8] sm:$0xff] }
 0x49c   :  { %1447 = vmatprep.subr.mxu1 %v1788_v0 }
 0x49d   :  { %1448 = vmatpush3.msra.mxu1 %v916_v8  ;;  %v1002_v8 = vld [vmem:[#allocation19] sm:$0xff] }
 0x49e   :  { %1449 = vmatprep.subr.mxu1 %v1788_v0 }
 0x49f   :  { %1450 = vmatpush3.msra.mxu1 %v915_v9  ;;  %v924_v9 = vld [vmem:[#allocation5 + $0x7] ss:$8 sm:$0x3] }
 0x4a0   :  { %1451 = vmatprep.subr.mxu1 %v1788_v0 }
 0x4a1   :  { %1452 = vmatpush3.msra.mxu1 %v914_v10  ;;  %v929_v10 = vrot.slane %v924_v9, %v1964_v63 }
 0x4a2   :  { %1453 = vmatprep.subr.mxu1 %v1788_v0 }
 0x4a3   :  { %1454 = vmatpush3.msra.mxu1 %v913_v11 }
 0x4a4   :  { %1455 = vmatprep.subr.mxu1 %v1788_v0 }
 0x4a5   :  { %1456 = vmatpush3.msra.mxu1 %v912_v12 }
 0x4a6   :  { %1457 = vmatprep.subr.mxu1 %v1788_v0 }
 0x4a7   :  { %1458 = vmatpush3.msra.mxu1 %v911_v13 }
 0x4a8   :  { %1459 = vmatprep.subr.mxu1 %v1788_v0 }
 0x4a9   :  { %1460 = vmatpush3.msra.mxu1 %v910_v14 }
 0x4aa   :  { %1461 = vmatprep.subr.mxu1 %v1788_v0 }
 0x4ab   :  { %1462 = vmatpush3.msra.mxu1 %v909_v15  ;;  %v1035_v15 = vld [vmem:[#allocation5 + $0x10] ss:$8 sm:$0x3] }
 0x4ac   :  { %1463 = vmatprep.subr.mxu1 %v1788_v0  ;;  %v1044_v16 = vrot.slane %v1035_v15, %v2002_v48 }
 0x4ad   :  { %1464 = vmatpush3.msra.mxu1 %v908_v28 }
 0x4ae   :  { %1465 = vmatprep.subr.mxu1 %v1788_v0 }
 0x4af   :  { %1466 = vmatpush3.msra.mxu1 %v907_v29 }
 0x4b0   :  { %1467 = vmatprep.subr.mxu1 %v1788_v0 }
 0x4b1   :  { %1468 = vmatpush3.msra.mxu1 %v906_v31 }
 0x552   :  { %v801_v18 = vpop.f32.mrf.mxu1 }
 0x553   :  { %v802_v24 = vadd.f32 %v801_v18, %v728_v23 }
 0x554   :  { %v803_v19 = vpop.f32.mrf.mxu1 }
 0x555   :  { %v2055_v20 = vadd.f32 %v803_v19, %v732_v17  ;;  %v806_v25 = vsub.f32 %v2012_v60, %v802_v24  ;;  %v1031_v60 = vld [vmem:[#allocation19 + $0xe8] sm:$0xff] }
 0x557   :  { %v807_v21 = vsub.f32 0.0, %v2055_v20  ;;  %v811_v19 = vsub.f32 %v496_v54, %v2055_v20 }
 0x559   :  { %v808_v22 = vmul.f32 1.442695, %v807_v21 }
 0x55b   :  { %1493 = vpow2.f32 %v808_v22 }
 0x568   :  { %v1494_v26 = vpop.eup %1493 }
 0x569   :  { %v2060_v27 = vmul.f32 %v1494_v26, %v806_v25 }
 0x56b   :  { %1435 = vmatmul.mubr.f32.vlgmr.msra.gmra.mxu0 %v2060_v27 }
 0x56c   :  { %1111 = vmatprep.mubr.f32.mxu0 %v1788_v0  ;;  %1048 = vmatpush1.msra.mxu0 %v1032_v33  ;;  %v1023_v0 = vld [vmem:[#allocation19 + $0xa8] sm:$0xff] }
 0x56d   :  { %1049 = vmatprep.subr.mxu0 %v1031_v60 }
 0x56e   :  { %1050 = vmatpush1.msra.mxu0 %v1030_v34 }
 0x56f   :  { %1051 = vmatprep.subr.mxu0 %v1029_v35 }
 0x570   :  { %1052 = vmatpush1.msra.mxu0 %v1028_v36 }
 0x571   :  { %1053 = vmatprep.subr.mxu0 %v1027_v37 }
 0x572   :  { %1054 = vmatpush1.msra.mxu0 %v1026_v38 }
 0x573   :  { %1055 = vmatprep.subr.mxu0 %v1025_v39 }
 0x574   :  { %1056 = vmatpush1.msra.mxu0 %v1024_v40 }
 0x575   :  { %1057 = vmatprep.subr.mxu0 %v1023_v0 }
 0x576   :  { %1058 = vmatpush1.msra.mxu0 %v1022_v41 }
 0x577   :  { %1059 = vmatprep.subr.mxu0 %v1021_v42 }
 0x578   :  { %1060 = vmatpush1.msra.mxu0 %v1020_v43 }
 0x579   :  { %1061 = vmatprep.subr.mxu0 %v1019_v44 }
 0x57a   :  { %1062 = vmatpush1.msra.mxu0 %v1018_v45 }
 0x57b   :  { %1063 = vmatprep.subr.mxu0 %v1017_v46 }
 0x57c   :  { %1064 = vmatpush1.msra.mxu0 %v1016_v47 }
 0x57d   :  { %1065 = vmatprep.subr.mxu0 %v1015_v49 }
 0x57e   :  { %1066 = vmatpush1.msra.mxu0 %v1014_v50 }
 0x57f   :  { %1067 = vmatprep.subr.mxu0 %v1013_v51 }
 0x580   :  { %1068 = vmatpush1.msra.mxu0 %v1012_v52 }
 0x581   :  { %1069 = vmatprep.subr.mxu0 %v1011_v55 }
 0x582   :  { %1070 = vmatpush1.msra.mxu0 %v1010_v56 }
 0x583   :  { %1071 = vmatprep.subr.mxu0 %v1009_v57 }
 0x584   :  { %1072 = vmatpush1.msra.mxu0 %v1008_v58 }
 0x585   :  { %1073 = vmatprep.subr.mxu0 %v1007_v59 }
 0x586   :  { %1074 = vmatpush1.msra.mxu0 %v1006_v4 }
 0x587   :  { %1075 = vmatprep.subr.mxu0 %v1005_v5 }
 0x588   :  { %1076 = vmatpush1.msra.mxu0 %v1004_v6 }
 0x589   :  { %1077 = vmatprep.subr.mxu0 %v1003_v7 }
 0x58a   :  { %1078 = vmatpush1.msra.mxu0 %v1002_v8 }
 0x62b   :  { %v902_v1 = vpop.f32.mrf.mxu0 }
 0x62c   :  { %v903_v2 = vadd.f32 %v902_v1, %v834_v62 }
 0x62d   :  { %v1436_v3 = vpop.f32.mrf.mxu0 }
 0x62e   :  { %v922_v30 = vmax.f32 %v903_v2, 0.0 }
 0x630   :  { %1470 = vmatmul.mubr.f32.vlgmr.msra.gmra.mxu1 %v922_v30 }
 0x6f0   :  { %v997_v11 = vpop.f32.mrf.mxu1 }
 0x6f1   :  { %v998_v12 = vadd.f32 %v997_v11, %v929_v10 }
 0x6f2   :  { %v1471_v13 = vpop.f32.mrf.mxu1 }
 0x6f3   :  { %v1001_v14 = vmax.f32 %v998_v12, 0.0 }
 0x6f5   :  { %1112 = vmatmul.mubr.f32.vlgmr.msra.gmra.mxu0 %v1001_v14 }
 0x7b5   :  { %v1113_v17 = vpop.f32.mrf.mxu0 }
 0x7b7   :  { %v1115_v18 = vpop.f32.mrf.mxu0 }
 0x7b8   :  { %v1116_v21 = vadd.f32 %v1115_v18, %v1044_v16 }
 0x7ba   :  { %v1119_v22 = vsub.f32 0.0, %v1116_v21  ;;  %v1123_v23 = vsub.f32 %v811_v19, %v1116_v21 }
 0x7bc   :  { %v1120_v24 = vmul.f32 1.442695, %v1119_v22  ;;  %1125 = vst [vmem:[#allocation21] sm:$0xff] %v1123_v23 }
 0x7bd   :  { %1728 = shalt.err (!%p1725_p3)
}
 0x7be   :  { %1145 = dma.vmem_to_hbm [thread:$0]  %s1143_s10, 128, %s2092_s12, [#allocation22]   ;;  %1495 = vpow2.f32 %v1120_v24  ;;  %v1040_v48 = vrot.slane %v1035_v15, %v1964_v63 }
 0x7bf   :  { %s1791_s16 = smov [#allocation20]  }
 0x7c0   :  { %v1114_v53 = vadd.f32 %v1113_v17, %v1040_v48  ;;  %s1132_s20 = sshll.u32 %s1791_s16, 4  ;;  %s1133_s20 = int_to_ptr.vmem [resolvable:$true] %s1132_s20 }
 0x7c1   :  { %s1737_s9 = scalar_lea.vmem %s1133_s20, 128  ;;  %p1742_p5 = scmp.lt.s32.totalorder %s1133_s20, %s1133_s20 }
 0x7c2   :  { %v1118_v54 = vsub.f32 %v2060_v27, %v1114_v53  ;;  %p1738_p4 = scmp.ne.s32.totalorder %s1133_s20, %s1737_s9  ;;  %p1743_p6 = scmp.lt.s32.totalorder %s1737_s9, %s1737_s9 }
 0x7c4   :  { %p1744_p7 = por %p1743_p6, %p1742_p5 }
 0x7c6   :  { %p1745_p8 = pnand %p1744_p7, %p1738_p4 }
 0x7cb   :  { %v1496_v20 = vpop.eup %1495 }
 0x7cc   :  { %v1122_v25 = vmul.f32 %v1496_v20, %v1118_v54 }
 0x7ce   :  { %1124 = vst [vmem:[#allocation20] sm:$0xff] %v1122_v25 }
 0x7cf   :  { %1748 = shalt.err (!%p1745_p8)
}
 0x7d0   :  { %1135 = dma.vmem_to_hbm [thread:$0]  %s1133_s20, 128, %s2091_s11, [#allocation4]  }
 0x7d1   :  { %1769 = dma.done.wait [#allocation4], 128  }
 0x7d2   :  { %1770 = vsyncadd [#allocation4], 4294967168 }
 0x7d3   :  { %1771 = dma.done.wait [#allocation22], 128  }
 0x7d4   :  { %1772 = vsyncadd [#allocation22], 4294967168 }
 0x7d5   :  { %1152 = vsyncpa [#allocation3], 1 }
 0x7d6   :  { %1153 = vsyncpa [#allocation6], 1 }
 0x7d7   :  { %1154 = vsyncpa [#allocation9], 1 }
 0x7d8   :  { %1155 = vsyncpa [#allocation12], 1 }
 0x7d9   :  { %1156 = vsyncpa [#allocation15], 1 }
 0x7da   :  { %1157 = vsyncpa [#allocation18], 1 }
 0x7db   :  { %1158 = vsyncpa [#allocation4], 1 }
 0x7dc   :  { %1159 = vsyncpa [#allocation22], 1 }

// kernel: tpu_custom_call.1
= control target key start
LH: loop header
LB: loop body
LE: loop exit
PB: predicated region body
PF: predicated region fallthrough
CT: control target
= control target key end

     0   :  { %18 = vsyncpa [#allocation3], 0  ;;  %s2080_s0 = inlined_call_operand.hbm [shape: f32[8,128], index: 0, kind: input, shape index: {}]   ;;  %s2081_s1 = inlined_call_operand.hbm [shape: f32[9,256], index: 1, kind: input, shape index: {}]   ;;  %s2082_s2 = inlined_call_operand.hbm [shape: f32[128,128], index: 2, kind: input, shape index: {}]   ;;  %s2083_s3 = inlined_call_operand.hbm [shape: f32[128,128], index: 3, kind: input, shape index: {}]   ;;  %s2084_s4 = inlined_call_operand.hbm [shape: f32[128,256], index: 4, kind: input, shape index: {}]   ;;  %s2085_s5 = inlined_call_operand.hbm [shape: f32[128,128], index: 5, kind: input, shape index: {}]   ;;  %s2086_s6 = inlined_call_operand.hbm [shape: f32[128,128], index: 6, kind: input, shape index: {}]   ;;  %s2087_s7 = inlined_call_operand.hbm [shape: f32[128,256], index: 7, kind: input, shape index: {}]   ;;  %s2088_s8 = inlined_call_operand.hbm [shape: f32[128,128], index: 8, kind: input, shape index: {}]   ;;  %s2089_s9 = inlined_call_operand.hbm [shape: f32[128,128], index: 9, kind: input, shape index: {}]   ;;  %s2090_s10 = inlined_call_operand.hbm [shape: f32[128,256], index: 10, kind: input, shape index: {}]   ;;  %s2091_s11 = inlined_call_operand.hbm [shape: f32[8,128], index: 11, kind: output, shape index: {0}]   ;;  %s2092_s12 = inlined_call_operand.hbm [shape: f32[8,128], index: 12, kind: output, shape index: {1}]  }
   0x1   :  { %19 = vsyncpa [#allocation6], 0 }
   0x2   :  { %20 = vsyncpa [#allocation9], 0 }
   0x3   :  { %21 = vsyncpa [#allocation12], 0 }
   0x4   :  { %22 = vsyncpa [#allocation15], 0 }
   0x5   :  { %23 = vsyncpa [#allocation18], 0 }
   0x6   :  { %24 = vsyncpa [#allocation4], 0 }
   0x7   :  { %25 = vsyncpa [#allocation22], 0  ;;  %s1773_s21 = smov [#allocation5]  }
   0x8   :  { %s41_s22 = sshll.u32 %s1773_s21, 4  ;;  %s42_s22 = int_to_ptr.vmem [resolvable:$true] %s41_s22 }
   0x9   :  { %s1505_s23 = scalar_lea.vmem %s42_s22, 512  ;;  %p1510_p1 = scmp.lt.s32.totalorder %s42_s22, %s42_s22 }
   0xa   :  { %p1506_p0 = scmp.ne.s32.totalorder %s42_s22, %s1505_s23  ;;  %p1511_p2 = scmp.lt.s32.totalorder %s1505_s23, %s1505_s23 }
   0xc   :  { %p1512_p3 = por %p1511_p2, %p1510_p1 }
   0xe   :  { %p1513_p4 = pnand %p1512_p3, %p1506_p0 }
  0x10   :  { %1516 = shalt.err (!%p1513_p4)
}
  0x11   :  { %s1774_s24 = smov 256   ;;  %s1775_s25 = smov 16  }
  0x12   :  { %47 = dma.hbm_to_vmem [thread:$0]  %s2081_s1, 512, %s42_s22, [#allocation6], %s1774_s24, %s1774_s24, %s1775_s25  }
  0x13   :  { %s1776_s28 = smov [#allocation8]   ;;  %s1777_s30 = smov [#allocation11]  }
  0x14   :  { %s65_s29 = sshll.u32 %s1776_s28, 4  ;;  %s89_s13 = sshll.u32 %s1777_s30, 4  ;;  %s66_s29 = int_to_ptr.vmem [resolvable:$true] %s65_s29  ;;  %s90_s13 = int_to_ptr.vmem [resolvable:$true] %s89_s13 }
  0x15   :  { %s1525_s14 = scalar_lea.vmem %s66_s29, 2048  ;;  %p1530_p6 = scmp.lt.s32.totalorder %s66_s29, %s66_s29 }
  0x16   :  { %p1526_p5 = scmp.ne.s32.totalorder %s66_s29, %s1525_s14  ;;  %p1531_p7 = scmp.lt.s32.totalorder %s1525_s14, %s1525_s14 }
  0x18   :  { %p1532_p8 = por %p1531_p7, %p1530_p6 }
  0x1a   :  { %p1533_p9 = pnand %p1532_p8, %p1526_p5 }
  0x1c   :  { %1536 = shalt.err (!%p1533_p9)
}
  0x1d   :  { %s1778_s15 = smov 128   ;;  %s1779_s16 = smov 8  }
  0x1e   :  { %71 = dma.hbm_to_vmem [thread:$0]  %s2083_s3, 2048, %s66_s29, [#allocation9], %s1778_s15, %s1778_s15, %s1779_s16  }
  0x1f   :  { %s1545_s1 = scalar_lea.vmem %s90_s13, 2048  ;;  %p1550_p11 = scmp.lt.s32.totalorder %s90_s13, %s90_s13 }
  0x20   :  { %p1546_p10 = scmp.ne.s32.totalorder %s90_s13, %s1545_s1  ;;  %p1551_p12 = scmp.lt.s32.totalorder %s1545_s1, %s1545_s1 }
  0x22   :  { %p1552_p13 = por %p1551_p12, %p1550_p11 }
  0x24   :  { %p1553_p0 = pnand %p1552_p13, %p1546_p10 }
  0x26   :  { %1556 = shalt.err (!%p1553_p0)
}
  0x27   :  { %95 = dma.hbm_to_vmem [thread:$0]  %s2085_s5, 2048, %s90_s13, [#allocation12], %s1778_s15, %s1778_s15, %s1779_s16  }
  0x28   :  { %s1780_s21 = smov [#allocation14]   ;;  %s1781_s23 = smov [#allocation17]  }
  0x29   :  { %s113_s22 = sshll.u32 %s1780_s21, 4  ;;  %s137_s3 = sshll.u32 %s1781_s23, 4  ;;  %s114_s22 = int_to_ptr.vmem [resolvable:$true] %s113_s22  ;;  %s138_s3 = int_to_ptr.vmem [resolvable:$true] %s137_s3 }
  0x2a   :  { %s1565_s26 = scalar_lea.vmem %s114_s22, 4096  ;;  %p1570_p2 = scmp.lt.s32.totalorder %s114_s22, %s114_s22 }
  0x2b   :  { %p1566_p1 = scmp.ne.s32.totalorder %s114_s22, %s1565_s26  ;;  %p1571_p3 = scmp.lt.s32.totalorder %s1565_s26, %s1565_s26 }
  0x2d   :  { %p1572_p4 = por %p1571_p3, %p1570_p2 }
  0x2f   :  { %p1573_p5 = pnand %p1572_p4, %p1566_p1 }
  0x31   :  { %1576 = shalt.err (!%p1573_p5)
}
  0x32   :  { %119 = dma.hbm_to_vmem [thread:$0]  %s2087_s7, 4096, %s114_s22, [#allocation15], %s1774_s24, %s1774_s24, %s1775_s25  }
  0x33   :  { %s1585_s5 = scalar_lea.vmem %s138_s3, 2048  ;;  %p1590_p7 = scmp.lt.s32.totalorder %s138_s3, %s138_s3 }
  0x34   :  { %p1586_p6 = scmp.ne.s32.totalorder %s138_s3, %s1585_s5  ;;  %p1591_p8 = scmp.lt.s32.totalorder %s1585_s5, %s1585_s5 }
  0x36   :  { %p1592_p9 = por %p1591_p8, %p1590_p7 }
  0x38   :  { %p1593_p10 = pnand %p1592_p9, %p1586_p6 }
  0x3a   :  { %1596 = shalt.err (!%p1593_p10)
}
  0x3b   :  { %143 = dma.hbm_to_vmem [thread:$0]  %s2089_s9, 2048, %s138_s3, [#allocation18], %s1778_s15, %s1778_s15, %s1779_s16  }
  0x3c   :  { %s1782_s13 = smov [#allocation2]   ;;  %s1783_s17 = smov [#allocation7]  }
  0x3d   :  { %s32_s14 = sshll.u32 %s1782_s13, 4  ;;  %s53_s7 = sshll.u32 %s1783_s17, 4  ;;  %s33_s14 = int_to_ptr.vmem [resolvable:$true] %s32_s14  ;;  %s54_s7 = int_to_ptr.vmem [resolvable:$true] %s53_s7 }
  0x3e   :  { %s1605_s18 = scalar_lea.vmem %s33_s14, 128  ;;  %p1610_p12 = scmp.lt.s32.totalorder %s33_s14, %s33_s14 }
  0x3f   :  { %p1606_p11 = scmp.ne.s32.totalorder %s33_s14, %s1605_s18  ;;  %p1611_p13 = scmp.lt.s32.totalorder %s1605_s18, %s1605_s18 }
  0x41   :  { %p1612_p0 = por %p1611_p13, %p1610_p12 }
  0x43   :  { %p1613_p1 = pnand %p1612_p0, %p1606_p11 }
  0x45   :  { %1616 = shalt.err (!%p1613_p1)
}
  0x46   :  { %35 = dma.hbm_to_vmem [thread:$0]  %s2080_s0, 128, %s33_s14, [#allocation3]  }
  0x47   :  { %s1625_s20 = scalar_lea.vmem %s54_s7, 2048  ;;  %p1630_p3 = scmp.lt.s32.totalorder %s54_s7, %s54_s7 }
  0x48   :  { %p1626_p2 = scmp.ne.s32.totalorder %s54_s7, %s1625_s20  ;;  %p1631_p4 = scmp.lt.s32.totalorder %s1625_s20, %s1625_s20 }
  0x4a   :  { %p1632_p5 = por %p1631_p4, %p1630_p3 }
  0x4c   :  { %p1633_p6 = pnand %p1632_p5, %p1626_p2 }
  0x4e   :  { %1636 = shalt.err (!%p1633_p6)
}
  0x4f   :  { %59 = dma.hbm_to_vmem [thread:$0]  %s2082_s2, 2048, %s54_s7, [#allocation6], %s1778_s15, %s1778_s15, %s1779_s16  }
  0x50   :  { %s1784_s22 = smov [#allocation10]   ;;  %s1785_s3 = smov [#allocation13]  }
  0x51   :  { %s77_s23 = sshll.u32 %s1784_s22, 4  ;;  %s101_s0 = sshll.u32 %s1785_s3, 4  ;;  %s78_s23 = int_to_ptr.vmem [resolvable:$true] %s77_s23  ;;  %s102_s0 = int_to_ptr.vmem [resolvable:$true] %s101_s0 }
  0x52   :  { %s1645_s26 = scalar_lea.vmem %s78_s23, 4096  ;;  %p1650_p8 = scmp.lt.s32.totalorder %s78_s23, %s78_s23 }
  0x53   :  { %p1646_p7 = scmp.ne.s32.totalorder %s78_s23, %s1645_s26  ;;  %p1651_p9 = scmp.lt.s32.totalorder %s1645_s26, %s1645_s26 }
  0x55   :  { %p1652_p10 = por %p1651_p9, %p1650_p8 }
  0x57   :  { %p1653_p11 = pnand %p1652_p10, %p1646_p7 }
  0x59   :  { %1656 = shalt.err (!%p1653_p11)
}
  0x5a   :  { %83 = dma.hbm_to_vmem [thread:$0]  %s2084_s4, 4096, %s78_s23, [#allocation9], %s1774_s24, %s1774_s24, %s1775_s25  }
  0x5b   :  { %s1665_s2 = scalar_lea.vmem %s102_s0, 2048  ;;  %p1670_p13 = scmp.lt.s32.totalorder %s102_s0, %s102_s0 }
  0x5c   :  { %p1666_p12 = scmp.ne.s32.totalorder %s102_s0, %s1665_s2  ;;  %p1671_p0 = scmp.lt.s32.totalorder %s1665_s2, %s1665_s2 }
  0x5e   :  { %p1672_p1 = por %p1671_p0, %p1670_p13 }
  0x60   :  { %p1673_p2 = pnand %p1672_p1, %p1666_p12 }
  0x62   :  { %1676 = shalt.err (!%p1673_p2)
}
  0x63   :  { %107 = dma.hbm_to_vmem [thread:$0]  %s2086_s6, 2048, %s102_s0, [#allocation12], %s1778_s15, %s1778_s15, %s1779_s16  }
  0x64   :  { %s1786_s30 = smov [#allocation16]   ;;  %s1787_s14 = smov [#allocation19]  }
  0x65   :  { %s125_s13 = sshll.u32 %s1786_s30, 4  ;;  %s149_s4 = sshll.u32 %s1787_s14, 4  ;;  %s126_s13 = int_to_ptr.vmem [resolvable:$true] %s125_s13  ;;  %s150_s4 = int_to_ptr.vmem [resolvable:$true] %s149_s4 }
  0x66   :  { %s1685_s17 = scalar_lea.vmem %s126_s13, 2048  ;;  %p1690_p4 = scmp.lt.s32.totalorder %s126_s13, %s126_s13 }
  0x67   :  { %p1686_p3 = scmp.ne.s32.totalorder %s126_s13, %s1685_s17  ;;  %p1691_p5 = scmp.lt.s32.totalorder %s1685_s17, %s1685_s17 }
  0x69   :  { %p1692_p6 = por %p1691_p5, %p1690_p4 }
  0x6b   :  { %p1693_p7 = pnand %p1692_p6, %p1686_p3 }
  0x6d   :  { %1696 = shalt.err (!%p1693_p7)
}
  0x6e   :  { %131 = dma.hbm_to_vmem [thread:$0]  %s2088_s8, 2048, %s126_s13, [#allocation15], %s1778_s15, %s1778_s15, %s1779_s16  }
  0x6f   :  { %s1705_s6 = scalar_lea.vmem %s150_s4, 4096  ;;  %p1710_p9 = scmp.lt.s32.totalorder %s150_s4, %s150_s4 }
  0x70   :  { %p1706_p8 = scmp.ne.s32.totalorder %s150_s4, %s1705_s6  ;;  %p1711_p10 = scmp.lt.s32.totalorder %s1705_s6, %s1705_s6 }
  0x72   :  { %p1712_p11 = por %p1711_p10, %p1710_p9 }
  0x74   :  { %p1713_p12 = pnand %p1712_p11, %p1706_p8 }
  0x76   :  { %1716 = shalt.err (!%p1713_p12)
}
  0x77   :  { %155 = dma.hbm_to_vmem [thread:$0]  %s2090_s10, 4096, %s150_s4, [#allocation18], %s1774_s24, %s1774_s24, %s1775_s25  }
  0x78   :  { %1757 = dma.done.wait [#allocation3], 128  }
  0x79   :  { %1758 = vsyncadd [#allocation3], 4294967168 }
  0x7a   :  { %1759 = dma.done.wait [#allocation6], 2560  }
  0x7b   :  { %1760 = vsyncadd [#allocation6], 4294964736 }
  0x7c   :  { %1761 = dma.done.wait [#allocation9], 6144  }
  0x7d   :  { %1762 = vsyncadd [#allocation9], 4294961152 }
  0x7e   :  { %1763 = dma.done.wait [#allocation12], 4096  }
  0x7f   :  { %1764 = vsyncadd [#allocation12], 4294963200 }
  0x80   :  { %1765 = dma.done.wait [#allocation15], 6144  }
  0x81   :  { %1766 = vsyncadd [#allocation15], 4294961152 }
  0x82   :  { %1767 = dma.done.wait [#allocation18], 6144  }
  0x83   :  { %1768 = vsyncadd [#allocation18], 4294961152  ;;  %v1788_v0 = vmov 0.0   ;;  %vm1789_vm0 = vmmov 0   ;;  %v205_v1 = vld [vmem:[#allocation7 + $0x78] sm:$0xff]  ;;  %v204_v2 = vld [vmem:[#allocation7 + $0x70] sm:$0xff]  ;;  %v208_v61 = vlaneseq }
  0x84   :  { %1262 = vmatprep.subr.mxu0 %v1788_v0  ;;  %1294 = vmatprep.mubr.msk.f32.mxu0 %vm1789_vm0, %v1788_v0  ;;  %v203_v3 = vld [vmem:[#allocation7 + $0x68] sm:$0xff]  ;;  %v202_v4 = vld [vmem:[#allocation7 + $0x60] sm:$0xff]  ;;  %v298_v5 = vld [vmem:[#allocation8 + $0x78] sm:$0xff]  ;;  %s1790_s8 = smov [#allocation21]  }
  0x85   :  { %1297 = vmatprep.subr.mxu1 %v1788_v0  ;;  %1329 = vmatprep.mubr.msk.f32.mxu1 %vm1789_vm0, %v1788_v0  ;;  %v201_v6 = vld [vmem:[#allocation7 + $0x58] sm:$0xff]  ;;  %v297_v7 = vld [vmem:[#allocation8 + $0x70] sm:$0xff]  ;;  %v296_v8 = vld [vmem:[#allocation8 + $0x68] sm:$0xff]  ;;  %v1961_v62 = vshrl.u32 %v208_v61, 7  ;;  %s1142_s10 = sshll.u32 %s1790_s8, 4  ;;  %s1143_s10 = int_to_ptr.vmem [resolvable:$true] %s1142_s10 }
  0x86   :  { %1263 = vmatpush3.msra.mxu0 %v205_v1  ;;  %1298 = vmatpush3.msra.mxu1 %v298_v5  ;;  %v200_v9 = vld [vmem:[#allocation7 + $0x50] sm:$0xff]  ;;  %v295_v10 = vld [vmem:[#allocation8 + $0x60] sm:$0xff]  ;;  %v199_v11 = vld [vmem:[#allocation7 + $0x48] sm:$0xff]  ;;  %s1717_s24 = scalar_lea.vmem %s1143_s10, 128  ;;  %p1722_p0 = scmp.lt.s32.totalorder %s1143_s10, %s1143_s10 }
  0x87   :  { %1264 = vmatprep.subr.mxu0 %v1788_v0  ;;  %1299 = vmatprep.subr.mxu1 %v1788_v0  ;;  %v294_v12 = vld [vmem:[#allocation8 + $0x58] sm:$0xff]  ;;  %v198_v13 = vld [vmem:[#allocation7 + $0x40] sm:$0xff]  ;;  %v293_v14 = vld [vmem:[#allocation8 + $0x50] sm:$0xff]  ;;  %v1964_v63 = vsub.s32 0, %v1961_v62  ;;  %p1718_p13 = scmp.ne.s32.totalorder %s1143_s10, %s1717_s24  ;;  %p1723_p1 = scmp.lt.s32.totalorder %s1717_s24, %s1717_s24 }
  0x88   :  { %1265 = vmatpush3.msra.mxu0 %v204_v2  ;;  %1300 = vmatpush3.msra.mxu1 %v297_v7  ;;  %v197_v15 = vld [vmem:[#allocation7 + $0x38] sm:$0xff]  ;;  %v292_v16 = vld [vmem:[#allocation8 + $0x48] sm:$0xff]  ;;  %v196_v17 = vld [vmem:[#allocation7 + $0x30] sm:$0xff] }
  0x89   :  { %1266 = vmatprep.subr.mxu0 %v1788_v0  ;;  %1301 = vmatprep.subr.mxu1 %v1788_v0  ;;  %v291_v18 = vld [vmem:[#allocation8 + $0x40] sm:$0xff]  ;;  %v195_v19 = vld [vmem:[#allocation7 + $0x28] sm:$0xff]  ;;  %v290_v20 = vld [vmem:[#allocation8 + $0x38] sm:$0xff]  ;;  %p1724_p2 = por %p1723_p1, %p1722_p0 }
  0x8a   :  { %1267 = vmatpush3.msra.mxu0 %v203_v3  ;;  %1302 = vmatpush3.msra.mxu1 %v296_v8  ;;  %v194_v21 = vld [vmem:[#allocation7 + $0x20] sm:$0xff]  ;;  %v289_v22 = vld [vmem:[#allocation8 + $0x30] sm:$0xff]  ;;  %v193_v23 = vld [vmem:[#allocation7 + $0x18] sm:$0xff] }
  0x8b   :  { %1268 = vmatprep.subr.mxu0 %v1788_v0  ;;  %1303 = vmatprep.subr.mxu1 %v1788_v0  ;;  %v288_v24 = vld [vmem:[#allocation8 + $0x28] sm:$0xff]  ;;  %v192_v25 = vld [vmem:[#allocation7 + $0x10] sm:$0xff]  ;;  %v287_v26 = vld [vmem:[#allocation8 + $0x20] sm:$0xff]  ;;  %p1725_p3 = pnand %p1724_p2, %p1718_p13 }
  0x8c   :  { %1269 = vmatpush3.msra.mxu0 %v202_v4  ;;  %1304 = vmatpush3.msra.mxu1 %v295_v10  ;;  %v191_v27 = vld [vmem:[#allocation7 + $0x8] sm:$0xff]  ;;  %v286_v28 = vld [vmem:[#allocation8 + $0x18] sm:$0xff]  ;;  %v190_v29 = vld [vmem:[#allocation7] sm:$0xff] }
  0x8d   :  { %1270 = vmatprep.subr.mxu0 %v1788_v0  ;;  %1305 = vmatprep.subr.mxu1 %v1788_v0  ;;  %v1951_v30 = vld [vmem:[#allocation2] sm:$0xff]  ;;  %v285_v31 = vld [vmem:[#allocation8 + $0x10] sm:$0xff]  ;;  %v284_v32 = vld [vmem:[#allocation8 + $0x8] sm:$0xff] }
  0x8e   :  { %1271 = vmatpush3.msra.mxu0 %v201_v6  ;;  %1306 = vmatpush3.msra.mxu1 %v294_v12  ;;  %v283_v33 = vld [vmem:[#allocation8] sm:$0xff]  ;;  %v410_v34 = vld [vmem:[#allocation10 + $0xf8] sm:$0xff]  ;;  %v409_v35 = vld [vmem:[#allocation10 + $0xf0] sm:$0xff] }
  0x8f   :  { %1272 = vmatprep.subr.mxu0 %v1788_v0  ;;  %1307 = vmatprep.subr.mxu1 %v1788_v0  ;;  %v408_v36 = vld [vmem:[#allocation10 + $0xe8] sm:$0xff]  ;;  %v407_v37 = vld [vmem:[#allocation10 + $0xe0] sm:$0xff]  ;;  %v406_v38 = vld [vmem:[#allocation10 + $0xd8] sm:$0xff] }
  0x90   :  { %1273 = vmatpush3.msra.mxu0 %v200_v9  ;;  %1308 = vmatpush3.msra.mxu1 %v293_v14  ;;  %v405_v39 = vld [vmem:[#allocation10 + $0xd0] sm:$0xff]  ;;  %v404_v40 = vld [vmem:[#allocation10 + $0xc8] sm:$0xff]  ;;  %v403_v41 = vld [vmem:[#allocation10 + $0xc0] sm:$0xff] }
  0x91   :  { %1274 = vmatprep.subr.mxu0 %v1788_v0  ;;  %1309 = vmatprep.subr.mxu1 %v1788_v0  ;;  %v402_v42 = vld [vmem:[#allocation10 + $0xb8] sm:$0xff]  ;;  %v401_v43 = vld [vmem:[#allocation10 + $0xb0] sm:$0xff]  ;;  %v400_v44 = vld [vmem:[#allocation10 + $0xa8] sm:$0xff] }
  0x92   :  { %1275 = vmatpush3.msra.mxu0 %v199_v11  ;;  %1310 = vmatpush3.msra.mxu1 %v292_v16  ;;  %v399_v45 = vld [vmem:[#allocation10 + $0xa0] sm:$0xff]  ;;  %v398_v46 = vld [vmem:[#allocation10 + $0x98] sm:$0xff]  ;;  %v397_v47 = vld [vmem:[#allocation10 + $0x90] sm:$0xff] }
  0x93   :  { %1276 = vmatprep.subr.mxu0 %v1788_v0  ;;  %1311 = vmatprep.subr.mxu1 %v1788_v0  ;;  %v396_v48 = vld [vmem:[#allocation10 + $0x88] sm:$0xff]  ;;  %v395_v49 = vld [vmem:[#allocation10 + $0x80] sm:$0xff]  ;;  %v394_v50 = vld [vmem:[#allocation10 + $0x78] sm:$0xff] }
  0x94   :  { %1277 = vmatpush3.msra.mxu0 %v198_v13  ;;  %1312 = vmatpush3.msra.mxu1 %v291_v18  ;;  %v393_v51 = vld [vmem:[#allocation10 + $0x70] sm:$0xff]  ;;  %v392_v52 = vld [vmem:[#allocation10 + $0x68] sm:$0xff]  ;;  %v391_v53 = vld [vmem:[#allocation10 + $0x60] sm:$0xff] }
  0x95   :  { %1278 = vmatprep.subr.mxu0 %v1788_v0  ;;  %1313 = vmatprep.subr.mxu1 %v1788_v0  ;;  %v390_v54 = vld [vmem:[#allocation10 + $0x58] sm:$0xff]  ;;  %v389_v55 = vld [vmem:[#allocation10 + $0x50] sm:$0xff]  ;;  %v388_v56 = vld [vmem:[#allocation10 + $0x48] sm:$0xff] }
  0x96   :  { %1279 = vmatpush3.msra.mxu0 %v197_v15  ;;  %1314 = vmatpush3.msra.mxu1 %v290_v20  ;;  %v387_v57 = vld [vmem:[#allocation10 + $0x40] sm:$0xff]  ;;  %v386_v58 = vld [vmem:[#allocation10 + $0x38] sm:$0xff]  ;;  %v385_v59 = vld [vmem:[#allocation10 + $0x30] sm:$0xff] }
  0x97   :  { %1280 = vmatprep.subr.mxu0 %v1788_v0  ;;  %1315 = vmatprep.subr.mxu1 %v1788_v0  ;;  %v384_v60 = vld [vmem:[#allocation10 + $0x28] sm:$0xff]  ;;  %v383_v7 = vld [vmem:[#allocation10 + $0x20] sm:$0xff]  ;;  %v382_v8 = vld [vmem:[#allocation10 + $0x18] sm:$0xff] }
  0x98   :  { %1281 = vmatpush3.msra.mxu0 %v196_v17  ;;  %1316 = vmatpush3.msra.mxu1 %v289_v22  ;;  %v206_v1 = vld [vmem:[#allocation5] ss:$8 sm:$0x3]  ;;  %v381_v9 = vld [vmem:[#allocation10 + $0x10] sm:$0xff]  ;;  %v515_v12 = vld [vmem:[#allocation11 + $0x78] sm:$0xff] }
  0x99   :  { %1282 = vmatprep.subr.mxu0 %v1788_v0  ;;  %1317 = vmatprep.subr.mxu1 %v1788_v0  ;;  %v211_v2 = vrot.slane %v206_v1, %v1964_v63  ;;  %v380_v10 = vld [vmem:[#allocation10 + $0x8] sm:$0xff]  ;;  %v379_v11 = vld [vmem:[#allocation10] sm:$0xff]  ;;  %v514_v13 = vld [vmem:[#allocation11 + $0x70] sm:$0xff] }
  0x9a   :  { %1283 = vmatpush3.msra.mxu0 %v195_v19  ;;  %1318 = vmatpush3.msra.mxu1 %v288_v24  ;;  %v513_v14 = vld [vmem:[#allocation11 + $0x68] sm:$0xff]  ;;  %v511_v22 = vld [vmem:[#allocation11 + $0x58] sm:$0xff]  ;;  %v596_v61 = vld [vmem:[#allocation13 + $0x10] sm:$0xff] }
  0x9b   :  { %1284 = vmatprep.subr.mxu0 %v1788_v0  ;;  %1319 = vmatprep.subr.mxu1 %v1788_v0  ;;  %v301_v15 = vld [vmem:[#allocation5 + $0x1] ss:$8 sm:$0x3] }
  0x9c   :  { %1285 = vmatpush3.msra.mxu0 %v194_v21  ;;  %1320 = vmatpush3.msra.mxu1 %v287_v26  ;;  %v306_v16 = vrot.slane %v301_v15, %v1964_v63  ;;  %v512_v21 = vld [vmem:[#allocation11 + $0x60] sm:$0xff]  ;;  %v509_v24 = vld [vmem:[#allocation11 + $0x48] sm:$0xff]  ;;  %v507_v26 = vld [vmem:[#allocation11 + $0x38] sm:$0xff] }
  0x9d   :  { %1286 = vmatprep.subr.mxu0 %v1788_v0  ;;  %1321 = vmatprep.subr.mxu1 %v1788_v0  ;;  %v594_v1 = vld [vmem:[#allocation13] sm:$0xff]  ;;  %v707_v15 = vld [vmem:[#allocation14 + $0x88] sm:$0xff] }
  0x9e   :  { %1287 = vmatpush3.msra.mxu0 %v193_v23  ;;  %1322 = vmatpush3.msra.mxu1 %v286_v28  ;;  %v510_v23 = vld [vmem:[#allocation11 + $0x50] sm:$0xff]  ;;  %v505_v28 = vld [vmem:[#allocation11 + $0x28] sm:$0xff] }
  0x9f   :  { %1288 = vmatprep.subr.mxu0 %v1788_v0  ;;  %1323 = vmatprep.subr.mxu1 %v1788_v0 }
  0xa0   :  { %1289 = vmatpush3.msra.mxu0 %v192_v25  ;;  %1324 = vmatpush3.msra.mxu1 %v285_v31  ;;  %v508_v25 = vld [vmem:[#allocation11 + $0x40] sm:$0xff]  ;;  %v503_v31 = vld [vmem:[#allocation11 + $0x18] sm:$0xff] }
  0xa1   :  { %1290 = vmatprep.subr.mxu0 %v1788_v0  ;;  %1325 = vmatprep.subr.mxu1 %v1788_v0 }
  0xa2   :  { %1291 = vmatpush3.msra.mxu0 %v191_v27  ;;  %1326 = vmatpush3.msra.mxu1 %v284_v32  ;;  %v506_v27 = vld [vmem:[#allocation11 + $0x30] sm:$0xff] }
  0xa3   :  { %1292 = vmatprep.subr.mxu0 %v1788_v0  ;;  %1327 = vmatprep.subr.mxu1 %v1788_v0  ;;  %v502_v32 = vld [vmem:[#allocation11 + $0x10] sm:$0xff] }
  0xa4   :  { %1293 = vmatpush3.msra.mxu0 %v190_v29  ;;  %1328 = vmatpush3.msra.mxu1 %v283_v33  ;;  %v504_v29 = vld [vmem:[#allocation11 + $0x20] sm:$0xff]  ;;  %v501_v33 = vld [vmem:[#allocation11 + $0x8] sm:$0xff] }
  0xa5   :  { %1295 = vmatmul.mubr.f32.vlgmr.msra.gmra.mxu0 %v1951_v30  ;;  %1332 = vmatprep.subr.mxu1 %v1788_v0 }
  0xa6   :  { %488 = vmatprep.mubr.f32.mxu0 %v1788_v0  ;;  %424 = vmatprep.subr.mxu0 %v410_v34  ;;  %v500_v34 = vld [vmem:[#allocation11] sm:$0xff] }
  0xa7   :  { %425 = vmatpush1.msra.mxu0 %v409_v35  ;;  %v609_v35 = vld [vmem:[#allocation13 + $0x78] sm:$0xff] }
  0xa8   :  { %426 = vmatprep.subr.mxu0 %v408_v36  ;;  %v608_v36 = vld [vmem:[#allocation13 + $0x70] sm:$0xff] }
  0xa9   :  { %427 = vmatpush1.msra.mxu0 %v407_v37  ;;  %v607_v37 = vld [vmem:[#allocation13 + $0x68] sm:$0xff] }
  0xaa   :  { %428 = vmatprep.subr.mxu0 %v406_v38  ;;  %v606_v38 = vld [vmem:[#allocation13 + $0x60] sm:$0xff] }
  0xab   :  { %429 = vmatpush1.msra.mxu0 %v405_v39  ;;  %v605_v39 = vld [vmem:[#allocation13 + $0x58] sm:$0xff] }
  0xac   :  { %430 = vmatprep.subr.mxu0 %v404_v40  ;;  %v604_v40 = vld [vmem:[#allocation13 + $0x50] sm:$0xff] }
  0xad   :  { %431 = vmatpush1.msra.mxu0 %v403_v41  ;;  %v603_v41 = vld [vmem:[#allocation13 + $0x48] sm:$0xff] }
  0xae   :  { %432 = vmatprep.subr.mxu0 %v402_v42  ;;  %v602_v42 = vld [vmem:[#allocation13 + $0x40] sm:$0xff] }
  0xaf   :  { %433 = vmatpush1.msra.mxu0 %v401_v43  ;;  %v601_v43 = vld [vmem:[#allocation13 + $0x38] sm:$0xff] }
  0xb0   :  { %434 = vmatprep.subr.mxu0 %v400_v44  ;;  %v600_v44 = vld [vmem:[#allocation13 + $0x30] sm:$0xff] }
  0xb1   :  { %435 = vmatpush1.msra.mxu0 %v399_v45  ;;  %v599_v45 = vld [vmem:[#allocation13 + $0x28] sm:$0xff] }
  0xb2   :  { %436 = vmatprep.subr.mxu0 %v398_v46  ;;  %v598_v46 = vld [vmem:[#allocation13 + $0x20] sm:$0xff] }
  0xb3   :  { %437 = vmatpush1.msra.mxu0 %v397_v47  ;;  %v597_v47 = vld [vmem:[#allocation13 + $0x18] sm:$0xff] }
  0xb4   :  { %438 = vmatprep.subr.mxu0 %v396_v48  ;;  %v2002_v48 = vsub.s32 1, %v1961_v62  ;;  %v595_v62 = vld [vmem:[#allocation13 + $0x8] sm:$0xff] }
  0xb5   :  { %439 = vmatpush1.msra.mxu0 %v395_v49  ;;  %v412_v49 = vld [vmem:[#allocation5 + $0x2] ss:$8 sm:$0x3] }
  0xb6   :  { %440 = vmatprep.subr.mxu0 %v394_v50  ;;  %v421_v50 = vrot.slane %v412_v49, %v2002_v48 }
  0xb7   :  { %441 = vmatpush1.msra.mxu0 %v393_v51 }
  0xb8   :  { %442 = vmatprep.subr.mxu0 %v392_v52 }
  0xb9   :  { %443 = vmatpush1.msra.mxu0 %v391_v53 }
  0xba   :  { %444 = vmatprep.subr.mxu0 %v390_v54 }
  0xbb   :  { %445 = vmatpush1.msra.mxu0 %v389_v55 }
  0xbc   :  { %446 = vmatprep.subr.mxu0 %v388_v56  ;;  %v417_v56 = vrot.slane %v412_v49, %v1964_v63 }
  0xbd   :  { %447 = vmatpush1.msra.mxu0 %v387_v57 }
  0xbe   :  { %448 = vmatprep.subr.mxu0 %v386_v58 }
  0xbf   :  { %449 = vmatpush1.msra.mxu0 %v385_v59 }
  0xc0   :  { %450 = vmatprep.subr.mxu0 %v384_v60 }
  0xc1   :  { %451 = vmatpush1.msra.mxu0 %v383_v7  ;;  %v715_v7 = vld [vmem:[#allocation14 + $0xc8] sm:$0xff] }
  0xc2   :  { %452 = vmatprep.subr.mxu0 %v382_v8  ;;  %v714_v8 = vld [vmem:[#allocation14 + $0xc0] sm:$0xff] }
  0xc3   :  { %453 = vmatpush1.msra.mxu0 %v381_v9  ;;  %v713_v9 = vld [vmem:[#allocation14 + $0xb8] sm:$0xff] }
  0xc4   :  { %454 = vmatprep.subr.mxu0 %v380_v10  ;;  %v712_v10 = vld [vmem:[#allocation14 + $0xb0] sm:$0xff] }
  0xc5   :  { %455 = vmatpush1.msra.mxu0 %v379_v11  ;;  %v711_v11 = vld [vmem:[#allocation14 + $0xa8] sm:$0xff] }
  0xc6   :  { %1367 = vmatprep.subr.mxu0 %v1788_v0 }
 0x165   :  { %v279_v3 = vpop.f32.mrf.mxu0 }
 0x166   :  { %v280_v4 = vadd.f32 %v279_v3, %v211_v2  ;;  %v721_v2 = vld [vmem:[#allocation14 + $0xf8] sm:$0xff]  ;;  %v720_v3 = vld [vmem:[#allocation14 + $0xf0] sm:$0xff] }
 0x167   :  { %v1296_v5 = vpop.f32.mrf.mxu0 }
 0x168   :  { %v299_v6 = vmax.f32 %v280_v4, 0.0  ;;  %v718_v4 = vld [vmem:[#allocation14 + $0xe0] sm:$0xff]  ;;  %v717_v5 = vld [vmem:[#allocation14 + $0xd8] sm:$0xff] }
 0x16a   :  { %1330 = vmatmul.mubr.f32.vlgmr.msra.gmra.mxu1 %v299_v6  ;;  %v716_v6 = vld [vmem:[#allocation14 + $0xd0] sm:$0xff] }
 0x16b   :  { %1364 = vmatprep.mubr.msk.f32.mxu1 %vm1789_vm0, %v1788_v0  ;;  %1333 = vmatpush3.msra.mxu1 %v515_v12  ;;  %v710_v12 = vld [vmem:[#allocation14 + $0xa0] sm:$0xff] }
 0x16c   :  { %1334 = vmatprep.subr.mxu1 %v1788_v0 }
 0x16d   :  { %1335 = vmatpush3.msra.mxu1 %v514_v13  ;;  %v709_v13 = vld [vmem:[#allocation14 + $0x98] sm:$0xff] }
 0x16e   :  { %1336 = vmatprep.subr.mxu1 %v1788_v0 }
 0x16f   :  { %1337 = vmatpush3.msra.mxu1 %v513_v14  ;;  %v708_v14 = vld [vmem:[#allocation14 + $0x90] sm:$0xff] }
 0x170   :  { %1338 = vmatprep.subr.mxu1 %v1788_v0 }
 0x171   :  { %1339 = vmatpush3.msra.mxu1 %v512_v21  ;;  %v701_v21 = vld [vmem:[#allocation14 + $0x58] sm:$0xff] }
 0x172   :  { %1340 = vmatprep.subr.mxu1 %v1788_v0 }
 0x173   :  { %1341 = vmatpush3.msra.mxu1 %v511_v22  ;;  %v700_v22 = vld [vmem:[#allocation14 + $0x50] sm:$0xff] }
 0x174   :  { %1342 = vmatprep.subr.mxu1 %v1788_v0 }
 0x175   :  { %1343 = vmatpush3.msra.mxu1 %v510_v23  ;;  %v699_v23 = vld [vmem:[#allocation14 + $0x48] sm:$0xff] }
 0x176   :  { %1344 = vmatprep.subr.mxu1 %v1788_v0 }
 0x177   :  { %1345 = vmatpush3.msra.mxu1 %v509_v24  ;;  %v698_v24 = vld [vmem:[#allocation14 + $0x40] sm:$0xff] }
 0x178   :  { %1346 = vmatprep.subr.mxu1 %v1788_v0 }
 0x179   :  { %1347 = vmatpush3.msra.mxu1 %v508_v25  ;;  %v697_v25 = vld [vmem:[#allocation14 + $0x38] sm:$0xff] }
 0x17a   :  { %1348 = vmatprep.subr.mxu1 %v1788_v0 }
 0x17b   :  { %1349 = vmatpush3.msra.mxu1 %v507_v26  ;;  %v696_v26 = vld [vmem:[#allocation14 + $0x30] sm:$0xff] }
 0x17c   :  { %1350 = vmatprep.subr.mxu1 %v1788_v0 }
 0x17d   :  { %1351 = vmatpush3.msra.mxu1 %v506_v27  ;;  %v695_v27 = vld [vmem:[#allocation14 + $0x28] sm:$0xff] }
 0x17e   :  { %1352 = vmatprep.subr.mxu1 %v1788_v0 }
 0x17f   :  { %1353 = vmatpush3.msra.mxu1 %v505_v28  ;;  %v517_v28 = vld [vmem:[#allocation5 + $0x3] ss:$8 sm:$0x3] }
 0x180   :  { %1354 = vmatprep.subr.mxu1 %v1788_v0 }
 0x181   :  { %1355 = vmatpush3.msra.mxu1 %v504_v29  ;;  %v522_v29 = vrot.slane %v517_v28, %v1964_v63  ;;  %v908_v28 = vld [vmem:[#allocation17 + $0x10] sm:$0xff] }
 0x182   :  { %1356 = vmatprep.subr.mxu1 %v1788_v0 }
 0x183   :  { %1357 = vmatpush3.msra.mxu1 %v503_v31 }
 0x184   :  { %1358 = vmatprep.subr.mxu1 %v1788_v0 }
 0x185   :  { %1359 = vmatpush3.msra.mxu1 %v502_v32 }
 0x186   :  { %1360 = vmatprep.subr.mxu1 %v1788_v0 }
 0x187   :  { %1361 = vmatpush3.msra.mxu1 %v501_v33 }
 0x188   :  { %1362 = vmatprep.subr.mxu1 %v1788_v0 }
 0x189   :  { %1363 = vmatpush3.msra.mxu1 %v500_v34 }
 0x18a   :  { %735 = vmatprep.subr.mxu1 %v721_v2  ;;  %v813_v2 = vld [vmem:[#allocation16 + $0x8] sm:$0xff] }
 0x22a   :  { %v374_v17 = vpop.f32.mrf.mxu1 }
 0x22b   :  { %v375_v18 = vadd.f32 %v374_v17, %v306_v16  ;;  %v706_v16 = vld [vmem:[#allocation14 + $0x80] sm:$0xff]  ;;  %v705_v17 = vld [vmem:[#allocation14 + $0x78] sm:$0xff] }
 0x22c   :  { %v1331_v19 = vpop.f32.mrf.mxu1 }
 0x22d   :  { %v378_v20 = vmax.f32 %v375_v18, 0.0  ;;  %v704_v18 = vld [vmem:[#allocation14 + $0x70] sm:$0xff]  ;;  %v703_v19 = vld [vmem:[#allocation14 + $0x68] sm:$0xff] }
 0x22f   :  { %489 = vmatmul.mubr.f32.vlgmr.msra.gmra.mxu0 %v378_v20  ;;  %v702_v20 = vld [vmem:[#allocation14 + $0x60] sm:$0xff] }
 0x230   :  { %1399 = vmatprep.mubr.msk.f32.mxu0 %vm1789_vm0, %v1788_v0  ;;  %1368 = vmatpush3.msra.mxu0 %v609_v35  ;;  %v694_v35 = vld [vmem:[#allocation14 + $0x20] sm:$0xff] }
 0x231   :  { %1369 = vmatprep.subr.mxu0 %v1788_v0 }
 0x232   :  { %1370 = vmatpush3.msra.mxu0 %v608_v36  ;;  %v693_v36 = vld [vmem:[#allocation14 + $0x18] sm:$0xff] }
 0x233   :  { %1371 = vmatprep.subr.mxu0 %v1788_v0 }
 0x234   :  { %1372 = vmatpush3.msra.mxu0 %v607_v37  ;;  %v692_v37 = vld [vmem:[#allocation14 + $0x10] sm:$0xff] }
 0x235   :  { %1373 = vmatprep.subr.mxu0 %v1788_v0 }
 0x236   :  { %1374 = vmatpush3.msra.mxu0 %v606_v38  ;;  %v691_v38 = vld [vmem:[#allocation14 + $0x8] sm:$0xff] }
 0x237   :  { %1375 = vmatprep.subr.mxu0 %v1788_v0 }
 0x238   :  { %1376 = vmatpush3.msra.mxu0 %v605_v39  ;;  %v690_v39 = vld [vmem:[#allocation14] sm:$0xff] }
 0x239   :  { %1377 = vmatprep.subr.mxu0 %v1788_v0 }
 0x23a   :  { %1378 = vmatpush3.msra.mxu0 %v604_v40  ;;  %v827_v40 = vld [vmem:[#allocation16 + $0x78] sm:$0xff] }
 0x23b   :  { %1379 = vmatprep.subr.mxu0 %v1788_v0 }
 0x23c   :  { %1380 = vmatpush3.msra.mxu0 %v603_v41  ;;  %v826_v41 = vld [vmem:[#allocation16 + $0x70] sm:$0xff] }
 0x23d   :  { %1381 = vmatprep.subr.mxu0 %v1788_v0 }
 0x23e   :  { %1382 = vmatpush3.msra.mxu0 %v602_v42  ;;  %v825_v42 = vld [vmem:[#allocation16 + $0x68] sm:$0xff] }
 0x23f   :  { %1383 = vmatprep.subr.mxu0 %v1788_v0 }
 0x240   :  { %1384 = vmatpush3.msra.mxu0 %v601_v43  ;;  %v612_v43 = vld [vmem:[#allocation5 + $0x4] ss:$8 sm:$0x3] }
 0x241   :  { %1385 = vmatprep.subr.mxu0 %v1788_v0 }
 0x242   :  { %1386 = vmatpush3.msra.mxu0 %v600_v44  ;;  %v617_v44 = vrot.slane %v612_v43, %v1964_v63  ;;  %v1020_v43 = vld [vmem:[#allocation19 + $0x90] sm:$0xff] }
 0x243   :  { %1387 = vmatprep.subr.mxu0 %v1788_v0 }
 0x244   :  { %1388 = vmatpush3.msra.mxu0 %v599_v45 }
 0x245   :  { %1389 = vmatprep.subr.mxu0 %v1788_v0 }
 0x246   :  { %1390 = vmatpush3.msra.mxu0 %v598_v46 }
 0x247   :  { %1391 = vmatprep.subr.mxu0 %v1788_v0 }
 0x248   :  { %1392 = vmatpush3.msra.mxu0 %v597_v47 }
 0x249   :  { %1393 = vmatprep.subr.mxu0 %v1788_v0 }
 0x24a   :  { %1394 = vmatpush3.msra.mxu0 %v596_v61  ;;  %v816_v61 = vld [vmem:[#allocation16 + $0x20] sm:$0xff] }
 0x24b   :  { %1395 = vmatprep.subr.mxu0 %v1788_v0 }
 0x24c   :  { %1396 = vmatpush3.msra.mxu0 %v595_v62  ;;  %v815_v62 = vld [vmem:[#allocation16 + $0x18] sm:$0xff] }
 0x24d   :  { %1397 = vmatprep.subr.mxu0 %v1788_v0 }
 0x24e   :  { %1398 = vmatpush3.msra.mxu0 %v594_v1  ;;  %v814_v1 = vld [vmem:[#allocation16 + $0x10] sm:$0xff] }
 0x24f   :  { %1402 = vmatprep.subr.mxu0 %v1788_v0 }
 0x2ef   :  { %v490_v51 = vpop.f32.mrf.mxu0 }
 0x2f0   :  { %v491_v57 = vadd.f32 %v490_v51, %v417_v56  ;;  %v823_v51 = vld [vmem:[#allocation16 + $0x58] sm:$0xff]  ;;  %v820_v56 = vld [vmem:[#allocation16 + $0x40] sm:$0xff] }
 0x2f1   :  { %v492_v52 = vpop.f32.mrf.mxu0 }
 0x2f2   :  { %v2005_v53 = vadd.f32 %v492_v52, %v421_v50  ;;  %v495_v58 = vsub.f32 %v1951_v30, %v491_v57  ;;  %v719_v30 = vld [vmem:[#allocation14 + $0xe8] sm:$0xff]  ;;  %v824_v50 = vld [vmem:[#allocation16 + $0x60] sm:$0xff]  ;;  %v822_v52 = vld [vmem:[#allocation16 + $0x50] sm:$0xff] }
 0x2f3   :  { %v819_v57 = vld [vmem:[#allocation16 + $0x38] sm:$0xff] }
 0x2f4   :  { %v496_v54 = vsub.f32 0.0, %v2005_v53 }
 0x2f6   :  { %v497_v55 = vmul.f32 1.442695, %v496_v54 }
 0x2f8   :  { %1491 = vpow2.f32 %v497_v55  ;;  %v821_v55 = vld [vmem:[#allocation16 + $0x48] sm:$0xff] }
 0x305   :  { %v1492_v59 = vpop.eup %1491 }
 0x306   :  { %v2012_v60 = vmul.f32 %v1492_v59, %v495_v58  ;;  %v818_v58 = vld [vmem:[#allocation16 + $0x30] sm:$0xff]  ;;  %v817_v59 = vld [vmem:[#allocation16 + $0x28] sm:$0xff] }
 0x308   :  { %1365 = vmatmul.mubr.f32.vlgmr.msra.gmra.mxu1 %v2012_v60 }
 0x309   :  { %799 = vmatprep.mubr.f32.mxu1 %v1788_v0  ;;  %736 = vmatpush1.msra.mxu1 %v720_v3  ;;  %v812_v3 = vld [vmem:[#allocation16] sm:$0xff] }
 0x30a   :  { %737 = vmatprep.subr.mxu1 %v719_v30  ;;  %v921_v30 = vld [vmem:[#allocation17 + $0x78] sm:$0xff] }
 0x30b   :  { %738 = vmatpush1.msra.mxu1 %v718_v4  ;;  %v920_v4 = vld [vmem:[#allocation17 + $0x70] sm:$0xff] }
 0x30c   :  { %739 = vmatprep.subr.mxu1 %v717_v5  ;;  %v919_v5 = vld [vmem:[#allocation17 + $0x68] sm:$0xff] }
 0x30d   :  { %740 = vmatpush1.msra.mxu1 %v716_v6  ;;  %v918_v6 = vld [vmem:[#allocation17 + $0x60] sm:$0xff] }
 0x30e   :  { %741 = vmatprep.subr.mxu1 %v715_v7  ;;  %v917_v7 = vld [vmem:[#allocation17 + $0x58] sm:$0xff] }
 0x30f   :  { %742 = vmatpush1.msra.mxu1 %v714_v8  ;;  %v916_v8 = vld [vmem:[#allocation17 + $0x50] sm:$0xff] }
 0x310   :  { %743 = vmatprep.subr.mxu1 %v713_v9  ;;  %v915_v9 = vld [vmem:[#allocation17 + $0x48] sm:$0xff] }
 0x311   :  { %744 = vmatpush1.msra.mxu1 %v712_v10  ;;  %v914_v10 = vld [vmem:[#allocation17 + $0x40] sm:$0xff] }
 0x312   :  { %745 = vmatprep.subr.mxu1 %v711_v11  ;;  %v913_v11 = vld [vmem:[#allocation17 + $0x38] sm:$0xff] }
 0x313   :  { %746 = vmatpush1.msra.mxu1 %v710_v12  ;;  %v912_v12 = vld [vmem:[#allocation17 + $0x30] sm:$0xff] }
 0x314   :  { %747 = vmatprep.subr.mxu1 %v709_v13  ;;  %v911_v13 = vld [vmem:[#allocation17 + $0x28] sm:$0xff] }
 0x315   :  { %748 = vmatpush1.msra.mxu1 %v708_v14  ;;  %v910_v14 = vld [vmem:[#allocation17 + $0x20] sm:$0xff] }
 0x316   :  { %749 = vmatprep.subr.mxu1 %v707_v15  ;;  %v909_v15 = vld [vmem:[#allocation17 + $0x18] sm:$0xff] }
 0x317   :  { %750 = vmatpush1.msra.mxu1 %v706_v16  ;;  %v723_v16 = vld [vmem:[#allocation5 + $0x5] ss:$8 sm:$0x3] }
 0x318   :  { %751 = vmatprep.subr.mxu1 %v705_v17  ;;  %v732_v17 = vrot.slane %v723_v16, %v2002_v48 }
 0x319   :  { %752 = vmatpush1.msra.mxu1 %v704_v18 }
 0x31a   :  { %753 = vmatprep.subr.mxu1 %v703_v19 }
 0x31b   :  { %754 = vmatpush1.msra.mxu1 %v702_v20 }
 0x31c   :  { %755 = vmatprep.subr.mxu1 %v701_v21 }
 0x31d   :  { %756 = vmatpush1.msra.mxu1 %v700_v22 }
 0x31e   :  { %757 = vmatprep.subr.mxu1 %v699_v23  ;;  %v728_v23 = vrot.slane %v723_v16, %v1964_v63 }
 0x31f   :  { %758 = vmatpush1.msra.mxu1 %v698_v24 }
 0x320   :  { %759 = vmatprep.subr.mxu1 %v697_v25 }
 0x321   :  { %760 = vmatpush1.msra.mxu1 %v696_v26 }
 0x322   :  { %761 = vmatprep.subr.mxu1 %v695_v27 }
 0x323   :  { %762 = vmatpush1.msra.mxu1 %v694_v35  ;;  %v1029_v35 = vld [vmem:[#allocation19 + $0xd8] sm:$0xff] }
 0x324   :  { %763 = vmatprep.subr.mxu1 %v693_v36  ;;  %v1028_v36 = vld [vmem:[#allocation19 + $0xd0] sm:$0xff] }
 0x325   :  { %764 = vmatpush1.msra.mxu1 %v692_v37  ;;  %v1027_v37 = vld [vmem:[#allocation19 + $0xc8] sm:$0xff] }
 0x326   :  { %765 = vmatprep.subr.mxu1 %v691_v38  ;;  %v1026_v38 = vld [vmem:[#allocation19 + $0xc0] sm:$0xff] }
 0x327   :  { %766 = vmatpush1.msra.mxu1 %v690_v39  ;;  %v1025_v39 = vld [vmem:[#allocation19 + $0xb8] sm:$0xff] }
 0x328   :  { %1437 = vmatprep.subr.mxu1 %v1788_v0 }
 0x3c8   :  { %v590_v31 = vpop.f32.mrf.mxu1 }
 0x3c9   :  { %v591_v32 = vadd.f32 %v590_v31, %v522_v29  ;;  %v907_v29 = vld [vmem:[#allocation17 + $0x8] sm:$0xff]  ;;  %v906_v31 = vld [vmem:[#allocation17] sm:$0xff] }
 0x3ca   :  { %v1366_v33 = vpop.f32.mrf.mxu1 }
 0x3cb   :  { %v610_v34 = vmax.f32 %v591_v32, 0.0  ;;  %v1033_v32 = vld [vmem:[#allocation19 + $0xf8] sm:$0xff]  ;;  %v1032_v33 = vld [vmem:[#allocation19 + $0xf0] sm:$0xff] }
 0x3cd   :  { %1400 = vmatmul.mubr.f32.vlgmr.msra.gmra.mxu0 %v610_v34  ;;  %v1030_v34 = vld [vmem:[#allocation19 + $0xe0] sm:$0xff] }
 0x3ce   :  { %1434 = vmatprep.mubr.msk.f32.mxu0 %vm1789_vm0, %v1788_v0  ;;  %1403 = vmatpush3.msra.mxu0 %v827_v40  ;;  %v1024_v40 = vld [vmem:[#allocation19 + $0xb0] sm:$0xff] }
 0x3cf   :  { %1404 = vmatprep.subr.mxu0 %v1788_v0 }
 0x3d0   :  { %1405 = vmatpush3.msra.mxu0 %v826_v41  ;;  %v1022_v41 = vld [vmem:[#allocation19 + $0xa0] sm:$0xff] }
 0x3d1   :  { %1406 = vmatprep.subr.mxu0 %v1788_v0 }
 0x3d2   :  { %1407 = vmatpush3.msra.mxu0 %v825_v42  ;;  %v1021_v42 = vld [vmem:[#allocation19 + $0x98] sm:$0xff] }
 0x3d3   :  { %1408 = vmatprep.subr.mxu0 %v1788_v0 }
 0x3d4   :  { %1409 = vmatpush3.msra.mxu0 %v824_v50  ;;  %v1014_v50 = vld [vmem:[#allocation19 + $0x60] sm:$0xff] }
 0x3d5   :  { %1410 = vmatprep.subr.mxu0 %v1788_v0 }
 0x3d6   :  { %1411 = vmatpush3.msra.mxu0 %v823_v51  ;;  %v1013_v51 = vld [vmem:[#allocation19 + $0x58] sm:$0xff] }
 0x3d7   :  { %1412 = vmatprep.subr.mxu0 %v1788_v0 }
 0x3d8   :  { %1413 = vmatpush3.msra.mxu0 %v822_v52  ;;  %v1012_v52 = vld [vmem:[#allocation19 + $0x50] sm:$0xff] }
 0x3d9   :  { %1414 = vmatprep.subr.mxu0 %v1788_v0 }
 0x3da   :  { %1415 = vmatpush3.msra.mxu0 %v821_v55  ;;  %v1011_v55 = vld [vmem:[#allocation19 + $0x48] sm:$0xff] }
 0x3db   :  { %1416 = vmatprep.subr.mxu0 %v1788_v0 }
 0x3dc   :  { %1417 = vmatpush3.msra.mxu0 %v820_v56  ;;  %v1010_v56 = vld [vmem:[#allocation19 + $0x40] sm:$0xff] }
 0x3dd   :  { %1418 = vmatprep.subr.mxu0 %v1788_v0 }
 0x3de   :  { %1419 = vmatpush3.msra.mxu0 %v819_v57  ;;  %v1009_v57 = vld [vmem:[#allocation19 + $0x38] sm:$0xff] }
 0x3df   :  { %1420 = vmatprep.subr.mxu0 %v1788_v0 }
 0x3e0   :  { %1421 = vmatpush3.msra.mxu0 %v818_v58  ;;  %v1008_v58 = vld [vmem:[#allocation19 + $0x30] sm:$0xff] }
 0x3e1   :  { %1422 = vmatprep.subr.mxu0 %v1788_v0 }
 0x3e2   :  { %1423 = vmatpush3.msra.mxu0 %v817_v59  ;;  %v1007_v59 = vld [vmem:[#allocation19 + $0x28] sm:$0xff] }
 0x3e3   :  { %1424 = vmatprep.subr.mxu0 %v1788_v0 }
 0x3e4   :  { %1425 = vmatpush3.msra.mxu0 %v816_v61  ;;  %v829_v61 = vld [vmem:[#allocation5 + $0x6] ss:$8 sm:$0x3] }
 0x3e5   :  { %1426 = vmatprep.subr.mxu0 %v1788_v0 }
 0x3e6   :  { %1427 = vmatpush3.msra.mxu0 %v815_v62  ;;  %v834_v62 = vrot.slane %v829_v61, %v1964_v63 }
 0x3e7   :  { %1428 = vmatprep.subr.mxu0 %v1788_v0 }
 0x3e8   :  { %1429 = vmatpush3.msra.mxu0 %v814_v1 }
 0x3e9   :  { %1430 = vmatprep.subr.mxu0 %v1788_v0 }
 0x3ea   :  { %1431 = vmatpush3.msra.mxu0 %v813_v2 }
 0x3eb   :  { %1432 = vmatprep.subr.mxu0 %v1788_v0 }
 0x3ec   :  { %1433 = vmatpush3.msra.mxu0 %v812_v3 }
 0x3ed   :  { %1047 = vmatprep.subr.mxu0 %v1033_v32 }
 0x48d   :  { %v685_v45 = vpop.f32.mrf.mxu0 }
 0x48e   :  { %v686_v46 = vadd.f32 %v685_v45, %v617_v44  ;;  %v1019_v44 = vld [vmem:[#allocation19 + $0x88] sm:$0xff]  ;;  %v1018_v45 = vld [vmem:[#allocation19 + $0x80] sm:$0xff] }
 0x48f   :  { %v1401_v47 = vpop.f32.mrf.mxu0 }
 0x490   :  { %v689_v49 = vmax.f32 %v686_v46, 0.0  ;;  %v1017_v46 = vld [vmem:[#allocation19 + $0x78] sm:$0xff]  ;;  %v1016_v47 = vld [vmem:[#allocation19 + $0x70] sm:$0xff] }
 0x492   :  { %800 = vmatmul.mubr.f32.vlgmr.msra.gmra.mxu1 %v689_v49  ;;  %v1015_v49 = vld [vmem:[#allocation19 + $0x68] sm:$0xff] }
 0x493   :  { %1469 = vmatprep.mubr.msk.f32.mxu1 %vm1789_vm0, %v1788_v0  ;;  %1438 = vmatpush3.msra.mxu1 %v921_v30 }
 0x494   :  { %1439 = vmatprep.subr.mxu1 %v1788_v0 }
 0x495   :  { %1440 = vmatpush3.msra.mxu1 %v920_v4  ;;  %v1006_v4 = vld [vmem:[#allocation19 + $0x20] sm:$0xff] }
 0x496   :  { %1441 = vmatprep.subr.mxu1 %v1788_v0 }
 0x497   :  { %1442 = vmatpush3.msra.mxu1 %v919_v5  ;;  %v1005_v5 = vld [vmem:[#allocation19 + $0x18] sm:$0xff] }
 0x498   :  { %1443 = vmatprep.subr.mxu1 %v1788_v0 }
 0x499   :  { %1444 = vmatpush3.msra.mxu1 %v918_v6  ;;  %v1004_v6 = vld [vmem:[#allocation19 + $0x10] sm:$0xff] }
 0x49a   :  { %1445 = vmatprep.subr.mxu1 %v1788_v0 }
 0x49b   :  { %1446 = vmatpush3.msra.mxu1 %v917_v7  ;;  %v1003_v7 = vld [vmem:[#allocation19 + $0x8] sm:$0xff] }
 0x49c   :  { %1447 = vmatprep.subr.mxu1 %v1788_v0 }
 0x49d   :  { %1448 = vmatpush3.msra.mxu1 %v916_v8  ;;  %v1002_v8 = vld [vmem:[#allocation19] sm:$0xff] }
 0x49e   :  { %1449 = vmatprep.subr.mxu1 %v1788_v0 }
 0x49f   :  { %1450 = vmatpush3.msra.mxu1 %v915_v9  ;;  %v924_v9 = vld [vmem:[#allocation5 + $0x7] ss:$8 sm:$0x3] }
 0x4a0   :  { %1451 = vmatprep.subr.mxu1 %v1788_v0 }
 0x4a1   :  { %1452 = vmatpush3.msra.mxu1 %v914_v10  ;;  %v929_v10 = vrot.slane %v924_v9, %v1964_v63 }
 0x4a2   :  { %1453 = vmatprep.subr.mxu1 %v1788_v0 }
 0x4a3   :  { %1454 = vmatpush3.msra.mxu1 %v913_v11 }
 0x4a4   :  { %1455 = vmatprep.subr.mxu1 %v1788_v0 }
 0x4a5   :  { %1456 = vmatpush3.msra.mxu1 %v912_v12 }
 0x4a6   :  { %1457 = vmatprep.subr.mxu1 %v1788_v0 }
 0x4a7   :  { %1458 = vmatpush3.msra.mxu1 %v911_v13 }
 0x4a8   :  { %1459 = vmatprep.subr.mxu1 %v1788_v0 }
 0x4a9   :  { %1460 = vmatpush3.msra.mxu1 %v910_v14 }
 0x4aa   :  { %1461 = vmatprep.subr.mxu1 %v1788_v0 }
 0x4ab   :  { %1462 = vmatpush3.msra.mxu1 %v909_v15  ;;  %v1035_v15 = vld [vmem:[#allocation5 + $0x10] ss:$8 sm:$0x3] }
 0x4ac   :  { %1463 = vmatprep.subr.mxu1 %v1788_v0  ;;  %v1044_v16 = vrot.slane %v1035_v15, %v2002_v48 }
 0x4ad   :  { %1464 = vmatpush3.msra.mxu1 %v908_v28 }
 0x4ae   :  { %1465 = vmatprep.subr.mxu1 %v1788_v0 }
 0x4af   :  { %1466 = vmatpush3.msra.mxu1 %v907_v29 }
 0x4b0   :  { %1467 = vmatprep.subr.mxu1 %v1788_v0 }
 0x4b1   :  { %1468 = vmatpush3.msra.mxu1 %v906_v31 }
 0x552   :  { %v801_v18 = vpop.f32.mrf.mxu1 }
 0x553   :  { %v802_v24 = vadd.f32 %v801_v18, %v728_v23 }
 0x554   :  { %v803_v19 = vpop.f32.mrf.mxu1 }
 0x555   :  { %v2055_v20 = vadd.f32 %v803_v19, %v732_v17  ;;  %v806_v25 = vsub.f32 %v2012_v60, %v802_v24  ;;  %v1031_v60 = vld [vmem:[#allocation19 + $0xe8] sm:$0xff] }
 0x557   :  { %v807_v21 = vsub.f32 0.0, %v2055_v20  ;;  %v811_v19 = vsub.f32 %v496_v54, %v2055_v20 }
 0x559   :  { %v808_v22 = vmul.f32 1.442695, %v807_v21 }
 0x55b   :  { %1493 = vpow2.f32 %v808_v22 }
 0x568   :  { %v1494_v26 = vpop.eup %1493 }
 0x569   :  { %v2060_v27 = vmul.f32 %v1494_v26, %v806_v25 }
 0x56b   :  { %1435 = vmatmul.mubr.f32.vlgmr.msra.gmra.mxu0 %v2060_v27 }
 0x56c   :  { %1111 = vmatprep.mubr.f32.mxu0 %v1788_v0  ;;  %1048 = vmatpush1.msra.mxu0 %v1032_v33  ;;  %v1023_v0 = vld [vmem:[#allocation19 + $0xa8] sm:$0xff] }
 0x56d   :  { %1049 = vmatprep.subr.mxu0 %v1031_v60 }
 0x56e   :  { %1050 = vmatpush1.msra.mxu0 %v1030_v34 }
 0x56f   :  { %1051 = vmatprep.subr.mxu0 %v1029_v35 }
 0x570   :  { %1052 = vmatpush1.msra.mxu0 %v1028_v36 }
 0x571   :  { %1053 = vmatprep.subr.mxu0 %v1027_v37 }
 0x572   :  { %1054 = vmatpush1.msra.mxu0 %v1026_v38 }
 0x573   :  { %1055 = vmatprep.subr.mxu0 %v1025_v39 }
 0x574   :  { %1056 = vmatpush1.msra.mxu0 %v1024_v40 }
 0x575   :  { %1057 = vmatprep.subr.mxu0 %v1023_v0 }
 0x576   :  { %1058 = vmatpush1.msra.mxu0 %v1022_v41 }
 0x577   :  { %1059 = vmatprep.subr.mxu0 %v1021_v42 }
 0x578   :  { %1060 = vmatpush1.msra.mxu0 %v1020_v43 }
 0x579   :  { %1061 = vmatprep.subr.mxu0 %v1019_v44 }
 0x57a   :  { %1062 = vmatpush1.msra.mxu0 %v1018_v45 }
 0x57b   :  { %1063 = vmatprep.subr.mxu0 %v1017_v46 }
 0x57c   :  { %1064 = vmatpush1.msra.mxu0 %v1016_v47 }
 0x57d   :  { %1065 = vmatprep.subr.mxu0 %v1015_v49 }
 0x57e   :  { %1066 = vmatpush1.msra.mxu0 %v1014_v50 }
 0x57f   :  { %1067 = vmatprep.subr.mxu0 %v1013_v51 }
 0x580   :  { %1068 = vmatpush1.msra.mxu0 %v1012_v52 }
 0x581   :  { %1069 = vmatprep.subr.mxu0 %v1011_v55 }
 0x582   :  { %1070 = vmatpush1.msra.mxu0 %v1010_v56 }
 0x583   :  { %1071 = vmatprep.subr.mxu0 %v1009_v57 }
 0x584   :  { %1072 = vmatpush1.msra.mxu0 %v1008_v58 }
 0x585   :  { %1073 = vmatprep.subr.mxu0 %v1007_v59 }
 0x586   :  { %1074 = vmatpush1.msra.mxu0 %v1006_v4 }
 0x587   :  { %1075 = vmatprep.subr.mxu0 %v1005_v5 }
 0x588   :  { %1076 = vmatpush1.msra.mxu0 %v1004_v6 }
 0x589   :  { %1077 = vmatprep.subr.mxu0 %v1003_v7 }
 0x58a   :  { %1078 = vmatpush1.msra.mxu0 %v1002_v8 }
 0x62b   :  { %v902_v1 = vpop.f32.mrf.mxu0 }
 0x62c   :  { %v903_v2 = vadd.f32 %v902_v1, %v834_v62 }
 0x62d   :  { %v1436_v3 = vpop.f32.mrf.mxu0 }
 0x62e   :  { %v922_v30 = vmax.f32 %v903_v2, 0.0 }
 0x630   :  { %1470 = vmatmul.mubr.f32.vlgmr.msra.gmra.mxu1 %v922_v30 }
 0x6f0   :  { %v997_v11 = vpop.f32.mrf.mxu1 }
 0x6f1   :  { %v998_v12 = vadd.f32 %v997_v11, %v929_v10 }
 0x6f2   :  { %v1471_v13 = vpop.f32.mrf.mxu1 }
 0x6f3   :  { %v1001_v14 = vmax.f32 %v998_v12, 0.0 }
 0x6f5   :  { %1112 = vmatmul.mubr.f32.vlgmr.msra.gmra.mxu0 %v1001_v14 }
 0x7b5   :  { %v1113_v17 = vpop.f32.mrf.mxu0 }
 0x7b7   :  { %v1115_v18 = vpop.f32.mrf.mxu0 }
 0x7b8   :  { %v1116_v21 = vadd.f32 %v1115_v18, %v1044_v16 }
 0x7ba   :  { %v1119_v22 = vsub.f32 0.0, %v1116_v21  ;;  %v1123_v23 = vsub.f32 %v811_v19, %v1116_v21 }
 0x7bc   :  { %v1120_v24 = vmul.f32 1.442695, %v1119_v22  ;;  %1125 = vst [vmem:[#allocation21] sm:$0xff] %v1123_v23 }
 0x7bd   :  { %1728 = shalt.err (!%p1725_p3)
}
 0x7be   :  { %1145 = dma.vmem_to_hbm [thread:$0]  %s1143_s10, 128, %s2092_s12, [#allocation22]   ;;  %1495 = vpow2.f32 %v1120_v24  ;;  %v1040_v48 = vrot.slane %v1035_v15, %v1964_v63 }
 0x7bf   :  { %s1791_s16 = smov [#allocation20]  }
 0x7c0   :  { %v1114_v53 = vadd.f32 %v1113_v17, %v1040_v48  ;;  %s1132_s20 = sshll.u32 %s1791_s16, 4  ;;  %s1133_s20 = int_to_ptr.vmem [resolvable:$true] %s1132_s20 }
 0x7c1   :  { %s1737_s9 = scalar_lea.vmem %s1133_s20, 128  ;;  %p1742_p5 = scmp.lt.s32.totalorder %s1133_s20, %s1133_s20 }
 0x7c2   :  { %v1118_v54 = vsub.f32 %v2060_v27, %v1114_v53  ;;  %p1738_p4 = scmp.ne.s32.totalorder %s1133_s20, %s1737_s9  ;;  %p1743_p6 = scmp.lt.s32.totalorder %s1737_s9, %s1737_s9 }
 0x7c4   :  { %p1744_p7 = por %p1743_p6, %p1742_p5 }
 0x7c6   :  { %p1745_p8 = pnand %p1744_p7, %p1738_p4 }
 0x7cb   :  { %v1496_v20 = vpop.eup %1495 }
 0x7cc   :  { %v1122_v25 = vmul.f32 %v1496_v20, %v1118_v54 }
 0x7ce   :  { %1124 = vst [vmem:[#allocation20] sm:$0xff] %v1122_v25 }
 0x7cf   :  { %1748 = shalt.err (!%p1745_p8)
}
 0x7d0   :  { %1135 = dma.vmem_to_hbm [thread:$0]  %s1133_s20, 128, %s2091_s11, [#allocation4]  }
 0x7d1   :  { %1769 = dma.done.wait [#allocation4], 128  }
 0x7d2   :  { %1770 = vsyncadd [#allocation4], 4294967168 }
 0x7d3   :  { %1771 = dma.done.wait [#allocation22], 128  }
 0x7d4   :  { %1772 = vsyncadd [#allocation22], 4294967168 }
 0x7d5   :  { %1152 = vsyncpa [#allocation3], 1 }
 0x7d6   :  { %1153 = vsyncpa [#allocation6], 1 }
 0x7d7   :  { %1154 = vsyncpa [#allocation9], 1 }
 0x7d8   :  { %1155 = vsyncpa [#allocation12], 1 }
 0x7d9   :  { %1156 = vsyncpa [#allocation15], 1 }
 0x7da   :  { %1157 = vsyncpa [#allocation18], 1 }
 0x7db   :  { %1158 = vsyncpa [#allocation4], 1 }
 0x7dc   :  { %1159 = vsyncpa [#allocation22], 1 }

</bundles_post_ra>
